<compile_context>
chip_gen: v7x
topology: tpu7x:2x2x1
jax: 0.10.0
libtpu: 0.0.40
codegen_flags: <defaults>
</compile_context>

<pallas_src>
import math
from functools import partial

import jax
import jax.numpy as jnp
from jax import lax
from jax.experimental import pallas as pl
from jax.experimental.pallas import tpu as pltpu


# -----------------------------------------------------------------------------
# helpers
# -----------------------------------------------------------------------------
def _round_up(x, m):
    return (x + m - 1) // m * m


def _largest_divisor(n, candidates):
    for c in candidates:
        if n % c == 0:
            return c
    return n


def _vmem_limit_bytes():
    # 48 MiB is fine on 128 MiB parts (v5e/v6e) but too greedy on v7x (64 MiB).
    try:
        cap = pltpu.get_tpu_info().vmem_capacity_bytes
    except Exception:
        cap = 64 * 1024 * 1024
    return 40 * 1024 * 1024 if cap <= 64 * 1024 * 1024 else 48 * 1024 * 1024


VMEM_LIMIT = _vmem_limit_bytes()


# -----------------------------------------------------------------------------
# in_proj: one row-tiled matmul, two outputs (x half in bf16 for the conv,
# z half in f32 for the gate).  Full-K (d_model is small), tm up to 512.
# -----------------------------------------------------------------------------
def _in_proj_kernel(x_ref, wx_ref, wz_ref, xo_ref, zo_ref):
    a = x_ref[...].astype(jnp.bfloat16)
    xo_ref[...] = jnp.dot(a, wx_ref[...],
                          preferred_element_type=jnp.float32).astype(jnp.bfloat16)
    zo_ref[...] = jnp.dot(a, wz_ref[...], preferred_element_type=jnp.float32)


def pallas_in_proj(x2d, wx, wz):
    m, d_model = x2d.shape
    d_inner = wx.shape[1]
    mp = _round_up(m, 8)
    tm = _largest_divisor(mp, (512, 256, 128, 64, 32, 16, 8))
    x_p = jnp.pad(x2d, ((0, mp - m), (0, 0)))
    xo, zo = pl.pallas_call(
        _in_proj_kernel,
        out_shape=(jax.ShapeDtypeStruct((mp, d_inner), jnp.bfloat16),
                   jax.ShapeDtypeStruct((mp, d_inner), jnp.float32)),
        grid=(mp // tm,),
        in_specs=[
            pl.BlockSpec((tm, d_model), lambda i: (i, 0)),
            pl.BlockSpec((d_model, d_inner), lambda i: (0, 0)),
            pl.BlockSpec((d_model, d_inner), lambda i: (0, 0)),
        ],
        out_specs=(pl.BlockSpec((tm, d_inner), lambda i: (i, 0)),
                   pl.BlockSpec((tm, d_inner), lambda i: (i, 0))),
        compiler_params=pltpu.CompilerParams(
            dimension_semantics=("parallel",),
            vmem_limit_bytes=VMEM_LIMIT),
    )(x_p, wx, wz)
    return xo[:m], zo[:m]


# -----------------------------------------------------------------------------
# Depthwise 3x3 conv + SiLU, row-tiled with a 2-row halo (two extra 1-row
# BlockSpecs on the same padded array).  bf16 in HBM, f32 math in-kernel.
# -----------------------------------------------------------------------------
def _dwconv_silu_kernel(xm_ref, h0_ref, h1_ref, w_ref, b_ref, o_ref, *, TH, W, KS):
    x = jnp.concatenate([xm_ref[...], h0_ref[...], h1_ref[...]],
                        axis=0).astype(jnp.float32)          # (TH+2, Wp, C)
    C = x.shape[-1]
    acc = jnp.zeros((TH, W, C), jnp.float32)
    for dy in range(KS):
        for dx in range(KS):
            acc = acc + x[dy:dy + TH, dx:dx + W, :] * w_ref[dy:dy + 1, dx:dx + 1, :]
    acc = acc + b_ref[...]
    o_ref[...] = (acc * jax.nn.sigmoid(acc)).astype(o_ref.dtype)   # SiLU


def pallas_dwconv_silu(x_pad, w, b):
    B, Hp, Wp, C = x_pad.shape
    KS = w.shape[0]
    assert KS == 3  # TODO(synk): halo specs are hard-wired for d_conv == 3.
    H, W = Hp - (KS - 1), Wp - (KS - 1)
    TH = _largest_divisor(H, (32, 16, 8, 4, 2, 1))
    kern = partial(_dwconv_silu_kernel, TH=TH, W=W, KS=KS)
    return pl.pallas_call(
        kern,
        out_shape=jax.ShapeDtypeStruct((B, H, W, C), jnp.bfloat16),
        grid=(B, H // TH),
        in_specs=[
            pl.BlockSpec((None, TH, Wp, C), lambda bb, i: (bb, i, 0, 0)),
            pl.BlockSpec((None, 1, Wp, C), lambda bb, i: (bb, i * TH + TH, 0, 0)),
            pl.BlockSpec((None, 1, Wp, C), lambda bb, i: (bb, i * TH + TH + 1, 0, 0)),
            pl.BlockSpec((KS, KS, C), lambda bb, i: (0, 0, 0)),
            pl.BlockSpec((1, 1, C), lambda bb, i: (0, 0, 0)),
        ],
        out_specs=pl.BlockSpec((None, TH, W, C), lambda bb, i: (bb, i, 0, 0)),
        compiler_params=pltpu.CompilerParams(
            dimension_semantics=("parallel", "parallel"),
            vmem_limit_bytes=VMEM_LIMIT),
    )(x_pad, x_pad, x_pad, w, b.reshape(1, 1, C))


# -----------------------------------------------------------------------------
# Fused x_proj + dt_proj + selective scan for ONE direction.
#   grid = (B, L/TL), state h (N, D) persists in VMEM scratch across L-tiles.
#   reverse=True implements the flipped directions purely via tile-index
#   reversal + reverse in-tile iteration (output is already "unflipped").
# -----------------------------------------------------------------------------
def _scan_dir_kernel(xs_ref, wxdt_ref, wbc_ref, wdt_ref, a_ref, dvec_ref,
                     bias_ref, y_ref, h_ref, delta_ref, du_ref, bct_ref,
                     *, n_state, tl, chunk, reverse):
    @pl.when(pl.program_id(1) == 0)
    def _init():
        h_ref[...] = jnp.zeros_like(h_ref)

    n_chunks = tl // chunk
    x_bf = xs_ref[...]                                   # (TL, D) bf16
    u = x_bf.astype(jnp.float32)

    # ---- fused x_proj (dt part) + dt_proj; dt_proj kept in f32 ----
    dt_low = jnp.dot(x_bf, wxdt_ref[...], preferred_element_type=jnp.float32)
    dts = jnp.dot(dt_low, wdt_ref[...], preferred_element_type=jnp.float32)
    dtb = dts + bias_ref[...]
    # numerically stable softplus, hoisted out of the serial loop
    delta = jnp.maximum(dtb, 0.0) + jnp.log(1.0 + jnp.exp(-jnp.abs(dtb)))
    delta_ref[...] = delta
    du_ref[...] = delta * u

    # ---- fused x_proj (B/C part) in "NT" form: d_state lands on sublanes ----
    bct = lax.dot_general(wbc_ref[...], x_bf,
                          dimension_numbers=(((1,), (1,)), ((), ())),
                          preferred_element_type=jnp.float32)      # (2N, TL)
    for cc in range(n_chunks):                                      # static
        bct_ref[cc] = bct[:, cc * chunk:(cc + 1) * chunk]

    # skip-path contribution, dense store; scan part is added per chunk below
    y_ref[...] = dvec_ref[...] * u

    A = a_ref[...]                                       # (N, D) f32
    h0 = h_ref[...]

    def chunk_body(c, h):
        cc_idx = (n_chunks - 1 - c) if reverse else c
        base = pl.multiple_of(cc_idx * chunk, chunk)
        d_slab = delta_ref[pl.ds(base, chunk), :]        # (chunk, D)
        du_slab = du_ref[pl.ds(base, chunk), :]          # (chunk, D)
        bc_slab = bct_ref[cc_idx]                        # (2N, chunk)
        steps = range(chunk - 1, -1, -1) if reverse else range(chunk)
        rows = [None] * chunk
        for s in steps:                                  # static unroll
            d_row = d_slab[s:s + 1, :]                   # (1, D)
            du_row = du_slab[s:s + 1, :]                 # (1, D)
            b_col = bc_slab[0:n_state, s:s + 1]          # (N, 1)
            c_col = bc_slab[n_state:2 * n_state, s:s + 1]
            h = jnp.exp(d_row * A) * h + du_row * b_col  # (N, D)
            rows[s] = jnp.sum(h * c_col, axis=0, keepdims=True)
        y_slab = jnp.concatenate(rows, axis=0)           # (chunk, D) slab store
        y_ref[pl.ds(base, chunk), :] = y_ref[pl.ds(base, chunk), :] + y_slab
        return h

    h_final = lax.fori_loop(0, n_chunks, chunk_body, h0)
    h_ref[...] = h_final


def pallas_scan_direction(xs, wxdt, wbc, wdt, A, Dvec, bias, *, reverse):
    B, L, D = xs.shape
    N = A.shape[0]
    R = wxdt.shape[1]
    TL = _largest_divisor(L, (256, 128, 64, 32, 16, 8))
    chunk = _largest_divisor(TL, (8, 4, 2, 1))
    NT = L // TL
    n_chunks = TL // chunk

    if reverse:
        xmap = lambda b, i: (b, NT - 1 - i, 0)
    else:
        xmap = lambda b, i: (b, i, 0)
    wmap = lambda b, i: (0, 0)

    kern = partial(_scan_dir_kernel, n_state=N, tl=TL, chunk=chunk, reverse=reverse)
    return pl.pallas_call(
        kern,
        out_shape=jax.ShapeDtypeStruct((B, L, D), jnp.float32),
        grid=(B, NT),
        in_specs=[
            pl.BlockSpec((None, TL, D), xmap),
            pl.BlockSpec((D, R), wmap),
            pl.BlockSpec((2 * N, D), wmap),
            pl.BlockSpec((R, D), wmap),
            pl.BlockSpec((N, D), wmap),
            pl.BlockSpec((1, D), wmap),
            pl.BlockSpec((1, D), wmap),
        ],
        out_specs=pl.BlockSpec((None, TL, D), xmap),
        scratch_shapes=[
            pltpu.VMEM((N, D), jnp.float32),              # h (persists over L)
            pltpu.VMEM((TL, D), jnp.float32),             # delta
            pltpu.VMEM((TL, D), jnp.float32),             # delta * u
            pltpu.VMEM((n_chunks, 2 * N, chunk), jnp.float32),  # B/C, time-minor
        ],
        compiler_params=pltpu.CompilerParams(
            dimension_semantics=("parallel", "arbitrary"),
            vmem_limit_bytes=VMEM_LIMIT),
    )(xs, wxdt, wbc, wdt, A, Dvec, bias)


# -----------------------------------------------------------------------------
# Fused LayerNorm(out_norm) + SiLU(z) gate + out_proj, row-tiled, bf16 MXU,
# lane-dense (128-padded) output.
# -----------------------------------------------------------------------------
def _ln_gate_proj_kernel(y_ref, z_ref, g_ref, b_ref, w_ref, o_ref, *, eps):
    y = y_ref[...]
    mu = jnp.mean(y, axis=-1, keepdims=True)
    var = jnp.mean(jnp.square(y - mu), axis=-1, keepdims=True)
    yn = (y - mu) * lax.rsqrt(var + eps)
    yn = yn * g_ref[...] + b_ref[...]
    z = z_ref[...]
    gated = yn * (z * jax.nn.sigmoid(z))
    o_ref[...] = jnp.dot(gated.astype(jnp.bfloat16), w_ref[...],
                         preferred_element_type=jnp.float32)


def pallas_ln_gate_proj(y, z, gamma, beta, w_out_p, d_model, eps=1e-5):
    m, d_inner = y.shape
    dmp = w_out_p.shape[1]
    mp = _round_up(m, 8)
    tm = _largest_divisor(mp, (512, 256, 128, 64, 32, 16, 8))
    y_p = jnp.pad(y, ((0, mp - m), (0, 0)))
    z_p = jnp.pad(z, ((0, mp - m), (0, 0)))
    kern = partial(_ln_gate_proj_kernel, eps=eps)
    out = pl.pallas_call(
        kern,
        out_shape=jax.ShapeDtypeStruct((mp, dmp), jnp.float32),
        grid=(mp // tm,),
        in_specs=[
            pl.BlockSpec((tm, d_inner), lambda i: (i, 0)),
            pl.BlockSpec((tm, d_inner), lambda i: (i, 0)),
            pl.BlockSpec((1, d_inner), lambda i: (0, 0)),
            pl.BlockSpec((1, d_inner), lambda i: (0, 0)),
            pl.BlockSpec((d_inner, dmp), lambda i: (0, 0)),
        ],
        out_specs=pl.BlockSpec((tm, dmp), lambda i: (i, 0)),
        compiler_params=pltpu.CompilerParams(
            dimension_semantics=("parallel",),
            vmem_limit_bytes=VMEM_LIMIT),
    )(y_p, z_p, gamma, beta, w_out_p)
    return out[:m, :d_model]


# -----------------------------------------------------------------------------
# Parameter init (mirrors the PyTorch module's shapes) + one-time layout prep.
# -----------------------------------------------------------------------------
def init_ss2d_params(key, d_model, d_state=16, d_conv=3, expand=2.0,
                     dt_scale=1.0, dt_min=0.001, dt_max=0.1, dt_init_floor=1e-4):
    d_inner = int(expand * d_model)
    dt_rank = math.ceil(d_model / 16)
    K = 4
    ks = jax.random.split(key, 8)

    b_in = 1.0 / math.sqrt(d_model)
    w_in = jax.random.uniform(ks[0], (2 * d_inner, d_model), jnp.float32, -b_in, b_in)

    b_cv = 1.0 / math.sqrt(d_conv * d_conv)
    w_conv = jax.random.uniform(ks[1], (d_conv, d_conv, d_inner), jnp.float32, -b_cv, b_cv)
    b_conv = jax.random.uniform(ks[2], (d_inner,), jnp.float32, -b_cv, b_cv)

    b_xp = 1.0 / math.sqrt(d_inner)
    w_xproj = jax.random.uniform(ks[3], (K, dt_rank + 2 * d_state, d_inner),
                                 jnp.float32, -b_xp, b_xp)

    dt_init_std = dt_rank ** -0.5 * dt_scale
    w_dt = jax.random.uniform(ks[4], (K, d_inner, dt_rank), jnp.float32,
                              -dt_init_std, dt_init_std)
    u = jax.random.uniform(ks[5], (K, d_inner), jnp.float32)
    dt = jnp.exp(u * (math.log(dt_max) - math.log(dt_min)) + math.log(dt_min))
    dt = jnp.maximum(dt, dt_init_floor)
    b_dt = dt + jnp.log(-jnp.expm1(-dt))                       # (K, d_inner)

    A_logs = jnp.log(jnp.tile(jnp.arange(1, d_state + 1, dtype=jnp.float32)[None, :],
                              (K * d_inner, 1)))               # (K*d_inner, N)
    Ds = jnp.ones((K * d_inner,), jnp.float32)
    gamma = jnp.ones((d_inner,), jnp.float32)
    beta = jnp.zeros((d_inner,), jnp.float32)

    b_op = 1.0 / math.sqrt(d_inner)
    w_out = jax.random.uniform(ks[6], (d_model, d_inner), jnp.float32, -b_op, b_op)

    return dict(w_in=w_in, w_conv=w_conv, b_conv=b_conv, w_xproj=w_xproj,
                w_dt=w_dt, b_dt=b_dt, A_logs=A_logs, Ds=Ds, gamma=gamma, beta=beta,
                w_out=w_out, d_model=d_model, d_inner=d_inner, d_state=d_state,
                dt_rank=dt_rank, d_conv=d_conv)


def prepare_ss2d_params(p):
    """One-time transposes / casts / padding hoisted out of the forward pass."""
    K = 4
    D, N, R = p["d_inner"], p["d_state"], p["dt_rank"]
    d_model = p["d_model"]
    dmp = _round_up(d_model, 128)

    w_in_x = jnp.transpose(p["w_in"][:D, :]).astype(jnp.bfloat16)              # (dm, D)
    w_in_z = jnp.transpose(p["w_in"][D:, :]).astype(jnp.bfloat16)              # (dm, D)
    w_xdt = jnp.transpose(p["w_xproj"][:, :R, :], (0, 2, 1)).astype(jnp.bfloat16)  # (K,D,R)
    w_bc = p["w_xproj"][:, R:, :].astype(jnp.bfloat16)                         # (K,2N,D)
    w_dt = jnp.transpose(p["w_dt"], (0, 2, 1))                                 # (K,R,D) f32
    A = jnp.transpose((-jnp.exp(p["A_logs"])).reshape(K, D, N), (0, 2, 1))     # (K,N,D)
    Dvec = p["Ds"].reshape(K, 1, D)
    dt_bias = p["b_dt"].reshape(K, 1, D)
    w_out_p = jnp.pad(jnp.transpose(p["w_out"]),
                      ((0, 0), (0, dmp - d_model))).astype(jnp.bfloat16)       # (D, dmp)

    return dict(w_in_x=w_in_x, w_in_z=w_in_z, w_xdt=w_xdt, w_bc=w_bc, w_dt=w_dt,
                A=A, Dvec=Dvec, dt_bias=dt_bias,
                w_conv=p["w_conv"], b_conv=p["b_conv"],
                gamma=p["gamma"].reshape(1, D), beta=p["beta"].reshape(1, D),
                w_out_p=w_out_p,
                d_model=d_model, d_inner=D, d_state=N, dt_rank=R, d_conv=p["d_conv"])


# -----------------------------------------------------------------------------
# Full SS2D forward (glue in plain JAX, hot paths in Pallas)
# -----------------------------------------------------------------------------
def ss2d_forward(x, kp):
    B, H, W, d_model = x.shape
    D, KS = kp["d_inner"], kp["d_conv"]
    L = H * W
    M = B * L

    # ---- in_proj: x half (bf16) + z half (f32), no XLA chunk/slice ----
    x_bf, z = pallas_in_proj(x.reshape(M, d_model), kp["w_in_x"], kp["w_in_z"])
    x_in = x_bf.reshape(B, H, W, D)

    # ---- depthwise conv + SiLU (row-tiled, bf16 activations) ----
    pad = (KS - 1) // 2
    x_pad = jnp.pad(x_in, ((0, 0), (pad, pad), (pad, pad), (0, 0)))
    xc = pallas_dwconv_silu(x_pad, kp["w_conv"], kp["b_conv"])     # (B,H,W,D) bf16

    # ---- two materialized scan orders; flipped directions via index maps ----
    d0 = xc.reshape(B, L, D)                                       # hw order
    d1 = jnp.transpose(xc, (0, 2, 1, 3)).reshape(B, L, D)          # wh order
    # TODO(synk): d1 (H<->W transpose) is still an XLA transpose in HBM.

    ys = []
    for k in range(4):
        src = d0 if (k % 2 == 0) else d1
        ys.append(pallas_scan_direction(
            src, kp["w_xdt"][k], kp["w_bc"][k], kp["w_dt"][k],
            kp["A"][k], kp["Dvec"][k], kp["dt_bias"][k], reverse=(k >= 2)))

    def wh_to_hw(t):                     # (B, L, D) with l = w*H + h  ->  hw order
        return jnp.transpose(t.reshape(B, W, H, D), (0, 2, 1, 3)).reshape(B, L, D)

    y = ys[0] + ys[2] + wh_to_hw(ys[1] + ys[3])                    # (B, L, D) f32

    # ---- fused out_norm + SiLU(z) gate + out_proj ----
    out = pallas_ln_gate_proj(y.reshape(M, D), z, kp["gamma"], kp["beta"],
                              kp["w_out_p"], d_model)
    return out.reshape(B, H, W, d_model)


# -----------------------------------------------------------------------------
if __name__ == "__main__":
    key = jax.random.PRNGKey(0)
    k_x, k_p = jax.random.split(key)

    # Small shapes consistent with the module: input is (B, H, W, C=d_model).
    B, H, W, d_model = 2, 8, 8, 32
    x = jax.random.normal(k_x, (B, H, W, d_model), jnp.float32)

    raw_params = init_ss2d_params(k_p, d_model=d_model, d_state=16, d_conv=3,
                                  expand=2.0)
    params = prepare_ss2d_params(raw_params)     # one-time layout prep

    fwd = jax.jit(lambda inp: ss2d_forward(inp, params))
    out = fwd(x)
    out = jax.block_until_ready(out)

    assert out.shape == (B, H, W, d_model), out.shape
    assert bool(jnp.all(jnp.isfinite(out)))
    print("KERNEL_OK")
</pallas_src>

<mosaic_0001>
module attributes {stable_mosaic.version = 11 : i64} {
  func.func @_in_proj_kernel(%arg0: i32, %arg1: memref<128x32xf32, #tpu.memory_space<vmem>>, %arg2: memref<32x64xbf16, #tpu.memory_space<vmem>>, %arg3: memref<32x64xbf16, #tpu.memory_space<vmem>>, %arg4: memref<128x64xbf16, #tpu.memory_space<vmem>>, %arg5: memref<128x64xf32, #tpu.memory_space<vmem>>) attributes {dimension_semantics = [#tpu.dimension_semantics<parallel>], iteration_bounds = array<i64: 1>, scalar_prefetch = 0 : i64, scratch_operands = 0 : i64, tpu.core_type = #tpu.core_type<tc>, window_params = [{transform_indices = @transform_0, window_bounds = array<i64: 128, 32>}, {pipeline_mode = #tpu.pipeline_mode<synchronous>, transform_indices = @transform_1, window_bounds = array<i64: 32, 64>}, {pipeline_mode = #tpu.pipeline_mode<synchronous>, transform_indices = @transform_2, window_bounds = array<i64: 32, 64>}, {transform_indices = @transform_3, window_bounds = array<i64: 128, 64>}, {transform_indices = @transform_4, window_bounds = array<i64: 128, 64>}]} {
    %c0 = arith.constant 0 : index
    %c0_0 = arith.constant 0 : index
    %0 = vector.load %arg1[%c0, %c0_0] : memref<128x32xf32, #tpu.memory_space<vmem>>, vector<128x32xf32>
    %1 = arith.truncf %0 : vector<128x32xf32> to vector<128x32xbf16>
    %c0_1 = arith.constant 0 : index
    %c0_2 = arith.constant 0 : index
    %2 = vector.load %arg2[%c0_1, %c0_2] : memref<32x64xbf16, #tpu.memory_space<vmem>>, vector<32x64xbf16>
    %cst = arith.constant dense<0.000000e+00> : vector<128x64xf32>
    %3 = tpu.matmul %1, %2, %cst {dimension_numbers = #tpu.dot_dimension_numbers<[1], [0], [0], [1], [0, 0, 1, 1], [], []>} : vector<128x32xbf16>, vector<32x64xbf16>, vector<128x64xf32> -> vector<128x64xf32>
    %4 = arith.truncf %3 : vector<128x64xf32> to vector<128x64xbf16>
    %c0_3 = arith.constant 0 : index
    %c0_4 = arith.constant 0 : index
    %5 = vector.load %arg4[%c0_3, %c0_4] : memref<128x64xbf16, #tpu.memory_space<vmem>>, vector<128x64xbf16>
    tpu.vector_store %arg4[%c0_3, %c0_4], %4 {strides = array<i32>} : memref<128x64xbf16, #tpu.memory_space<vmem>>, vector<128x64xbf16>,
    %c0_5 = arith.constant 0 : index
    %c0_6 = arith.constant 0 : index
    %6 = vector.load %arg3[%c0_5, %c0_6] : memref<32x64xbf16, #tpu.memory_space<vmem>>, vector<32x64xbf16>
    %cst_7 = arith.constant dense<0.000000e+00> : vector<128x64xf32>
    %7 = tpu.matmul %1, %6, %cst_7 {dimension_numbers = #tpu.dot_dimension_numbers<[1], [0], [0], [1], [0, 0, 1, 1], [], []>} : vector<128x32xbf16>, vector<32x64xbf16>, vector<128x64xf32> -> vector<128x64xf32>
    %c0_8 = arith.constant 0 : index
    %c0_9 = arith.constant 0 : index
    %8 = vector.load %arg5[%c0_8, %c0_9] : memref<128x64xf32, #tpu.memory_space<vmem>>, vector<128x64xf32>
    tpu.vector_store %arg5[%c0_8, %c0_9], %7 {strides = array<i32>} : memref<128x64xf32, #tpu.memory_space<vmem>>, vector<128x64xf32>,
    return
  }
  func.func @transform_0(%arg0: i32) -> (i32, i32) {
    %c0_i32 = arith.constant 0 : i32
    %c0_i32_0 = arith.constant 0 : i32
    return %arg0, %c0_i32 : i32, i32
  }
  func.func @transform_1(%arg0: i32) -> (i32, i32) {
    %c0_i32 = arith.constant 0 : i32
    %c0_i32_0 = arith.constant 0 : i32
    %c0_i32_1 = arith.constant 0 : i32
    return %c0_i32, %c0_i32_0 : i32, i32
  }
  func.func @transform_2(%arg0: i32) -> (i32, i32) {
    %c0_i32 = arith.constant 0 : i32
    %c0_i32_0 = arith.constant 0 : i32
    %c0_i32_1 = arith.constant 0 : i32
    return %c0_i32, %c0_i32_0 : i32, i32
  }
  func.func @transform_3(%arg0: i32) -> (i32, i32) {
    %c0_i32 = arith.constant 0 : i32
    %c0_i32_0 = arith.constant 0 : i32
    return %arg0, %c0_i32 : i32, i32
  }
  func.func @transform_4(%arg0: i32) -> (i32, i32) {
    %c0_i32 = arith.constant 0 : i32
    %c0_i32_0 = arith.constant 0 : i32
    return %arg0, %c0_i32 : i32, i32
  }
}

module attributes {stable_mosaic.version = 11 : i64} {
  func.func @_dwconv_silu_kernel(%arg0: i32, %arg1: i32, %arg2: memref<1x8x10x64xbf16, #tpu.memory_space<vmem>>, %arg3: memref<1x1x10x64xbf16, #tpu.memory_space<vmem>>, %arg4: memref<1x1x10x64xbf16, #tpu.memory_space<vmem>>, %arg5: memref<3x3x64xf32, #tpu.memory_space<vmem>>, %arg6: memref<1x1x64xf32, #tpu.memory_space<vmem>>, %arg7: memref<1x8x8x64xbf16, #tpu.memory_space<vmem>>) attributes {dimension_semantics = [#tpu.dimension_semantics<parallel>, #tpu.dimension_semantics<parallel>], iteration_bounds = array<i64: 2, 1>, scalar_prefetch = 0 : i64, scratch_operands = 0 : i64, tpu.core_type = #tpu.core_type<tc>, window_params = [{transform_indices = @transform_0, window_bounds = array<i64: 1, 8, 10, 64>}, {transform_indices = @transform_1, window_bounds = array<i64: 1, 1, 10, 64>}, {transform_indices = @transform_2, window_bounds = array<i64: 1, 1, 10, 64>}, {pipeline_mode = #tpu.pipeline_mode<synchronous>, transform_indices = @transform_3, window_bounds = array<i64: 3, 3, 64>}, {pipeline_mode = #tpu.pipeline_mode<synchronous>, transform_indices = @transform_4, window_bounds = array<i64: 1, 1, 64>}, {transform_indices = @transform_5, window_bounds = array<i64: 1, 8, 8, 64>}]} {
    %c0 = arith.constant 0 : index
    %c0_0 = arith.constant 0 : index
    %c0_1 = arith.constant 0 : index
    %c0_2 = arith.constant 0 : index
    %0 = vector.load %arg2[%c0, %c0_0, %c0_1, %c0_2] : memref<1x8x10x64xbf16, #tpu.memory_space<vmem>>, vector<1x8x10x64xbf16>
    %1 = vector.shape_cast %0 : vector<1x8x10x64xbf16> to vector<8x10x64xbf16>
    %c0_3 = arith.constant 0 : index
    %c0_4 = arith.constant 0 : index
    %c0_5 = arith.constant 0 : index
    %c0_6 = arith.constant 0 : index
    %2 = vector.load %arg3[%c0_3, %c0_4, %c0_5, %c0_6] : memref<1x1x10x64xbf16, #tpu.memory_space<vmem>>, vector<1x1x10x64xbf16>
    %3 = vector.shape_cast %2 : vector<1x1x10x64xbf16> to vector<1x10x64xbf16>
    %c0_7 = arith.constant 0 : index
    %c0_8 = arith.constant 0 : index
    %c0_9 = arith.constant 0 : index
    %c0_10 = arith.constant 0 : index
    %4 = vector.load %arg4[%c0_7, %c0_8, %c0_9, %c0_10] : memref<1x1x10x64xbf16, #tpu.memory_space<vmem>>, vector<1x1x10x64xbf16>
    %5 = vector.shape_cast %4 : vector<1x1x10x64xbf16> to vector<1x10x64xbf16>
    %6 = tpu.concatenate %1, %3, %5 in 0 : vector<8x10x64xbf16>, vector<1x10x64xbf16>, vector<1x10x64xbf16> -> vector<10x10x64xbf16>
    %7 = arith.extf %6 : vector<10x10x64xbf16> to vector<10x10x64xf32>
    %cst = arith.constant 0.000000e+00 : f32
    %8 = vector.broadcast %cst : f32 to vector<8x8x64xf32>
    %9 = vector.extract_strided_slice %7 {offsets = [0, 0, 0], sizes = [8, 8, 64], strides = [1, 1, 1]} : vector<10x10x64xf32> to vector<8x8x64xf32>
    %c0_11 = arith.constant 0 : index
    %c0_12 = arith.constant 0 : index
    %c0_13 = arith.constant 0 : index
    %10 = vector.load %arg5[%c0_11, %c0_12, %c0_13] : memref<3x3x64xf32, #tpu.memory_space<vmem>>, vector<1x1x64xf32>
    %11 = vector.broadcast %10 : vector<1x1x64xf32> to vector<8x8x64xf32>
    %12 = arith.mulf %9, %11 : vector<8x8x64xf32>
    %13 = arith.addf %8, %12 : vector<8x8x64xf32>
    %14 = vector.extract_strided_slice %7 {offsets = [0, 1, 0], sizes = [8, 8, 64], strides = [1, 1, 1]} : vector<10x10x64xf32> to vector<8x8x64xf32>
    %c0_14 = arith.constant 0 : index
    %c1 = arith.constant 1 : index
    %c0_15 = arith.constant 0 : index
    %15 = vector.load %arg5[%c0_14, %c1, %c0_15] : memref<3x3x64xf32, #tpu.memory_space<vmem>>, vector<1x1x64xf32>
    %16 = vector.broadcast %15 : vector<1x1x64xf32> to vector<8x8x64xf32>
    %17 = arith.mulf %14, %16 : vector<8x8x64xf32>
    %18 = arith.addf %13, %17 : vector<8x8x64xf32>
    %19 = vector.extract_strided_slice %7 {offsets = [0, 2, 0], sizes = [8, 8, 64], strides = [1, 1, 1]} : vector<10x10x64xf32> to vector<8x8x64xf32>
    %c0_16 = arith.constant 0 : index
    %c2 = arith.constant 2 : index
    %c0_17 = arith.constant 0 : index
    %20 = vector.load %arg5[%c0_16, %c2, %c0_17] : memref<3x3x64xf32, #tpu.memory_space<vmem>>, vector<1x1x64xf32>
    %21 = vector.broadcast %20 : vector<1x1x64xf32> to vector<8x8x64xf32>
    %22 = arith.mulf %19, %21 : vector<8x8x64xf32>
    %23 = arith.addf %18, %22 : vector<8x8x64xf32>
    %24 = vector.extract_strided_slice %7 {offsets = [1, 0, 0], sizes = [8, 8, 64], strides = [1, 1, 1]} : vector<10x10x64xf32> to vector<8x8x64xf32>
    %c1_18 = arith.constant 1 : index
    %c0_19 = arith.constant 0 : index
    %c0_20 = arith.constant 0 : index
    %25 = vector.load %arg5[%c1_18, %c0_19, %c0_20] : memref<3x3x64xf32, #tpu.memory_space<vmem>>, vector<1x1x64xf32>
    %26 = vector.broadcast %25 : vector<1x1x64xf32> to vector<8x8x64xf32>
    %27 = arith.mulf %24, %26 : vector<8x8x64xf32>
    %28 = arith.addf %23, %27 : vector<8x8x64xf32>
    %29 = vector.extract_strided_slice %7 {offsets = [1, 1, 0], sizes = [8, 8, 64], strides = [1, 1, 1]} : vector<10x10x64xf32> to vector<8x8x64xf32>
    %c1_21 = arith.constant 1 : index
    %c1_22 = arith.constant 1 : index
    %c0_23 = arith.constant 0 : index
    %30 = vector.load %arg5[%c1_21, %c1_22, %c0_23] : memref<3x3x64xf32, #tpu.memory_space<vmem>>, vector<1x1x64xf32>
    %31 = vector.broadcast %30 : vector<1x1x64xf32> to vector<8x8x64xf32>
    %32 = arith.mulf %29, %31 : vector<8x8x64xf32>
    %33 = arith.addf %28, %32 : vector<8x8x64xf32>
    %34 = vector.extract_strided_slice %7 {offsets = [1, 2, 0], sizes = [8, 8, 64], strides = [1, 1, 1]} : vector<10x10x64xf32> to vector<8x8x64xf32>
    %c1_24 = arith.constant 1 : index
    %c2_25 = arith.constant 2 : index
    %c0_26 = arith.constant 0 : index
    %35 = vector.load %arg5[%c1_24, %c2_25, %c0_26] : memref<3x3x64xf32, #tpu.memory_space<vmem>>, vector<1x1x64xf32>
    %36 = vector.broadcast %35 : vector<1x1x64xf32> to vector<8x8x64xf32>
    %37 = arith.mulf %34, %36 : vector<8x8x64xf32>
    %38 = arith.addf %33, %37 : vector<8x8x64xf32>
    %39 = vector.extract_strided_slice %7 {offsets = [2, 0, 0], sizes = [8, 8, 64], strides = [1, 1, 1]} : vector<10x10x64xf32> to vector<8x8x64xf32>
    %c2_27 = arith.constant 2 : index
    %c0_28 = arith.constant 0 : index
    %c0_29 = arith.constant 0 : index
    %40 = vector.load %arg5[%c2_27, %c0_28, %c0_29] : memref<3x3x64xf32, #tpu.memory_space<vmem>>, vector<1x1x64xf32>
    %41 = vector.broadcast %40 : vector<1x1x64xf32> to vector<8x8x64xf32>
    %42 = arith.mulf %39, %41 : vector<8x8x64xf32>
    %43 = arith.addf %38, %42 : vector<8x8x64xf32>
    %44 = vector.extract_strided_slice %7 {offsets = [2, 1, 0], sizes = [8, 8, 64], strides = [1, 1, 1]} : vector<10x10x64xf32> to vector<8x8x64xf32>
    %c2_30 = arith.constant 2 : index
    %c1_31 = arith.constant 1 : index
    %c0_32 = arith.constant 0 : index
    %45 = vector.load %arg5[%c2_30, %c1_31, %c0_32] : memref<3x3x64xf32, #tpu.memory_space<vmem>>, vector<1x1x64xf32>
    %46 = vector.broadcast %45 : vector<1x1x64xf32> to vector<8x8x64xf32>
    %47 = arith.mulf %44, %46 : vector<8x8x64xf32>
    %48 = arith.addf %43, %47 : vector<8x8x64xf32>
    %49 = vector.extract_strided_slice %7 {offsets = [2, 2, 0], sizes = [8, 8, 64], strides = [1, 1, 1]} : vector<10x10x64xf32> to vector<8x8x64xf32>
    %c2_33 = arith.constant 2 : index
    %c2_34 = arith.constant 2 : index
    %c0_35 = arith.constant 0 : index
    %50 = vector.load %arg5[%c2_33, %c2_34, %c0_35] : memref<3x3x64xf32, #tpu.memory_space<vmem>>, vector<1x1x64xf32>
    %51 = vector.broadcast %50 : vector<1x1x64xf32> to vector<8x8x64xf32>
    %52 = arith.mulf %49, %51 : vector<8x8x64xf32>
    %53 = arith.addf %48, %52 : vector<8x8x64xf32>
    %c0_36 = arith.constant 0 : index
    %c0_37 = arith.constant 0 : index
    %c0_38 = arith.constant 0 : index
    %54 = vector.load %arg6[%c0_36, %c0_37, %c0_38] : memref<1x1x64xf32, #tpu.memory_space<vmem>>, vector<1x1x64xf32>
    %55 = vector.broadcast %54 : vector<1x1x64xf32> to vector<8x8x64xf32>
    %56 = arith.addf %53, %55 : vector<8x8x64xf32>
    %57 = arith.negf %56 : vector<8x8x64xf32>
    %58 = math.exp %57 : vector<8x8x64xf32>
    %cst_39 = arith.constant 1.000000e+00 : f32
    %59 = vector.broadcast %cst_39 : f32 to vector<8x8x64xf32>
    %60 = arith.addf %59, %58 : vector<8x8x64xf32>
    %61 = arith.divf %59, %60 : vector<8x8x64xf32>
    %62 = arith.mulf %56, %61 : vector<8x8x64xf32>
    %63 = arith.truncf %62 : vector<8x8x64xf32> to vector<8x8x64xbf16>
    %c0_40 = arith.constant 0 : index
    %c0_41 = arith.constant 0 : index
    %c0_42 = arith.constant 0 : index
    %c0_43 = arith.constant 0 : index
    %64 = vector.load %arg7[%c0_40, %c0_41, %c0_42, %c0_43] : memref<1x8x8x64xbf16, #tpu.memory_space<vmem>>, vector<1x8x8x64xbf16>
    %65 = vector.shape_cast %64 : vector<1x8x8x64xbf16> to vector<8x8x64xbf16>
    %66 = vector.shape_cast %63 : vector<8x8x64xbf16> to vector<1x8x8x64xbf16>
    tpu.vector_store %arg7[%c0_40, %c0_41, %c0_42, %c0_43], %66 {strides = array<i32>} : memref<1x8x8x64xbf16, #tpu.memory_space<vmem>>, vector<1x8x8x64xbf16>,
    return
  }
  func.func @transform_0(%arg0: i32, %arg1: i32) -> (i32, i32, i32, i32) {
    %c0_i32 = arith.constant 0 : i32
    %c0_i32_0 = arith.constant 0 : i32
    %c0_i32_1 = arith.constant 0 : i32
    return %arg0, %arg1, %c0_i32, %c0_i32_0 : i32, i32, i32, i32
  }
  func.func @transform_1(%arg0: i32, %arg1: i32) -> (i32, i32, i32, i32) {
    %c8_i32 = arith.constant 8 : i32
    %0 = arith.muli %arg1, %c8_i32 : i32
    %c8_i32_0 = arith.constant 8 : i32
    %1 = arith.addi %0, %c8_i32_0 : i32
    %c0_i32 = arith.constant 0 : i32
    %c0_i32_1 = arith.constant 0 : i32
    %c0_i32_2 = arith.constant 0 : i32
    return %arg0, %1, %c0_i32, %c0_i32_1 : i32, i32, i32, i32
  }
  func.func @transform_2(%arg0: i32, %arg1: i32) -> (i32, i32, i32, i32) {
    %c8_i32 = arith.constant 8 : i32
    %0 = arith.muli %arg1, %c8_i32 : i32
    %c8_i32_0 = arith.constant 8 : i32
    %1 = arith.addi %0, %c8_i32_0 : i32
    %c1_i32 = arith.constant 1 : i32
    %2 = arith.addi %1, %c1_i32 : i32
    %c0_i32 = arith.constant 0 : i32
    %c0_i32_1 = arith.constant 0 : i32
    %c0_i32_2 = arith.constant 0 : i32
    return %arg0, %2, %c0_i32, %c0_i32_1 : i32, i32, i32, i32
  }
  func.func @transform_3(%arg0: i32, %arg1: i32) -> (i32, i32, i32) {
    %c0_i32 = arith.constant 0 : i32
    %c0_i32_0 = arith.constant 0 : i32
    %c0_i32_1 = arith.constant 0 : i32
    %c0_i32_2 = arith.constant 0 : i32
    return %c0_i32, %c0_i32_0, %c0_i32_1 : i32, i32, i32
  }
  func.func @transform_4(%arg0: i32, %arg1: i32) -> (i32, i32, i32) {
    %c0_i32 = arith.constant 0 : i32
    %c0_i32_0 = arith.constant 0 : i32
    %c0_i32_1 = arith.constant 0 : i32
    %c0_i32_2 = arith.constant 0 : i32
    return %c0_i32, %c0_i32_0, %c0_i32_1 : i32, i32, i32
  }
  func.func @transform_5(%arg0: i32, %arg1: i32) -> (i32, i32, i32, i32) {
    %c0_i32 = arith.constant 0 : i32
    %c0_i32_0 = arith.constant 0 : i32
    %c0_i32_1 = arith.constant 0 : i32
    return %arg0, %arg1, %c0_i32, %c0_i32_0 : i32, i32, i32, i32
  }
}

module attributes {stable_mosaic.version = 11 : i64} {
  func.func @_scan_dir_kernel(%arg0: i32, %arg1: i32, %arg2: memref<1x64x64xbf16, #tpu.memory_space<vmem>>, %arg3: memref<64x2xbf16, #tpu.memory_space<vmem>>, %arg4: memref<32x64xbf16, #tpu.memory_space<vmem>>, %arg5: memref<2x64xf32, #tpu.memory_space<vmem>>, %arg6: memref<16x64xf32, #tpu.memory_space<vmem>>, %arg7: memref<1x64xf32, #tpu.memory_space<vmem>>, %arg8: memref<1x64xf32, #tpu.memory_space<vmem>>, %arg9: memref<1x64x64xf32, #tpu.memory_space<vmem>>, %arg10: memref<16x64xf32, #tpu.memory_space<vmem>>, %arg11: memref<64x64xf32, #tpu.memory_space<vmem>>, %arg12: memref<64x64xf32, #tpu.memory_space<vmem>>, %arg13: memref<8x32x8xf32, #tpu.memory_space<vmem>>) attributes {dimension_semantics = [#tpu.dimension_semantics<parallel>, #tpu.dimension_semantics<arbitrary>], iteration_bounds = array<i64: 2, 1>, scalar_prefetch = 0 : i64, scratch_operands = 4 : i64, tpu.core_type = #tpu.core_type<tc>, window_params = [{transform_indices = @transform_0, window_bounds = array<i64: 1, 64, 64>}, {pipeline_mode = #tpu.pipeline_mode<synchronous>, transform_indices = @transform_1, window_bounds = array<i64: 64, 2>}, {pipeline_mode = #tpu.pipeline_mode<synchronous>, transform_indices = @transform_2, window_bounds = array<i64: 32, 64>}, {pipeline_mode = #tpu.pipeline_mode<synchronous>, transform_indices = @transform_3, window_bounds = array<i64: 2, 64>}, {pipeline_mode = #tpu.pipeline_mode<synchronous>, transform_indices = @transform_4, window_bounds = array<i64: 16, 64>}, {pipeline_mode = #tpu.pipeline_mode<synchronous>, transform_indices = @transform_5, window_bounds = array<i64: 1, 64>}, {pipeline_mode = #tpu.pipeline_mode<synchronous>, transform_indices = @transform_6, window_bounds = array<i64: 1, 64>}, {transform_indices = @transform_7, window_bounds = array<i64: 1, 64, 64>}]} {
    %c0_i32 = arith.constant 0 : i32
    %0 = arith.cmpi eq, %arg1, %c0_i32 : i32
    %1 = arith.extui %0 : i1 to i32
    %c0_i32_0 = arith.constant 0 : i32
    %2 = arith.cmpi ne, %1, %c0_i32_0 : i32
    scf.if %2 {
      %cst_50 = arith.constant 0.000000e+00 : f32
      %71 = vector.broadcast %cst_50 : f32 to vector<16x64xf32>
      %c0_51 = arith.constant 0 : index
      %c0_52 = arith.constant 0 : index
      %72 = vector.load %arg10[%c0_51, %c0_52] : memref<16x64xf32, #tpu.memory_space<vmem>>, vector<16x64xf32>
      tpu.vector_store %arg10[%c0_51, %c0_52], %71 {strides = array<i32>} : memref<16x64xf32, #tpu.memory_space<vmem>>, vector<16x64xf32>,
    } else {
    }
    %c0 = arith.constant 0 : index
    %c0_1 = arith.constant 0 : index
    %c0_2 = arith.constant 0 : index
    %3 = vector.load %arg2[%c0, %c0_1, %c0_2] : memref<1x64x64xbf16, #tpu.memory_space<vmem>>, vector<1x64x64xbf16>
    %4 = vector.shape_cast %3 : vector<1x64x64xbf16> to vector<64x64xbf16>
    %5 = arith.extf %4 : vector<64x64xbf16> to vector<64x64xf32>
    %c0_3 = arith.constant 0 : index
    %c0_4 = arith.constant 0 : index
    %6 = vector.load %arg3[%c0_3, %c0_4] : memref<64x2xbf16, #tpu.memory_space<vmem>>, vector<64x2xbf16>
    %cst = arith.constant dense<0.000000e+00> : vector<64x2xf32>
    %7 = tpu.matmul %4, %6, %cst {dimension_numbers = #tpu.dot_dimension_numbers<[1], [0], [0], [1], [0, 0, 1, 1], [], []>} : vector<64x64xbf16>, vector<64x2xbf16>, vector<64x2xf32> -> vector<64x2xf32>
    %c0_5 = arith.constant 0 : index
    %c0_6 = arith.constant 0 : index
    %8 = vector.load %arg5[%c0_5, %c0_6] : memref<2x64xf32, #tpu.memory_space<vmem>>, vector<2x64xf32>
    %cst_7 = arith.constant dense<0.000000e+00> : vector<64x64xf32>
    %9 = tpu.matmul %7, %8, %cst_7 {dimension_numbers = #tpu.dot_dimension_numbers<[1], [0], [0], [1], [0, 0, 1, 1], [], []>} : vector<64x2xf32>, vector<2x64xf32>, vector<64x64xf32> -> vector<64x64xf32>
    %c0_8 = arith.constant 0 : index
    %c0_9 = arith.constant 0 : index
    %10 = vector.load %arg8[%c0_8, %c0_9] : memref<1x64xf32, #tpu.memory_space<vmem>>, vector<1x64xf32>
    %11 = vector.broadcast %10 : vector<1x64xf32> to vector<64x64xf32>
    %12 = arith.addf %9, %11 : vector<64x64xf32>
    %cst_10 = arith.constant 0.000000e+00 : f32
    %13 = vector.broadcast %cst_10 : f32 to vector<64x64xf32>
    %14 = arith.maximumf %12, %13 : vector<64x64xf32>
    %15 = math.absf %12 : vector<64x64xf32>
    %cst_11 = arith.constant 0.000000e+00 : f32
    %16 = vector.broadcast %cst_11 : f32 to vector<64x64xf32>
    %17 = arith.subf %16, %15 : vector<64x64xf32>
    %18 = math.exp %17 : vector<64x64xf32>
    %cst_12 = arith.constant 1.000000e+00 : f32
    %19 = vector.broadcast %cst_12 : f32 to vector<64x64xf32>
    %20 = arith.addf %19, %18 : vector<64x64xf32>
    %21 = math.log %20 : vector<64x64xf32>
    %22 = arith.addf %14, %21 : vector<64x64xf32>
    %c0_13 = arith.constant 0 : index
    %c0_14 = arith.constant 0 : index
    %23 = vector.load %arg11[%c0_13, %c0_14] : memref<64x64xf32, #tpu.memory_space<vmem>>, vector<64x64xf32>
    tpu.vector_store %arg11[%c0_13, %c0_14], %22 {strides = array<i32>} : memref<64x64xf32, #tpu.memory_space<vmem>>, vector<64x64xf32>,
    %24 = arith.mulf %22, %5 : vector<64x64xf32>
    %c0_15 = arith.constant 0 : index
    %c0_16 = arith.constant 0 : index
    %25 = vector.load %arg12[%c0_15, %c0_16] : memref<64x64xf32, #tpu.memory_space<vmem>>, vector<64x64xf32>
    tpu.vector_store %arg12[%c0_15, %c0_16], %24 {strides = array<i32>} : memref<64x64xf32, #tpu.memory_space<vmem>>, vector<64x64xf32>,
    %c0_17 = arith.constant 0 : index
    %c0_18 = arith.constant 0 : index
    %26 = vector.load %arg4[%c0_17, %c0_18] : memref<32x64xbf16, #tpu.memory_space<vmem>>, vector<32x64xbf16>
    %cst_19 = arith.constant dense<0.000000e+00> : vector<32x64xf32>
    %27 = tpu.matmul %26, %4, %cst_19 {dimension_numbers = #tpu.dot_dimension_numbers<[1], [1], [0], [0], [0, 0, 1, 0], [], []>} : vector<32x64xbf16>, vector<64x64xbf16>, vector<32x64xf32> -> vector<32x64xf32>
    %28 = vector.extract_strided_slice %27 {offsets = [0, 0], sizes = [32, 8], strides = [1, 1]} : vector<32x64xf32> to vector<32x8xf32>
    %c0_20 = arith.constant 0 : index
    %c0_21 = arith.constant 0 : index
    %c0_22 = arith.constant 0 : index
    %29 = vector.load %arg13[%c0_20, %c0_21, %c0_22] : memref<8x32x8xf32, #tpu.memory_space<vmem>>, vector<1x32x8xf32>
    %30 = vector.shape_cast %29 : vector<1x32x8xf32> to vector<32x8xf32>
    %31 = vector.shape_cast %28 : vector<32x8xf32> to vector<1x32x8xf32>
    tpu.vector_store %arg13[%c0_20, %c0_21, %c0_22], %31 {strides = array<i32>} : memref<8x32x8xf32, #tpu.memory_space<vmem>>, vector<1x32x8xf32>,
    %32 = vector.extract_strided_slice %27 {offsets = [0, 8], sizes = [32, 8], strides = [1, 1]} : vector<32x64xf32> to vector<32x8xf32>
    %c1 = arith.constant 1 : index
    %c0_23 = arith.constant 0 : index
    %c0_24 = arith.constant 0 : index
    %33 = vector.load %arg13[%c1, %c0_23, %c0_24] : memref<8x32x8xf32, #tpu.memory_space<vmem>>, vector<1x32x8xf32>
    %34 = vector.shape_cast %33 : vector<1x32x8xf32> to vector<32x8xf32>
    %35 = vector.shape_cast %32 : vector<32x8xf32> to vector<1x32x8xf32>
    tpu.vector_store %arg13[%c1, %c0_23, %c0_24], %35 {strides = array<i32>} : memref<8x32x8xf32, #tpu.memory_space<vmem>>, vector<1x32x8xf32>,
    %36 = vector.extract_strided_slice %27 {offsets = [0, 16], sizes = [32, 8], strides = [1, 1]} : vector<32x64xf32> to vector<32x8xf32>
    %c2 = arith.constant 2 : index
    %c0_25 = arith.constant 0 : index
    %c0_26 = arith.constant 0 : index
    %37 = vector.load %arg13[%c2, %c0_25, %c0_26] : memref<8x32x8xf32, #tpu.memory_space<vmem>>, vector<1x32x8xf32>
    %38 = vector.shape_cast %37 : vector<1x32x8xf32> to vector<32x8xf32>
    %39 = vector.shape_cast %36 : vector<32x8xf32> to vector<1x32x8xf32>
    tpu.vector_store %arg13[%c2, %c0_25, %c0_26], %39 {strides = array<i32>} : memref<8x32x8xf32, #tpu.memory_space<vmem>>, vector<1x32x8xf32>,
    %40 = vector.extract_strided_slice %27 {offsets = [0, 24], sizes = [32, 8], strides = [1, 1]} : vector<32x64xf32> to vector<32x8xf32>
    %c3 = arith.constant 3 : index
    %c0_27 = arith.constant 0 : index
    %c0_28 = arith.constant 0 : index
    %41 = vector.load %arg13[%c3, %c0_27, %c0_28] : memref<8x32x8xf32, #tpu.memory_space<vmem>>, vector<1x32x8xf32>
    %42 = vector.shape_cast %41 : vector<1x32x8xf32> to vector<32x8xf32>
    %43 = vector.shape_cast %40 : vector<32x8xf32> to vector<1x32x8xf32>
    tpu.vector_store %arg13[%c3, %c0_27, %c0_28], %43 {strides = array<i32>} : memref<8x32x8xf32, #tpu.memory_space<vmem>>, vector<1x32x8xf32>,
    %44 = vector.extract_strided_slice %27 {offsets = [0, 32], sizes = [32, 8], strides = [1, 1]} : vector<32x64xf32> to vector<32x8xf32>
    %c4 = arith.constant 4 : index
    %c0_29 = arith.constant 0 : index
    %c0_30 = arith.constant 0 : index
    %45 = vector.load %arg13[%c4, %c0_29, %c0_30] : memref<8x32x8xf32, #tpu.memory_space<vmem>>, vector<1x32x8xf32>
    %46 = vector.shape_cast %45 : vector<1x32x8xf32> to vector<32x8xf32>
    %47 = vector.shape_cast %44 : vector<32x8xf32> to vector<1x32x8xf32>
    tpu.vector_store %arg13[%c4, %c0_29, %c0_30], %47 {strides = array<i32>} : memref<8x32x8xf32, #tpu.memory_space<vmem>>, vector<1x32x8xf32>,
    %48 = vector.extract_strided_slice %27 {offsets = [0, 40], sizes = [32, 8], strides = [1, 1]} : vector<32x64xf32> to vector<32x8xf32>
    %c5 = arith.constant 5 : index
    %c0_31 = arith.constant 0 : index
    %c0_32 = arith.constant 0 : index
    %49 = vector.load %arg13[%c5, %c0_31, %c0_32] : memref<8x32x8xf32, #tpu.memory_space<vmem>>, vector<1x32x8xf32>
    %50 = vector.shape_cast %49 : vector<1x32x8xf32> to vector<32x8xf32>
    %51 = vector.shape_cast %48 : vector<32x8xf32> to vector<1x32x8xf32>
    tpu.vector_store %arg13[%c5, %c0_31, %c0_32], %51 {strides = array<i32>} : memref<8x32x8xf32, #tpu.memory_space<vmem>>, vector<1x32x8xf32>,
    %52 = vector.extract_strided_slice %27 {offsets = [0, 48], sizes = [32, 8], strides = [1, 1]} : vector<32x64xf32> to vector<32x8xf32>
    %c6 = arith.constant 6 : index
    %c0_33 = arith.constant 0 : index
    %c0_34 = arith.constant 0 : index
    %53 = vector.load %arg13[%c6, %c0_33, %c0_34] : memref<8x32x8xf32, #tpu.memory_space<vmem>>, vector<1x32x8xf32>
    %54 = vector.shape_cast %53 : vector<1x32x8xf32> to vector<32x8xf32>
    %55 = vector.shape_cast %52 : vector<32x8xf32> to vector<1x32x8xf32>
    tpu.vector_store %arg13[%c6, %c0_33, %c0_34], %55 {strides = array<i32>} : memref<8x32x8xf32, #tpu.memory_space<vmem>>, vector<1x32x8xf32>,
    %56 = vector.extract_strided_slice %27 {offsets = [0, 56], sizes = [32, 8], strides = [1, 1]} : vector<32x64xf32> to vector<32x8xf32>
    %c7 = arith.constant 7 : index
    %c0_35 = arith.constant 0 : index
    %c0_36 = arith.constant 0 : index
    %57 = vector.load %arg13[%c7, %c0_35, %c0_36] : memref<8x32x8xf32, #tpu.memory_space<vmem>>, vector<1x32x8xf32>
    %58 = vector.shape_cast %57 : vector<1x32x8xf32> to vector<32x8xf32>
    %59 = vector.shape_cast %56 : vector<32x8xf32> to vector<1x32x8xf32>
    tpu.vector_store %arg13[%c7, %c0_35, %c0_36], %59 {strides = array<i32>} : memref<8x32x8xf32, #tpu.memory_space<vmem>>, vector<1x32x8xf32>,
    %c0_37 = arith.constant 0 : index
    %c0_38 = arith.constant 0 : index
    %60 = vector.load %arg7[%c0_37, %c0_38] : memref<1x64xf32, #tpu.memory_space<vmem>>, vector<1x64xf32>
    %61 = vector.broadcast %60 : vector<1x64xf32> to vector<64x64xf32>
    %62 = arith.mulf %61, %5 : vector<64x64xf32>
    %c0_39 = arith.constant 0 : index
    %c0_40 = arith.constant 0 : index
    %c0_41 = arith.constant 0 : index
    %63 = vector.load %arg9[%c0_39, %c0_40, %c0_41] : memref<1x64x64xf32, #tpu.memory_space<vmem>>, vector<1x64x64xf32>
    %64 = vector.shape_cast %63 : vector<1x64x64xf32> to vector<64x64xf32>
    %65 = vector.shape_cast %62 : vector<64x64xf32> to vector<1x64x64xf32>
    tpu.vector_store %arg9[%c0_39, %c0_40, %c0_41], %65 {strides = array<i32>} : memref<1x64x64xf32, #tpu.memory_space<vmem>>, vector<1x64x64xf32>,
    %c0_42 = arith.constant 0 : index
    %c0_43 = arith.constant 0 : index
    %66 = vector.load %arg6[%c0_42, %c0_43] : memref<16x64xf32, #tpu.memory_space<vmem>>, vector<16x64xf32>
    %c0_44 = arith.constant 0 : index
    %c0_45 = arith.constant 0 : index
    %67 = vector.load %arg10[%c0_44, %c0_45] : memref<16x64xf32, #tpu.memory_space<vmem>>, vector<16x64xf32>
    %c0_i32_46 = arith.constant 0 : i32
    %c8_i32 = arith.constant 8 : i32
    %68 = arith.addi %c0_i32_46, %c8_i32 : i32
    %c1_i32 = arith.constant 1 : i32
    %69 = scf.for %arg14 = %c0_i32_46 to %68 step %c1_i32 iter_args(%arg15 = %67) -> (vector<16x64xf32>)  : i32 {
      %c8_i32_50 = arith.constant 8 : i32
      %71 = arith.muli %arg14, %c8_i32_50 : i32
      %72 = tpu.assume_multiple %71, 8 : i32
      %73 = arith.index_cast %72 : i32 to index
      %c0_51 = arith.constant 0 : index
      %74 = vector.load %arg11[%73, %c0_51] : memref<64x64xf32, #tpu.memory_space<vmem>>, vector<8x64xf32>
      %75 = arith.index_cast %72 : i32 to index
      %c0_52 = arith.constant 0 : index
      %76 = vector.load %arg12[%75, %c0_52] : memref<64x64xf32, #tpu.memory_space<vmem>>, vector<8x64xf32>
      %77 = arith.index_cast %arg14 : i32 to index
      %c0_53 = arith.constant 0 : index
      %c0_54 = arith.constant 0 : index
      %78 = vector.load %arg13[%77, %c0_53, %c0_54] : memref<8x32x8xf32, #tpu.memory_space<vmem>>, vector<1x32x8xf32>
      %79 = vector.shape_cast %78 : vector<1x32x8xf32> to vector<32x8xf32>
      %80 = vector.extract_strided_slice %74 {offsets = [0, 0], sizes = [1, 64], strides = [1, 1]} : vector<8x64xf32> to vector<1x64xf32>
      %81 = vector.extract_strided_slice %76 {offsets = [0, 0], sizes = [1, 64], strides = [1, 1]} : vector<8x64xf32> to vector<1x64xf32>
      %82 = vector.extract_strided_slice %79 {offsets = [0, 0], sizes = [16, 1], strides = [1, 1]} : vector<32x8xf32> to vector<16x1xf32>
      %83 = vector.extract_strided_slice %79 {offsets = [16, 0], sizes = [16, 1], strides = [1, 1]} : vector<32x8xf32> to vector<16x1xf32>
      %84 = vector.broadcast %80 : vector<1x64xf32> to vector<16x64xf32>
      %85 = arith.mulf %84, %66 : vector<16x64xf32>
      %86 = math.exp %85 : vector<16x64xf32>
      %87 = arith.mulf %86, %arg15 : vector<16x64xf32>
      %88 = vector.broadcast %81 : vector<1x64xf32> to vector<16x64xf32>
      %89 = vector.broadcast %82 : vector<16x1xf32> to vector<16x64xf32>
      %90 = arith.mulf %88, %89 : vector<16x64xf32>
      %91 = arith.addf %87, %90 : vector<16x64xf32>
      %92 = vector.broadcast %83 : vector<16x1xf32> to vector<16x64xf32>
      %93 = arith.mulf %91, %92 : vector<16x64xf32>
      %cst_55 = arith.constant dense<0.000000e+00> : vector<64xf32>
      %94 = vector.multi_reduction <add>, %93, %cst_55 [0] : vector<16x64xf32> to vector<64xf32>
      %95 = vector.shape_cast %94 : vector<64xf32> to vector<1x64xf32>
      %96 = vector.extract_strided_slice %74 {offsets = [1, 0], sizes = [1, 64], strides = [1, 1]} : vector<8x64xf32> to vector<1x64xf32>
      %97 = vector.extract_strided_slice %76 {offsets = [1, 0], sizes = [1, 64], strides = [1, 1]} : vector<8x64xf32> to vector<1x64xf32>
      %98 = vector.extract_strided_slice %79 {offsets = [0, 1], sizes = [16, 1], strides = [1, 1]} : vector<32x8xf32> to vector<16x1xf32>
      %99 = vector.extract_strided_slice %79 {offsets = [16, 1], sizes = [16, 1], strides = [1, 1]} : vector<32x8xf32> to vector<16x1xf32>
      %100 = vector.broadcast %96 : vector<1x64xf32> to vector<16x64xf32>
      %101 = arith.mulf %100, %66 : vector<16x64xf32>
      %102 = math.exp %101 : vector<16x64xf32>
      %103 = arith.mulf %102, %91 : vector<16x64xf32>
      %104 = vector.broadcast %97 : vector<1x64xf32> to vector<16x64xf32>
      %105 = vector.broadcast %98 : vector<16x1xf32> to vector<16x64xf32>
      %106 = arith.mulf %104, %105 : vector<16x64xf32>
      %107 = arith.addf %103, %106 : vector<16x64xf32>
      %108 = vector.broadcast %99 : vector<16x1xf32> to vector<16x64xf32>
      %109 = arith.mulf %107, %108 : vector<16x64xf32>
      %cst_56 = arith.constant dense<0.000000e+00> : vector<64xf32>
      %110 = vector.multi_reduction <add>, %109, %cst_56 [0] : vector<16x64xf32> to vector<64xf32>
      %111 = vector.shape_cast %110 : vector<64xf32> to vector<1x64xf32>
      %112 = vector.extract_strided_slice %74 {offsets = [2, 0], sizes = [1, 64], strides = [1, 1]} : vector<8x64xf32> to vector<1x64xf32>
      %113 = vector.extract_strided_slice %76 {offsets = [2, 0], sizes = [1, 64], strides = [1, 1]} : vector<8x64xf32> to vector<1x64xf32>
      %114 = vector.extract_strided_slice %79 {offsets = [0, 2], sizes = [16, 1], strides = [1, 1]} : vector<32x8xf32> to vector<16x1xf32>
      %115 = vector.extract_strided_slice %79 {offsets = [16, 2], sizes = [16, 1], strides = [1, 1]} : vector<32x8xf32> to vector<16x1xf32>
      %116 = vector.broadcast %112 : vector<1x64xf32> to vector<16x64xf32>
      %117 = arith.mulf %116, %66 : vector<16x64xf32>
      %118 = math.exp %117 : vector<16x64xf32>
      %119 = arith.mulf %118, %107 : vector<16x64xf32>
      %120 = vector.broadcast %113 : vector<1x64xf32> to vector<16x64xf32>
      %121 = vector.broadcast %114 : vector<16x1xf32> to vector<16x64xf32>
      %122 = arith.mulf %120, %121 : vector<16x64xf32>
      %123 = arith.addf %119, %122 : vector<16x64xf32>
      %124 = vector.broadcast %115 : vector<16x1xf32> to vector<16x64xf32>
      %125 = arith.mulf %123, %124 : vector<16x64xf32>
      %cst_57 = arith.constant dense<0.000000e+00> : vector<64xf32>
      %126 = vector.multi_reduction <add>, %125, %cst_57 [0] : vector<16x64xf32> to vector<64xf32>
      %127 = vector.shape_cast %126 : vector<64xf32> to vector<1x64xf32>
      %128 = vector.extract_strided_slice %74 {offsets = [3, 0], sizes = [1, 64], strides = [1, 1]} : vector<8x64xf32> to vector<1x64xf32>
      %129 = vector.extract_strided_slice %76 {offsets = [3, 0], sizes = [1, 64], strides = [1, 1]} : vector<8x64xf32> to vector<1x64xf32>
      %130 = vector.extract_strided_slice %79 {offsets = [0, 3], sizes = [16, 1], strides = [1, 1]} : vector<32x8xf32> to vector<16x1xf32>
      %131 = vector.extract_strided_slice %79 {offsets = [16, 3], sizes = [16, 1], strides = [1, 1]} : vector<32x8xf32> to vector<16x1xf32>
      %132 = vector.broadcast %128 : vector<1x64xf32> to vector<16x64xf32>
      %133 = arith.mulf %132, %66 : vector<16x64xf32>
      %134 = math.exp %133 : vector<16x64xf32>
      %135 = arith.mulf %134, %123 : vector<16x64xf32>
      %136 = vector.broadcast %129 : vector<1x64xf32> to vector<16x64xf32>
      %137 = vector.broadcast %130 : vector<16x1xf32> to vector<16x64xf32>
      %138 = arith.mulf %136, %137 : vector<16x64xf32>
      %139 = arith.addf %135, %138 : vector<16x64xf32>
      %140 = vector.broadcast %131 : vector<16x1xf32> to vector<16x64xf32>
      %141 = arith.mulf %139, %140 : vector<16x64xf32>
      %cst_58 = arith.constant dense<0.000000e+00> : vector<64xf32>
      %142 = vector.multi_reduction <add>, %141, %cst_58 [0] : vector<16x64xf32> to vector<64xf32>
      %143 = vector.shape_cast %142 : vector<64xf32> to vector<1x64xf32>
      %144 = vector.extract_strided_slice %74 {offsets = [4, 0], sizes = [1, 64], strides = [1, 1]} : vector<8x64xf32> to vector<1x64xf32>
      %145 = vector.extract_strided_slice %76 {offsets = [4, 0], sizes = [1, 64], strides = [1, 1]} : vector<8x64xf32> to vector<1x64xf32>
      %146 = vector.extract_strided_slice %79 {offsets = [0, 4], sizes = [16, 1], strides = [1, 1]} : vector<32x8xf32> to vector<16x1xf32>
      %147 = vector.extract_strided_slice %79 {offsets = [16, 4], sizes = [16, 1], strides = [1, 1]} : vector<32x8xf32> to vector<16x1xf32>
      %148 = vector.broadcast %144 : vector<1x64xf32> to vector<16x64xf32>
      %149 = arith.mulf %148, %66 : vector<16x64xf32>
      %150 = math.exp %149 : vector<16x64xf32>
      %151 = arith.mulf %150, %139 : vector<16x64xf32>
      %152 = vector.broadcast %145 : vector<1x64xf32> to vector<16x64xf32>
      %153 = vector.broadcast %146 : vector<16x1xf32> to vector<16x64xf32>
      %154 = arith.mulf %152, %153 : vector<16x64xf32>
      %155 = arith.addf %151, %154 : vector<16x64xf32>
      %156 = vector.broadcast %147 : vector<16x1xf32> to vector<16x64xf32>
      %157 = arith.mulf %155, %156 : vector<16x64xf32>
      %cst_59 = arith.constant dense<0.000000e+00> : vector<64xf32>
      %158 = vector.multi_reduction <add>, %157, %cst_59 [0] : vector<16x64xf32> to vector<64xf32>
      %159 = vector.shape_cast %158 : vector<64xf32> to vector<1x64xf32>
      %160 = vector.extract_strided_slice %74 {offsets = [5, 0], sizes = [1, 64], strides = [1, 1]} : vector<8x64xf32> to vector<1x64xf32>
      %161 = vector.extract_strided_slice %76 {offsets = [5, 0], sizes = [1, 64], strides = [1, 1]} : vector<8x64xf32> to vector<1x64xf32>
      %162 = vector.extract_strided_slice %79 {offsets = [0, 5], sizes = [16, 1], strides = [1, 1]} : vector<32x8xf32> to vector<16x1xf32>
      %163 = vector.extract_strided_slice %79 {offsets = [16, 5], sizes = [16, 1], strides = [1, 1]} : vector<32x8xf32> to vector<16x1xf32>
      %164 = vector.broadcast %160 : vector<1x64xf32> to vector<16x64xf32>
      %165 = arith.mulf %164, %66 : vector<16x64xf32>
      %166 = math.exp %165 : vector<16x64xf32>
      %167 = arith.mulf %166, %155 : vector<16x64xf32>
      %168 = vector.broadcast %161 : vector<1x64xf32> to vector<16x64xf32>
      %169 = vector.broadcast %162 : vector<16x1xf32> to vector<16x64xf32>
      %170 = arith.mulf %168, %169 : vector<16x64xf32>
      %171 = arith.addf %167, %170 : vector<16x64xf32>
      %172 = vector.broadcast %163 : vector<16x1xf32> to vector<16x64xf32>
      %173 = arith.mulf %171, %172 : vector<16x64xf32>
      %cst_60 = arith.constant dense<0.000000e+00> : vector<64xf32>
      %174 = vector.multi_reduction <add>, %173, %cst_60 [0] : vector<16x64xf32> to vector<64xf32>
      %175 = vector.shape_cast %174 : vector<64xf32> to vector<1x64xf32>
      %176 = vector.extract_strided_slice %74 {offsets = [6, 0], sizes = [1, 64], strides = [1, 1]} : vector<8x64xf32> to vector<1x64xf32>
      %177 = vector.extract_strided_slice %76 {offsets = [6, 0], sizes = [1, 64], strides = [1, 1]} : vector<8x64xf32> to vector<1x64xf32>
      %178 = vector.extract_strided_slice %79 {offsets = [0, 6], sizes = [16, 1], strides = [1, 1]} : vector<32x8xf32> to vector<16x1xf32>
      %179 = vector.extract_strided_slice %79 {offsets = [16, 6], sizes = [16, 1], strides = [1, 1]} : vector<32x8xf32> to vector<16x1xf32>
      %180 = vector.broadcast %176 : vector<1x64xf32> to vector<16x64xf32>
      %181 = arith.mulf %180, %66 : vector<16x64xf32>
      %182 = math.exp %181 : vector<16x64xf32>
      %183 = arith.mulf %182, %171 : vector<16x64xf32>
      %184 = vector.broadcast %177 : vector<1x64xf32> to vector<16x64xf32>
      %185 = vector.broadcast %178 : vector<16x1xf32> to vector<16x64xf32>
      %186 = arith.mulf %184, %185 : vector<16x64xf32>
      %187 = arith.addf %183, %186 : vector<16x64xf32>
      %188 = vector.broadcast %179 : vector<16x1xf32> to vector<16x64xf32>
      %189 = arith.mulf %187, %188 : vector<16x64xf32>
      %cst_61 = arith.constant dense<0.000000e+00> : vector<64xf32>
      %190 = vector.multi_reduction <add>, %189, %cst_61 [0] : vector<16x64xf32> to vector<64xf32>
      %191 = vector.shape_cast %190 : vector<64xf32> to vector<1x64xf32>
      %192 = vector.extract_strided_slice %74 {offsets = [7, 0], sizes = [1, 64], strides = [1, 1]} : vector<8x64xf32> to vector<1x64xf32>
      %193 = vector.extract_strided_slice %76 {offsets = [7, 0], sizes = [1, 64], strides = [1, 1]} : vector<8x64xf32> to vector<1x64xf32>
      %194 = vector.extract_strided_slice %79 {offsets = [0, 7], sizes = [16, 1], strides = [1, 1]} : vector<32x8xf32> to vector<16x1xf32>
      %195 = vector.extract_strided_slice %79 {offsets = [16, 7], sizes = [16, 1], strides = [1, 1]} : vector<32x8xf32> to vector<16x1xf32>
      %196 = vector.broadcast %192 : vector<1x64xf32> to vector<16x64xf32>
      %197 = arith.mulf %196, %66 : vector<16x64xf32>
      %198 = math.exp %197 : vector<16x64xf32>
      %199 = arith.mulf %198, %187 : vector<16x64xf32>
      %200 = vector.broadcast %193 : vector<1x64xf32> to vector<16x64xf32>
      %201 = vector.broadcast %194 : vector<16x1xf32> to vector<16x64xf32>
      %202 = arith.mulf %200, %201 : vector<16x64xf32>
      %203 = arith.addf %199, %202 : vector<16x64xf32>
      %204 = vector.broadcast %195 : vector<16x1xf32> to vector<16x64xf32>
      %205 = arith.mulf %203, %204 : vector<16x64xf32>
      %cst_62 = arith.constant dense<0.000000e+00> : vector<64xf32>
      %206 = vector.multi_reduction <add>, %205, %cst_62 [0] : vector<16x64xf32> to vector<64xf32>
      %207 = vector.shape_cast %206 : vector<64xf32> to vector<1x64xf32>
      %208 = tpu.concatenate %95, %111, %127, %143, %159, %175, %191, %207 in 0 : vector<1x64xf32>, vector<1x64xf32>, vector<1x64xf32>, vector<1x64xf32>, vector<1x64xf32>, vector<1x64xf32>, vector<1x64xf32>, vector<1x64xf32> -> vector<8x64xf32>
      %c0_63 = arith.constant 0 : index
      %209 = arith.index_cast %72 : i32 to index
      %c0_64 = arith.constant 0 : index
      %210 = vector.load %arg9[%c0_63, %209, %c0_64] : memref<1x64x64xf32, #tpu.memory_space<vmem>>, vector<1x8x64xf32>
      %211 = vector.shape_cast %210 : vector<1x8x64xf32> to vector<8x64xf32>
      %212 = arith.addf %211, %208 : vector<8x64xf32>
      %c0_65 = arith.constant 0 : index
      %213 = arith.index_cast %72 : i32 to index
      %c0_66 = arith.constant 0 : index
      %214 = vector.load %arg9[%c0_65, %213, %c0_66] : memref<1x64x64xf32, #tpu.memory_space<vmem>>, vector<1x8x64xf32>
      %215 = vector.shape_cast %214 : vector<1x8x64xf32> to vector<8x64xf32>
      %216 = vector.shape_cast %212 : vector<8x64xf32> to vector<1x8x64xf32>
      tpu.vector_store %arg9[%c0_65, %213, %c0_66], %216 {strides = array<i32>} : memref<1x64x64xf32, #tpu.memory_space<vmem>>, vector<1x8x64xf32>,
      scf.yield %203 : vector<16x64xf32>
    }
    %c8_i32_47 = arith.constant 8 : i32
    %c0_48 = arith.constant 0 : index
    %c0_49 = arith.constant 0 : index
    %70 = vector.load %arg10[%c0_48, %c0_49] : memref<16x64xf32, #tpu.memory_space<vmem>>, vector<16x64xf32>
    tpu.vector_store %arg10[%c0_48, %c0_49], %69 {strides = array<i32>} : memref<16x64xf32, #tpu.memory_space<vmem>>, vector<16x64xf32>,
    return
  }
  func.func @transform_0(%arg0: i32, %arg1: i32) -> (i32, i32, i32) {
    %c0_i32 = arith.constant 0 : i32
    %c0_i32_0 = arith.constant 0 : i32
    return %arg0, %arg1, %c0_i32 : i32, i32, i32
  }
  func.func @transform_1(%arg0: i32, %arg1: i32) -> (i32, i32) {
    %c0_i32 = arith.constant 0 : i32
    %c0_i32_0 = arith.constant 0 : i32
    %c0_i32_1 = arith.constant 0 : i32
    return %c0_i32, %c0_i32_0 : i32, i32
  }
  func.func @transform_2(%arg0: i32, %arg1: i32) -> (i32, i32) {
    %c0_i32 = arith.constant 0 : i32
    %c0_i32_0 = arith.constant 0 : i32
    %c0_i32_1 = arith.constant 0 : i32
    return %c0_i32, %c0_i32_0 : i32, i32
  }
  func.func @transform_3(%arg0: i32, %arg1: i32) -> (i32, i32) {
    %c0_i32 = arith.constant 0 : i32
    %c0_i32_0 = arith.constant 0 : i32
    %c0_i32_1 = arith.constant 0 : i32
    return %c0_i32, %c0_i32_0 : i32, i32
  }
  func.func @transform_4(%arg0: i32, %arg1: i32) -> (i32, i32) {
    %c0_i32 = arith.constant 0 : i32
    %c0_i32_0 = arith.constant 0 : i32
    %c0_i32_1 = arith.constant 0 : i32
    return %c0_i32, %c0_i32_0 : i32, i32
  }
  func.func @transform_5(%arg0: i32, %arg1: i32) -> (i32, i32) {
    %c0_i32 = arith.constant 0 : i32
    %c0_i32_0 = arith.constant 0 : i32
    %c0_i32_1 = arith.constant 0 : i32
    return %c0_i32, %c0_i32_0 : i32, i32
  }
  func.func @transform_6(%arg0: i32, %arg1: i32) -> (i32, i32) {
    %c0_i32 = arith.constant 0 : i32
    %c0_i32_0 = arith.constant 0 : i32
    %c0_i32_1 = arith.constant 0 : i32
    return %c0_i32, %c0_i32_0 : i32, i32
  }
  func.func @transform_7(%arg0: i32, %arg1: i32) -> (i32, i32, i32) {
    %c0_i32 = arith.constant 0 : i32
    %c0_i32_0 = arith.constant 0 : i32
    return %arg0, %arg1, %c0_i32 : i32, i32, i32
  }
}

module attributes {stable_mosaic.version = 11 : i64} {
  func.func @_scan_dir_kernel(%arg0: i32, %arg1: i32, %arg2: memref<1x64x64xbf16, #tpu.memory_space<vmem>>, %arg3: memref<64x2xbf16, #tpu.memory_space<vmem>>, %arg4: memref<32x64xbf16, #tpu.memory_space<vmem>>, %arg5: memref<2x64xf32, #tpu.memory_space<vmem>>, %arg6: memref<16x64xf32, #tpu.memory_space<vmem>>, %arg7: memref<1x64xf32, #tpu.memory_space<vmem>>, %arg8: memref<1x64xf32, #tpu.memory_space<vmem>>, %arg9: memref<1x64x64xf32, #tpu.memory_space<vmem>>, %arg10: memref<16x64xf32, #tpu.memory_space<vmem>>, %arg11: memref<64x64xf32, #tpu.memory_space<vmem>>, %arg12: memref<64x64xf32, #tpu.memory_space<vmem>>, %arg13: memref<8x32x8xf32, #tpu.memory_space<vmem>>) attributes {dimension_semantics = [#tpu.dimension_semantics<parallel>, #tpu.dimension_semantics<arbitrary>], iteration_bounds = array<i64: 2, 1>, scalar_prefetch = 0 : i64, scratch_operands = 4 : i64, tpu.core_type = #tpu.core_type<tc>, window_params = [{transform_indices = @transform_0, window_bounds = array<i64: 1, 64, 64>}, {pipeline_mode = #tpu.pipeline_mode<synchronous>, transform_indices = @transform_1, window_bounds = array<i64: 64, 2>}, {pipeline_mode = #tpu.pipeline_mode<synchronous>, transform_indices = @transform_2, window_bounds = array<i64: 32, 64>}, {pipeline_mode = #tpu.pipeline_mode<synchronous>, transform_indices = @transform_3, window_bounds = array<i64: 2, 64>}, {pipeline_mode = #tpu.pipeline_mode<synchronous>, transform_indices = @transform_4, window_bounds = array<i64: 16, 64>}, {pipeline_mode = #tpu.pipeline_mode<synchronous>, transform_indices = @transform_5, window_bounds = array<i64: 1, 64>}, {pipeline_mode = #tpu.pipeline_mode<synchronous>, transform_indices = @transform_6, window_bounds = array<i64: 1, 64>}, {transform_indices = @transform_7, window_bounds = array<i64: 1, 64, 64>}]} {
    %c0_i32 = arith.constant 0 : i32
    %0 = arith.cmpi eq, %arg1, %c0_i32 : i32
    %1 = arith.extui %0 : i1 to i32
    %c0_i32_0 = arith.constant 0 : i32
    %2 = arith.cmpi ne, %1, %c0_i32_0 : i32
    scf.if %2 {
      %cst_50 = arith.constant 0.000000e+00 : f32
      %71 = vector.broadcast %cst_50 : f32 to vector<16x64xf32>
      %c0_51 = arith.constant 0 : index
      %c0_52 = arith.constant 0 : index
      %72 = vector.load %arg10[%c0_51, %c0_52] : memref<16x64xf32, #tpu.memory_space<vmem>>, vector<16x64xf32>
      tpu.vector_store %arg10[%c0_51, %c0_52], %71 {strides = array<i32>} : memref<16x64xf32, #tpu.memory_space<vmem>>, vector<16x64xf32>,
    } else {
    }
    %c0 = arith.constant 0 : index
    %c0_1 = arith.constant 0 : index
    %c0_2 = arith.constant 0 : index
    %3 = vector.load %arg2[%c0, %c0_1, %c0_2] : memref<1x64x64xbf16, #tpu.memory_space<vmem>>, vector<1x64x64xbf16>
    %4 = vector.shape_cast %3 : vector<1x64x64xbf16> to vector<64x64xbf16>
    %5 = arith.extf %4 : vector<64x64xbf16> to vector<64x64xf32>
    %c0_3 = arith.constant 0 : index
    %c0_4 = arith.constant 0 : index
    %6 = vector.load %arg3[%c0_3, %c0_4] : memref<64x2xbf16, #tpu.memory_space<vmem>>, vector<64x2xbf16>
    %cst = arith.constant dense<0.000000e+00> : vector<64x2xf32>
    %7 = tpu.matmul %4, %6, %cst {dimension_numbers = #tpu.dot_dimension_numbers<[1], [0], [0], [1], [0, 0, 1, 1], [], []>} : vector<64x64xbf16>, vector<64x2xbf16>, vector<64x2xf32> -> vector<64x2xf32>
    %c0_5 = arith.constant 0 : index
    %c0_6 = arith.constant 0 : index
    %8 = vector.load %arg5[%c0_5, %c0_6] : memref<2x64xf32, #tpu.memory_space<vmem>>, vector<2x64xf32>
    %cst_7 = arith.constant dense<0.000000e+00> : vector<64x64xf32>
    %9 = tpu.matmul %7, %8, %cst_7 {dimension_numbers = #tpu.dot_dimension_numbers<[1], [0], [0], [1], [0, 0, 1, 1], [], []>} : vector<64x2xf32>, vector<2x64xf32>, vector<64x64xf32> -> vector<64x64xf32>
    %c0_8 = arith.constant 0 : index
    %c0_9 = arith.constant 0 : index
    %10 = vector.load %arg8[%c0_8, %c0_9] : memref<1x64xf32, #tpu.memory_space<vmem>>, vector<1x64xf32>
    %11 = vector.broadcast %10 : vector<1x64xf32> to vector<64x64xf32>
    %12 = arith.addf %9, %11 : vector<64x64xf32>
    %cst_10 = arith.constant 0.000000e+00 : f32
    %13 = vector.broadcast %cst_10 : f32 to vector<64x64xf32>
    %14 = arith.maximumf %12, %13 : vector<64x64xf32>
    %15 = math.absf %12 : vector<64x64xf32>
    %cst_11 = arith.constant 0.000000e+00 : f32
    %16 = vector.broadcast %cst_11 : f32 to vector<64x64xf32>
    %17 = arith.subf %16, %15 : vector<64x64xf32>
    %18 = math.exp %17 : vector<64x64xf32>
    %cst_12 = arith.constant 1.000000e+00 : f32
    %19 = vector.broadcast %cst_12 : f32 to vector<64x64xf32>
    %20 = arith.addf %19, %18 : vector<64x64xf32>
    %21 = math.log %20 : vector<64x64xf32>
    %22 = arith.addf %14, %21 : vector<64x64xf32>
    %c0_13 = arith.constant 0 : index
    %c0_14 = arith.constant 0 : index
    %23 = vector.load %arg11[%c0_13, %c0_14] : memref<64x64xf32, #tpu.memory_space<vmem>>, vector<64x64xf32>
    tpu.vector_store %arg11[%c0_13, %c0_14], %22 {strides = array<i32>} : memref<64x64xf32, #tpu.memory_space<vmem>>, vector<64x64xf32>,
    %24 = arith.mulf %22, %5 : vector<64x64xf32>
    %c0_15 = arith.constant 0 : index
    %c0_16 = arith.constant 0 : index
    %25 = vector.load %arg12[%c0_15, %c0_16] : memref<64x64xf32, #tpu.memory_space<vmem>>, vector<64x64xf32>
    tpu.vector_store %arg12[%c0_15, %c0_16], %24 {strides = array<i32>} : memref<64x64xf32, #tpu.memory_space<vmem>>, vector<64x64xf32>,
    %c0_17 = arith.constant 0 : index
    %c0_18 = arith.constant 0 : index
    %26 = vector.load %arg4[%c0_17, %c0_18] : memref<32x64xbf16, #tpu.memory_space<vmem>>, vector<32x64xbf16>
    %cst_19 = arith.constant dense<0.000000e+00> : vector<32x64xf32>
    %27 = tpu.matmul %26, %4, %cst_19 {dimension_numbers = #tpu.dot_dimension_numbers<[1], [1], [0], [0], [0, 0, 1, 0], [], []>} : vector<32x64xbf16>, vector<64x64xbf16>, vector<32x64xf32> -> vector<32x64xf32>
    %28 = vector.extract_strided_slice %27 {offsets = [0, 0], sizes = [32, 8], strides = [1, 1]} : vector<32x64xf32> to vector<32x8xf32>
    %c0_20 = arith.constant 0 : index
    %c0_21 = arith.constant 0 : index
    %c0_22 = arith.constant 0 : index
    %29 = vector.load %arg13[%c0_20, %c0_21, %c0_22] : memref<8x32x8xf32, #tpu.memory_space<vmem>>, vector<1x32x8xf32>
    %30 = vector.shape_cast %29 : vector<1x32x8xf32> to vector<32x8xf32>
    %31 = vector.shape_cast %28 : vector<32x8xf32> to vector<1x32x8xf32>
    tpu.vector_store %arg13[%c0_20, %c0_21, %c0_22], %31 {strides = array<i32>} : memref<8x32x8xf32, #tpu.memory_space<vmem>>, vector<1x32x8xf32>,
    %32 = vector.extract_strided_slice %27 {offsets = [0, 8], sizes = [32, 8], strides = [1, 1]} : vector<32x64xf32> to vector<32x8xf32>
    %c1 = arith.constant 1 : index
    %c0_23 = arith.constant 0 : index
    %c0_24 = arith.constant 0 : index
    %33 = vector.load %arg13[%c1, %c0_23, %c0_24] : memref<8x32x8xf32, #tpu.memory_space<vmem>>, vector<1x32x8xf32>
    %34 = vector.shape_cast %33 : vector<1x32x8xf32> to vector<32x8xf32>
    %35 = vector.shape_cast %32 : vector<32x8xf32> to vector<1x32x8xf32>
    tpu.vector_store %arg13[%c1, %c0_23, %c0_24], %35 {strides = array<i32>} : memref<8x32x8xf32, #tpu.memory_space<vmem>>, vector<1x32x8xf32>,
    %36 = vector.extract_strided_slice %27 {offsets = [0, 16], sizes = [32, 8], strides = [1, 1]} : vector<32x64xf32> to vector<32x8xf32>
    %c2 = arith.constant 2 : index
    %c0_25 = arith.constant 0 : index
    %c0_26 = arith.constant 0 : index
    %37 = vector.load %arg13[%c2, %c0_25, %c0_26] : memref<8x32x8xf32, #tpu.memory_space<vmem>>, vector<1x32x8xf32>
    %38 = vector.shape_cast %37 : vector<1x32x8xf32> to vector<32x8xf32>
    %39 = vector.shape_cast %36 : vector<32x8xf32> to vector<1x32x8xf32>
    tpu.vector_store %arg13[%c2, %c0_25, %c0_26], %39 {strides = array<i32>} : memref<8x32x8xf32, #tpu.memory_space<vmem>>, vector<1x32x8xf32>,
    %40 = vector.extract_strided_slice %27 {offsets = [0, 24], sizes = [32, 8], strides = [1, 1]} : vector<32x64xf32> to vector<32x8xf32>
    %c3 = arith.constant 3 : index
    %c0_27 = arith.constant 0 : index
    %c0_28 = arith.constant 0 : index
    %41 = vector.load %arg13[%c3, %c0_27, %c0_28] : memref<8x32x8xf32, #tpu.memory_space<vmem>>, vector<1x32x8xf32>
    %42 = vector.shape_cast %41 : vector<1x32x8xf32> to vector<32x8xf32>
    %43 = vector.shape_cast %40 : vector<32x8xf32> to vector<1x32x8xf32>
    tpu.vector_store %arg13[%c3, %c0_27, %c0_28], %43 {strides = array<i32>} : memref<8x32x8xf32, #tpu.memory_space<vmem>>, vector<1x32x8xf32>,
    %44 = vector.extract_strided_slice %27 {offsets = [0, 32], sizes = [32, 8], strides = [1, 1]} : vector<32x64xf32> to vector<32x8xf32>
    %c4 = arith.constant 4 : index
    %c0_29 = arith.constant 0 : index
    %c0_30 = arith.constant 0 : index
    %45 = vector.load %arg13[%c4, %c0_29, %c0_30] : memref<8x32x8xf32, #tpu.memory_space<vmem>>, vector<1x32x8xf32>
    %46 = vector.shape_cast %45 : vector<1x32x8xf32> to vector<32x8xf32>
    %47 = vector.shape_cast %44 : vector<32x8xf32> to vector<1x32x8xf32>
    tpu.vector_store %arg13[%c4, %c0_29, %c0_30], %47 {strides = array<i32>} : memref<8x32x8xf32, #tpu.memory_space<vmem>>, vector<1x32x8xf32>,
    %48 = vector.extract_strided_slice %27 {offsets = [0, 40], sizes = [32, 8], strides = [1, 1]} : vector<32x64xf32> to vector<32x8xf32>
    %c5 = arith.constant 5 : index
    %c0_31 = arith.constant 0 : index
    %c0_32 = arith.constant 0 : index
    %49 = vector.load %arg13[%c5, %c0_31, %c0_32] : memref<8x32x8xf32, #tpu.memory_space<vmem>>, vector<1x32x8xf32>
    %50 = vector.shape_cast %49 : vector<1x32x8xf32> to vector<32x8xf32>
    %51 = vector.shape_cast %48 : vector<32x8xf32> to vector<1x32x8xf32>
    tpu.vector_store %arg13[%c5, %c0_31, %c0_32], %51 {strides = array<i32>} : memref<8x32x8xf32, #tpu.memory_space<vmem>>, vector<1x32x8xf32>,
    %52 = vector.extract_strided_slice %27 {offsets = [0, 48], sizes = [32, 8], strides = [1, 1]} : vector<32x64xf32> to vector<32x8xf32>
    %c6 = arith.constant 6 : index
    %c0_33 = arith.constant 0 : index
    %c0_34 = arith.constant 0 : index
    %53 = vector.load %arg13[%c6, %c0_33, %c0_34] : memref<8x32x8xf32, #tpu.memory_space<vmem>>, vector<1x32x8xf32>
    %54 = vector.shape_cast %53 : vector<1x32x8xf32> to vector<32x8xf32>
    %55 = vector.shape_cast %52 : vector<32x8xf32> to vector<1x32x8xf32>
    tpu.vector_store %arg13[%c6, %c0_33, %c0_34], %55 {strides = array<i32>} : memref<8x32x8xf32, #tpu.memory_space<vmem>>, vector<1x32x8xf32>,
    %56 = vector.extract_strided_slice %27 {offsets = [0, 56], sizes = [32, 8], strides = [1, 1]} : vector<32x64xf32> to vector<32x8xf32>
    %c7 = arith.constant 7 : index
    %c0_35 = arith.constant 0 : index
    %c0_36 = arith.constant 0 : index
    %57 = vector.load %arg13[%c7, %c0_35, %c0_36] : memref<8x32x8xf32, #tpu.memory_space<vmem>>, vector<1x32x8xf32>
    %58 = vector.shape_cast %57 : vector<1x32x8xf32> to vector<32x8xf32>
    %59 = vector.shape_cast %56 : vector<32x8xf32> to vector<1x32x8xf32>
    tpu.vector_store %arg13[%c7, %c0_35, %c0_36], %59 {strides = array<i32>} : memref<8x32x8xf32, #tpu.memory_space<vmem>>, vector<1x32x8xf32>,
    %c0_37 = arith.constant 0 : index
    %c0_38 = arith.constant 0 : index
    %60 = vector.load %arg7[%c0_37, %c0_38] : memref<1x64xf32, #tpu.memory_space<vmem>>, vector<1x64xf32>
    %61 = vector.broadcast %60 : vector<1x64xf32> to vector<64x64xf32>
    %62 = arith.mulf %61, %5 : vector<64x64xf32>
    %c0_39 = arith.constant 0 : index
    %c0_40 = arith.constant 0 : index
    %c0_41 = arith.constant 0 : index
    %63 = vector.load %arg9[%c0_39, %c0_40, %c0_41] : memref<1x64x64xf32, #tpu.memory_space<vmem>>, vector<1x64x64xf32>
    %64 = vector.shape_cast %63 : vector<1x64x64xf32> to vector<64x64xf32>
    %65 = vector.shape_cast %62 : vector<64x64xf32> to vector<1x64x64xf32>
    tpu.vector_store %arg9[%c0_39, %c0_40, %c0_41], %65 {strides = array<i32>} : memref<1x64x64xf32, #tpu.memory_space<vmem>>, vector<1x64x64xf32>,
    %c0_42 = arith.constant 0 : index
    %c0_43 = arith.constant 0 : index
    %66 = vector.load %arg6[%c0_42, %c0_43] : memref<16x64xf32, #tpu.memory_space<vmem>>, vector<16x64xf32>
    %c0_44 = arith.constant 0 : index
    %c0_45 = arith.constant 0 : index
    %67 = vector.load %arg10[%c0_44, %c0_45] : memref<16x64xf32, #tpu.memory_space<vmem>>, vector<16x64xf32>
    %c0_i32_46 = arith.constant 0 : i32
    %c8_i32 = arith.constant 8 : i32
    %68 = arith.addi %c0_i32_46, %c8_i32 : i32
    %c1_i32 = arith.constant 1 : i32
    %69 = scf.for %arg14 = %c0_i32_46 to %68 step %c1_i32 iter_args(%arg15 = %67) -> (vector<16x64xf32>)  : i32 {
      %c7_i32 = arith.constant 7 : i32
      %71 = arith.subi %c7_i32, %arg14 : i32
      %c8_i32_50 = arith.constant 8 : i32
      %72 = arith.muli %71, %c8_i32_50 : i32
      %73 = tpu.assume_multiple %72, 8 : i32
      %74 = arith.index_cast %73 : i32 to index
      %c0_51 = arith.constant 0 : index
      %75 = vector.load %arg11[%74, %c0_51] : memref<64x64xf32, #tpu.memory_space<vmem>>, vector<8x64xf32>
      %76 = arith.index_cast %73 : i32 to index
      %c0_52 = arith.constant 0 : index
      %77 = vector.load %arg12[%76, %c0_52] : memref<64x64xf32, #tpu.memory_space<vmem>>, vector<8x64xf32>
      %78 = arith.index_cast %71 : i32 to index
      %c0_53 = arith.constant 0 : index
      %c0_54 = arith.constant 0 : index
      %79 = vector.load %arg13[%78, %c0_53, %c0_54] : memref<8x32x8xf32, #tpu.memory_space<vmem>>, vector<1x32x8xf32>
      %80 = vector.shape_cast %79 : vector<1x32x8xf32> to vector<32x8xf32>
      %81 = vector.extract_strided_slice %75 {offsets = [7, 0], sizes = [1, 64], strides = [1, 1]} : vector<8x64xf32> to vector<1x64xf32>
      %82 = vector.extract_strided_slice %77 {offsets = [7, 0], sizes = [1, 64], strides = [1, 1]} : vector<8x64xf32> to vector<1x64xf32>
      %83 = vector.extract_strided_slice %80 {offsets = [0, 7], sizes = [16, 1], strides = [1, 1]} : vector<32x8xf32> to vector<16x1xf32>
      %84 = vector.extract_strided_slice %80 {offsets = [16, 7], sizes = [16, 1], strides = [1, 1]} : vector<32x8xf32> to vector<16x1xf32>
      %85 = vector.broadcast %81 : vector<1x64xf32> to vector<16x64xf32>
      %86 = arith.mulf %85, %66 : vector<16x64xf32>
      %87 = math.exp %86 : vector<16x64xf32>
      %88 = arith.mulf %87, %arg15 : vector<16x64xf32>
      %89 = vector.broadcast %82 : vector<1x64xf32> to vector<16x64xf32>
      %90 = vector.broadcast %83 : vector<16x1xf32> to vector<16x64xf32>
      %91 = arith.mulf %89, %90 : vector<16x64xf32>
      %92 = arith.addf %88, %91 : vector<16x64xf32>
      %93 = vector.broadcast %84 : vector<16x1xf32> to vector<16x64xf32>
      %94 = arith.mulf %92, %93 : vector<16x64xf32>
      %cst_55 = arith.constant dense<0.000000e+00> : vector<64xf32>
      %95 = vector.multi_reduction <add>, %94, %cst_55 [0] : vector<16x64xf32> to vector<64xf32>
      %96 = vector.shape_cast %95 : vector<64xf32> to vector<1x64xf32>
      %97 = vector.extract_strided_slice %75 {offsets = [6, 0], sizes = [1, 64], strides = [1, 1]} : vector<8x64xf32> to vector<1x64xf32>
      %98 = vector.extract_strided_slice %77 {offsets = [6, 0], sizes = [1, 64], strides = [1, 1]} : vector<8x64xf32> to vector<1x64xf32>
      %99 = vector.extract_strided_slice %80 {offsets = [0, 6], sizes = [16, 1], strides = [1, 1]} : vector<32x8xf32> to vector<16x1xf32>
      %100 = vector.extract_strided_slice %80 {offsets = [16, 6], sizes = [16, 1], strides = [1, 1]} : vector<32x8xf32> to vector<16x1xf32>
      %101 = vector.broadcast %97 : vector<1x64xf32> to vector<16x64xf32>
      %102 = arith.mulf %101, %66 : vector<16x64xf32>
      %103 = math.exp %102 : vector<16x64xf32>
      %104 = arith.mulf %103, %92 : vector<16x64xf32>
      %105 = vector.broadcast %98 : vector<1x64xf32> to vector<16x64xf32>
      %106 = vector.broadcast %99 : vector<16x1xf32> to vector<16x64xf32>
      %107 = arith.mulf %105, %106 : vector<16x64xf32>
      %108 = arith.addf %104, %107 : vector<16x64xf32>
      %109 = vector.broadcast %100 : vector<16x1xf32> to vector<16x64xf32>
      %110 = arith.mulf %108, %109 : vector<16x64xf32>
      %cst_56 = arith.constant dense<0.000000e+00> : vector<64xf32>
      %111 = vector.multi_reduction <add>, %110, %cst_56 [0] : vector<16x64xf32> to vector<64xf32>
      %112 = vector.shape_cast %111 : vector<64xf32> to vector<1x64xf32>
      %113 = vector.extract_strided_slice %75 {offsets = [5, 0], sizes = [1, 64], strides = [1, 1]} : vector<8x64xf32> to vector<1x64xf32>
      %114 = vector.extract_strided_slice %77 {offsets = [5, 0], sizes = [1, 64], strides = [1, 1]} : vector<8x64xf32> to vector<1x64xf32>
      %115 = vector.extract_strided_slice %80 {offsets = [0, 5], sizes = [16, 1], strides = [1, 1]} : vector<32x8xf32> to vector<16x1xf32>
      %116 = vector.extract_strided_slice %80 {offsets = [16, 5], sizes = [16, 1], strides = [1, 1]} : vector<32x8xf32> to vector<16x1xf32>
      %117 = vector.broadcast %113 : vector<1x64xf32> to vector<16x64xf32>
      %118 = arith.mulf %117, %66 : vector<16x64xf32>
      %119 = math.exp %118 : vector<16x64xf32>
      %120 = arith.mulf %119, %108 : vector<16x64xf32>
      %121 = vector.broadcast %114 : vector<1x64xf32> to vector<16x64xf32>
      %122 = vector.broadcast %115 : vector<16x1xf32> to vector<16x64xf32>
      %123 = arith.mulf %121, %122 : vector<16x64xf32>
      %124 = arith.addf %120, %123 : vector<16x64xf32>
      %125 = vector.broadcast %116 : vector<16x1xf32> to vector<16x64xf32>
      %126 = arith.mulf %124, %125 : vector<16x64xf32>
      %cst_57 = arith.constant dense<0.000000e+00> : vector<64xf32>
      %127 = vector.multi_reduction <add>, %126, %cst_57 [0] : vector<16x64xf32> to vector<64xf32>
      %128 = vector.shape_cast %127 : vector<64xf32> to vector<1x64xf32>
      %129 = vector.extract_strided_slice %75 {offsets = [4, 0], sizes = [1, 64], strides = [1, 1]} : vector<8x64xf32> to vector<1x64xf32>
      %130 = vector.extract_strided_slice %77 {offsets = [4, 0], sizes = [1, 64], strides = [1, 1]} : vector<8x64xf32> to vector<1x64xf32>
      %131 = vector.extract_strided_slice %80 {offsets = [0, 4], sizes = [16, 1], strides = [1, 1]} : vector<32x8xf32> to vector<16x1xf32>
      %132 = vector.extract_strided_slice %80 {offsets = [16, 4], sizes = [16, 1], strides = [1, 1]} : vector<32x8xf32> to vector<16x1xf32>
      %133 = vector.broadcast %129 : vector<1x64xf32> to vector<16x64xf32>
      %134 = arith.mulf %133, %66 : vector<16x64xf32>
      %135 = math.exp %134 : vector<16x64xf32>
      %136 = arith.mulf %135, %124 : vector<16x64xf32>
      %137 = vector.broadcast %130 : vector<1x64xf32> to vector<16x64xf32>
      %138 = vector.broadcast %131 : vector<16x1xf32> to vector<16x64xf32>
      %139 = arith.mulf %137, %138 : vector<16x64xf32>
      %140 = arith.addf %136, %139 : vector<16x64xf32>
      %141 = vector.broadcast %132 : vector<16x1xf32> to vector<16x64xf32>
      %142 = arith.mulf %140, %141 : vector<16x64xf32>
      %cst_58 = arith.constant dense<0.000000e+00> : vector<64xf32>
      %143 = vector.multi_reduction <add>, %142, %cst_58 [0] : vector<16x64xf32> to vector<64xf32>
      %144 = vector.shape_cast %143 : vector<64xf32> to vector<1x64xf32>
      %145 = vector.extract_strided_slice %75 {offsets = [3, 0], sizes = [1, 64], strides = [1, 1]} : vector<8x64xf32> to vector<1x64xf32>
      %146 = vector.extract_strided_slice %77 {offsets = [3, 0], sizes = [1, 64], strides = [1, 1]} : vector<8x64xf32> to vector<1x64xf32>
      %147 = vector.extract_strided_slice %80 {offsets = [0, 3], sizes = [16, 1], strides = [1, 1]} : vector<32x8xf32> to vector<16x1xf32>
      %148 = vector.extract_strided_slice %80 {offsets = [16, 3], sizes = [16, 1], strides = [1, 1]} : vector<32x8xf32> to vector<16x1xf32>
      %149 = vector.broadcast %145 : vector<1x64xf32> to vector<16x64xf32>
      %150 = arith.mulf %149, %66 : vector<16x64xf32>
      %151 = math.exp %150 : vector<16x64xf32>
      %152 = arith.mulf %151, %140 : vector<16x64xf32>
      %153 = vector.broadcast %146 : vector<1x64xf32> to vector<16x64xf32>
      %154 = vector.broadcast %147 : vector<16x1xf32> to vector<16x64xf32>
      %155 = arith.mulf %153, %154 : vector<16x64xf32>
      %156 = arith.addf %152, %155 : vector<16x64xf32>
      %157 = vector.broadcast %148 : vector<16x1xf32> to vector<16x64xf32>
      %158 = arith.mulf %156, %157 : vector<16x64xf32>
      %cst_59 = arith.constant dense<0.000000e+00> : vector<64xf32>
      %159 = vector.multi_reduction <add>, %158, %cst_59 [0] : vector<16x64xf32> to vector<64xf32>
      %160 = vector.shape_cast %159 : vector<64xf32> to vector<1x64xf32>
      %161 = vector.extract_strided_slice %75 {offsets = [2, 0], sizes = [1, 64], strides = [1, 1]} : vector<8x64xf32> to vector<1x64xf32>
      %162 = vector.extract_strided_slice %77 {offsets = [2, 0], sizes = [1, 64], strides = [1, 1]} : vector<8x64xf32> to vector<1x64xf32>
      %163 = vector.extract_strided_slice %80 {offsets = [0, 2], sizes = [16, 1], strides = [1, 1]} : vector<32x8xf32> to vector<16x1xf32>
      %164 = vector.extract_strided_slice %80 {offsets = [16, 2], sizes = [16, 1], strides = [1, 1]} : vector<32x8xf32> to vector<16x1xf32>
      %165 = vector.broadcast %161 : vector<1x64xf32> to vector<16x64xf32>
      %166 = arith.mulf %165, %66 : vector<16x64xf32>
      %167 = math.exp %166 : vector<16x64xf32>
      %168 = arith.mulf %167, %156 : vector<16x64xf32>
      %169 = vector.broadcast %162 : vector<1x64xf32> to vector<16x64xf32>
      %170 = vector.broadcast %163 : vector<16x1xf32> to vector<16x64xf32>
      %171 = arith.mulf %169, %170 : vector<16x64xf32>
      %172 = arith.addf %168, %171 : vector<16x64xf32>
      %173 = vector.broadcast %164 : vector<16x1xf32> to vector<16x64xf32>
      %174 = arith.mulf %172, %173 : vector<16x64xf32>
      %cst_60 = arith.constant dense<0.000000e+00> : vector<64xf32>
      %175 = vector.multi_reduction <add>, %174, %cst_60 [0] : vector<16x64xf32> to vector<64xf32>
      %176 = vector.shape_cast %175 : vector<64xf32> to vector<1x64xf32>
      %177 = vector.extract_strided_slice %75 {offsets = [1, 0], sizes = [1, 64], strides = [1, 1]} : vector<8x64xf32> to vector<1x64xf32>
      %178 = vector.extract_strided_slice %77 {offsets = [1, 0], sizes = [1, 64], strides = [1, 1]} : vector<8x64xf32> to vector<1x64xf32>
      %179 = vector.extract_strided_slice %80 {offsets = [0, 1], sizes = [16, 1], strides = [1, 1]} : vector<32x8xf32> to vector<16x1xf32>
      %180 = vector.extract_strided_slice %80 {offsets = [16, 1], sizes = [16, 1], strides = [1, 1]} : vector<32x8xf32> to vector<16x1xf32>
      %181 = vector.broadcast %177 : vector<1x64xf32> to vector<16x64xf32>
      %182 = arith.mulf %181, %66 : vector<16x64xf32>
      %183 = math.exp %182 : vector<16x64xf32>
      %184 = arith.mulf %183, %172 : vector<16x64xf32>
      %185 = vector.broadcast %178 : vector<1x64xf32> to vector<16x64xf32>
      %186 = vector.broadcast %179 : vector<16x1xf32> to vector<16x64xf32>
      %187 = arith.mulf %185, %186 : vector<16x64xf32>
      %188 = arith.addf %184, %187 : vector<16x64xf32>
      %189 = vector.broadcast %180 : vector<16x1xf32> to vector<16x64xf32>
      %190 = arith.mulf %188, %189 : vector<16x64xf32>
      %cst_61 = arith.constant dense<0.000000e+00> : vector<64xf32>
      %191 = vector.multi_reduction <add>, %190, %cst_61 [0] : vector<16x64xf32> to vector<64xf32>
      %192 = vector.shape_cast %191 : vector<64xf32> to vector<1x64xf32>
      %193 = vector.extract_strided_slice %75 {offsets = [0, 0], sizes = [1, 64], strides = [1, 1]} : vector<8x64xf32> to vector<1x64xf32>
      %194 = vector.extract_strided_slice %77 {offsets = [0, 0], sizes = [1, 64], strides = [1, 1]} : vector<8x64xf32> to vector<1x64xf32>
      %195 = vector.extract_strided_slice %80 {offsets = [0, 0], sizes = [16, 1], strides = [1, 1]} : vector<32x8xf32> to vector<16x1xf32>
      %196 = vector.extract_strided_slice %80 {offsets = [16, 0], sizes = [16, 1], strides = [1, 1]} : vector<32x8xf32> to vector<16x1xf32>
      %197 = vector.broadcast %193 : vector<1x64xf32> to vector<16x64xf32>
      %198 = arith.mulf %197, %66 : vector<16x64xf32>
      %199 = math.exp %198 : vector<16x64xf32>
      %200 = arith.mulf %199, %188 : vector<16x64xf32>
      %201 = vector.broadcast %194 : vector<1x64xf32> to vector<16x64xf32>
      %202 = vector.broadcast %195 : vector<16x1xf32> to vector<16x64xf32>
      %203 = arith.mulf %201, %202 : vector<16x64xf32>
      %204 = arith.addf %200, %203 : vector<16x64xf32>
      %205 = vector.broadcast %196 : vector<16x1xf32> to vector<16x64xf32>
      %206 = arith.mulf %204, %205 : vector<16x64xf32>
      %cst_62 = arith.constant dense<0.000000e+00> : vector<64xf32>
      %207 = vector.multi_reduction <add>, %206, %cst_62 [0] : vector<16x64xf32> to vector<64xf32>
      %208 = vector.shape_cast %207 : vector<64xf32> to vector<1x64xf32>
      %209 = tpu.concatenate %208, %192, %176, %160, %144, %128, %112, %96 in 0 : vector<1x64xf32>, vector<1x64xf32>, vector<1x64xf32>, vector<1x64xf32>, vector<1x64xf32>, vector<1x64xf32>, vector<1x64xf32>, vector<1x64xf32> -> vector<8x64xf32>
      %c0_63 = arith.constant 0 : index
      %210 = arith.index_cast %73 : i32 to index
      %c0_64 = arith.constant 0 : index
      %211 = vector.load %arg9[%c0_63, %210, %c0_64] : memref<1x64x64xf32, #tpu.memory_space<vmem>>, vector<1x8x64xf32>
      %212 = vector.shape_cast %211 : vector<1x8x64xf32> to vector<8x64xf32>
      %213 = arith.addf %212, %209 : vector<8x64xf32>
      %c0_65 = arith.constant 0 : index
      %214 = arith.index_cast %73 : i32 to index
      %c0_66 = arith.constant 0 : index
      %215 = vector.load %arg9[%c0_65, %214, %c0_66] : memref<1x64x64xf32, #tpu.memory_space<vmem>>, vector<1x8x64xf32>
      %216 = vector.shape_cast %215 : vector<1x8x64xf32> to vector<8x64xf32>
      %217 = vector.shape_cast %213 : vector<8x64xf32> to vector<1x8x64xf32>
      tpu.vector_store %arg9[%c0_65, %214, %c0_66], %217 {strides = array<i32>} : memref<1x64x64xf32, #tpu.memory_space<vmem>>, vector<1x8x64xf32>,
      scf.yield %204 : vector<16x64xf32>
    }
    %c8_i32_47 = arith.constant 8 : i32
    %c0_48 = arith.constant 0 : index
    %c0_49 = arith.constant 0 : index
    %70 = vector.load %arg10[%c0_48, %c0_49] : memref<16x64xf32, #tpu.memory_space<vmem>>, vector<16x64xf32>
    tpu.vector_store %arg10[%c0_48, %c0_49], %69 {strides = array<i32>} : memref<16x64xf32, #tpu.memory_space<vmem>>, vector<16x64xf32>,
    return
  }
  func.func @transform_0(%arg0: i32, %arg1: i32) -> (i32, i32, i32) {
    %c0_i32 = arith.constant 0 : i32
    %0 = arith.subi %c0_i32, %arg1 : i32
    %c0_i32_0 = arith.constant 0 : i32
    %c0_i32_1 = arith.constant 0 : i32
    return %arg0, %0, %c0_i32_0 : i32, i32, i32
  }
  func.func @transform_1(%arg0: i32, %arg1: i32) -> (i32, i32) {
    %c0_i32 = arith.constant 0 : i32
    %c0_i32_0 = arith.constant 0 : i32
    %c0_i32_1 = arith.constant 0 : i32
    return %c0_i32, %c0_i32_0 : i32, i32
  }
  func.func @transform_2(%arg0: i32, %arg1: i32) -> (i32, i32) {
    %c0_i32 = arith.constant 0 : i32
    %c0_i32_0 = arith.constant 0 : i32
    %c0_i32_1 = arith.constant 0 : i32
    return %c0_i32, %c0_i32_0 : i32, i32
  }
  func.func @transform_3(%arg0: i32, %arg1: i32) -> (i32, i32) {
    %c0_i32 = arith.constant 0 : i32
    %c0_i32_0 = arith.constant 0 : i32
    %c0_i32_1 = arith.constant 0 : i32
    return %c0_i32, %c0_i32_0 : i32, i32
  }
  func.func @transform_4(%arg0: i32, %arg1: i32) -> (i32, i32) {
    %c0_i32 = arith.constant 0 : i32
    %c0_i32_0 = arith.constant 0 : i32
    %c0_i32_1 = arith.constant 0 : i32
    return %c0_i32, %c0_i32_0 : i32, i32
  }
  func.func @transform_5(%arg0: i32, %arg1: i32) -> (i32, i32) {
    %c0_i32 = arith.constant 0 : i32
    %c0_i32_0 = arith.constant 0 : i32
    %c0_i32_1 = arith.constant 0 : i32
    return %c0_i32, %c0_i32_0 : i32, i32
  }
  func.func @transform_6(%arg0: i32, %arg1: i32) -> (i32, i32) {
    %c0_i32 = arith.constant 0 : i32
    %c0_i32_0 = arith.constant 0 : i32
    %c0_i32_1 = arith.constant 0 : i32
    return %c0_i32, %c0_i32_0 : i32, i32
  }
  func.func @transform_7(%arg0: i32, %arg1: i32) -> (i32, i32, i32) {
    %c0_i32 = arith.constant 0 : i32
    %0 = arith.subi %c0_i32, %arg1 : i32
    %c0_i32_0 = arith.constant 0 : i32
    %c0_i32_1 = arith.constant 0 : i32
    return %arg0, %0, %c0_i32_0 : i32, i32, i32
  }
}

module attributes {stable_mosaic.version = 11 : i64} {
  func.func @_ln_gate_proj_kernel(%arg0: i32, %arg1: memref<128x64xf32, #tpu.memory_space<vmem>>, %arg2: memref<128x64xf32, #tpu.memory_space<vmem>>, %arg3: memref<1x64xf32, #tpu.memory_space<vmem>>, %arg4: memref<1x64xf32, #tpu.memory_space<vmem>>, %arg5: memref<64x128xbf16, #tpu.memory_space<vmem>>, %arg6: memref<128x128xf32, #tpu.memory_space<vmem>>) attributes {dimension_semantics = [#tpu.dimension_semantics<parallel>], iteration_bounds = array<i64: 1>, scalar_prefetch = 0 : i64, scratch_operands = 0 : i64, tpu.core_type = #tpu.core_type<tc>, window_params = [{transform_indices = @transform_0, window_bounds = array<i64: 128, 64>}, {transform_indices = @transform_1, window_bounds = array<i64: 128, 64>}, {pipeline_mode = #tpu.pipeline_mode<synchronous>, transform_indices = @transform_2, window_bounds = array<i64: 1, 64>}, {pipeline_mode = #tpu.pipeline_mode<synchronous>, transform_indices = @transform_3, window_bounds = array<i64: 1, 64>}, {pipeline_mode = #tpu.pipeline_mode<synchronous>, transform_indices = @transform_4, window_bounds = array<i64: 64, 128>}, {transform_indices = @transform_5, window_bounds = array<i64: 128, 128>}]} {
    %c0 = arith.constant 0 : index
    %c0_0 = arith.constant 0 : index
    %0 = vector.load %arg1[%c0, %c0_0] : memref<128x64xf32, #tpu.memory_space<vmem>>, vector<128x64xf32>
    %cst = arith.constant dense<0.000000e+00> : vector<128xf32>
    %1 = vector.multi_reduction <add>, %0, %cst [1] : vector<128x64xf32> to vector<128xf32>
    %2 = vector.shape_cast %1 : vector<128xf32> to vector<128x1xf32>
    %cst_1 = arith.constant 6.400000e+01 : f32
    %3 = vector.broadcast %cst_1 : f32 to vector<128x1xf32>
    %4 = arith.divf %2, %3 : vector<128x1xf32>
    %5 = vector.broadcast %4 : vector<128x1xf32> to vector<128x64xf32>
    %6 = arith.subf %0, %5 : vector<128x64xf32>
    %7 = arith.mulf %6, %6 : vector<128x64xf32>
    %cst_2 = arith.constant dense<0.000000e+00> : vector<128xf32>
    %8 = vector.multi_reduction <add>, %7, %cst_2 [1] : vector<128x64xf32> to vector<128xf32>
    %9 = vector.shape_cast %8 : vector<128xf32> to vector<128x1xf32>
    %cst_3 = arith.constant 6.400000e+01 : f32
    %10 = vector.broadcast %cst_3 : f32 to vector<128x1xf32>
    %11 = arith.divf %9, %10 : vector<128x1xf32>
    %12 = vector.broadcast %4 : vector<128x1xf32> to vector<128x64xf32>
    %13 = arith.subf %0, %12 : vector<128x64xf32>
    %cst_4 = arith.constant 9.99999974E-6 : f32
    %14 = vector.broadcast %cst_4 : f32 to vector<128x1xf32>
    %15 = arith.addf %11, %14 : vector<128x1xf32>
    %16 = math.rsqrt %15 : vector<128x1xf32>
    %17 = vector.broadcast %16 : vector<128x1xf32> to vector<128x64xf32>
    %18 = arith.mulf %13, %17 : vector<128x64xf32>
    %c0_5 = arith.constant 0 : index
    %c0_6 = arith.constant 0 : index
    %19 = vector.load %arg3[%c0_5, %c0_6] : memref<1x64xf32, #tpu.memory_space<vmem>>, vector<1x64xf32>
    %20 = vector.broadcast %19 : vector<1x64xf32> to vector<128x64xf32>
    %21 = arith.mulf %18, %20 : vector<128x64xf32>
    %c0_7 = arith.constant 0 : index
    %c0_8 = arith.constant 0 : index
    %22 = vector.load %arg4[%c0_7, %c0_8] : memref<1x64xf32, #tpu.memory_space<vmem>>, vector<1x64xf32>
    %23 = vector.broadcast %22 : vector<1x64xf32> to vector<128x64xf32>
    %24 = arith.addf %21, %23 : vector<128x64xf32>
    %c0_9 = arith.constant 0 : index
    %c0_10 = arith.constant 0 : index
    %25 = vector.load %arg2[%c0_9, %c0_10] : memref<128x64xf32, #tpu.memory_space<vmem>>, vector<128x64xf32>
    %26 = arith.negf %25 : vector<128x64xf32>
    %27 = math.exp %26 : vector<128x64xf32>
    %cst_11 = arith.constant 1.000000e+00 : f32
    %28 = vector.broadcast %cst_11 : f32 to vector<128x64xf32>
    %29 = arith.addf %28, %27 : vector<128x64xf32>
    %30 = arith.divf %28, %29 : vector<128x64xf32>
    %31 = arith.mulf %25, %30 : vector<128x64xf32>
    %32 = arith.mulf %24, %31 : vector<128x64xf32>
    %33 = arith.truncf %32 : vector<128x64xf32> to vector<128x64xbf16>
    %c0_12 = arith.constant 0 : index
    %c0_13 = arith.constant 0 : index
    %34 = vector.load %arg5[%c0_12, %c0_13] : memref<64x128xbf16, #tpu.memory_space<vmem>>, vector<64x128xbf16>
    %cst_14 = arith.constant dense<0.000000e+00> : vector<128x128xf32>
    %35 = tpu.matmul %33, %34, %cst_14 {dimension_numbers = #tpu.dot_dimension_numbers<[1], [0], [0], [1], [0, 0, 1, 1], [], []>} : vector<128x64xbf16>, vector<64x128xbf16>, vector<128x128xf32> -> vector<128x128xf32>
    %c0_15 = arith.constant 0 : index
    %c0_16 = arith.constant 0 : index
    %36 = vector.load %arg6[%c0_15, %c0_16] : memref<128x128xf32, #tpu.memory_space<vmem>>, vector<128x128xf32>
    tpu.vector_store %arg6[%c0_15, %c0_16], %35 {strides = array<i32>} : memref<128x128xf32, #tpu.memory_space<vmem>>, vector<128x128xf32>,
    return
  }
  func.func @transform_0(%arg0: i32) -> (i32, i32) {
    %c0_i32 = arith.constant 0 : i32
    %c0_i32_0 = arith.constant 0 : i32
    return %arg0, %c0_i32 : i32, i32
  }
  func.func @transform_1(%arg0: i32) -> (i32, i32) {
    %c0_i32 = arith.constant 0 : i32
    %c0_i32_0 = arith.constant 0 : i32
    return %arg0, %c0_i32 : i32, i32
  }
  func.func @transform_2(%arg0: i32) -> (i32, i32) {
    %c0_i32 = arith.constant 0 : i32
    %c0_i32_0 = arith.constant 0 : i32
    %c0_i32_1 = arith.constant 0 : i32
    return %c0_i32, %c0_i32_0 : i32, i32
  }
  func.func @transform_3(%arg0: i32) -> (i32, i32) {
    %c0_i32 = arith.constant 0 : i32
    %c0_i32_0 = arith.constant 0 : i32
    %c0_i32_1 = arith.constant 0 : i32
    return %c0_i32, %c0_i32_0 : i32, i32
  }
  func.func @transform_4(%arg0: i32) -> (i32, i32) {
    %c0_i32 = arith.constant 0 : i32
    %c0_i32_0 = arith.constant 0 : i32
    %c0_i32_1 = arith.constant 0 : i32
    return %c0_i32, %c0_i32_0 : i32, i32
  }
  func.func @transform_5(%arg0: i32) -> (i32, i32) {
    %c0_i32 = arith.constant 0 : i32
    %c0_i32_0 = arith.constant 0 : i32
    return %arg0, %c0_i32 : i32, i32
  }
}

</mosaic_0001>

<bundles_post_ra>
// kernel: _lambda_.7
= control target key start
LH: loop header
LB: loop body
LE: loop exit
PB: predicated region body
PF: predicated region fallthrough
CT: control target
= control target key end

     0   :  { %10 = vsyncpa [#allocation3], 0  ;;  %s556_s15 = smov [#allocation2]   ;;  %s752_s0 = inlined_call_operand.hbm [shape: f32[128,32], index: 0, kind: input, shape index: {}]   ;;  %s753_s1 = inlined_call_operand.vmem [shape: bf16[32,64], index: 1, kind: input, shape index: {}]   ;;  %s754_s2 = inlined_call_operand.vmem [shape: bf16[32,64], index: 2, kind: input, shape index: {}]   ;;  %s755_s3 = inlined_call_operand.vmem [shape: bf16[128,64], index: 3, kind: output, shape index: {0}]   ;;  %s756_s4 = inlined_call_operand.vmem [shape: f32[128,64], index: 4, kind: output, shape index: {1}]  }
   0x1   :  { %s16_s16 = sshll.u32 %s556_s15, 4  ;;  %s532_s19 = scalar_lea.hbm %s752_s0, 2048  ;;  %s17_s16 = int_to_ptr.vmem [resolvable:$true] %s16_s16 }
   0x2   :  { %p533_p0 = scmp.ne.s32.totalorder %s752_s0, %s532_s19  ;;  %p536_p1 = scmp.lt.u32.totalorder %s532_s19, %s752_s0 }
   0x4   :  { %p538_p2 = pnand %p536_p1, %p533_p0 }
   0x6   :  { %541 = shalt.err (!%p538_p2)
}
   0x7   :  { %s542_s24 = scalar_lea.vmem %s17_s16, 2048  ;;  %p547_p4 = scmp.lt.s32.totalorder %s17_s16, %s17_s16 }
   0x8   :  { %p543_p3 = scmp.ne.s32.totalorder %s17_s16, %s542_s24  ;;  %p548_p5 = scmp.lt.s32.totalorder %s542_s24, %s542_s24 }
   0xa   :  { %p549_p6 = por %p548_p5, %p547_p4 }
   0xc   :  { %p550_p7 = pnand %p549_p6, %p543_p3 }
   0xe   :  { %553 = shalt.err (!%p550_p7)
}
   0xf   :  { %s557_s25 = smov 128   ;;  %s558_s26 = smov 8  }
  0x10   :  { %22 = dma.hbm_to_vmem [thread:$0]  %s752_s0, 2048, %s17_s16, [#allocation3], %s557_s25, %s557_s25, %s558_s26  }
  0x11   :  { %554 = dma.done.wait [#allocation3], 2048  }
  0x12   :  { %555 = vsyncadd [#allocation3], 4294965248  ;;  %v528_v0 = vld [vmem:[%s753_s1] sm:$0xff]   ;;  %v530_v2 = vld [vmem:[%s753_s1 + $0x8] sm:$0xff]   ;;  %vm71_vm0 = vcmask 261120   ;;  %vm387_vm1 = vcmask 523264  }
  0x13   :  { %v529_v1 = vld [vmem:[%s754_s2] sm:$0xff]   ;;  %485 = vmatprep.subr.bf16.mxu0 %v528_v0  ;;  %v531_v3 = vld [vmem:[%s754_s2 + $0x8] sm:$0xff]   ;;  %v33_v6 = vld [vmem:[#allocation2 + $0x10] sm:$0xff]  ;;  %vm257_vm2 = vcmask 519168  }
  0x14   :  { %505 = vmatprep.subr.bf16.mxu1 %v529_v1  ;;  %486 = vmatpush3.bf16.msra.mxu0 %v528_v0  ;;  %v31_v4 = vld [vmem:[#allocation2] sm:$0xff]  ;;  %v32_v5 = vld [vmem:[#allocation2 + $0x8] sm:$0xff]  ;;  %v34_v8 = vld [vmem:[#allocation2 + $0x18] sm:$0xff] }
  0x15   :  { %506 = vmatpush3.bf16.msra.mxu1 %v529_v1  ;;  %487 = vmatprep.subr.bf16.mxu0 %v530_v2  ;;  %v47_v7 = vpack.c.bf16 %v32_v5, %v31_v4  ;;  %v35_v9 = vld [vmem:[#allocation2 + $0x20] sm:$0xff]  ;;  %v36_v10 = vld [vmem:[#allocation2 + $0x28] sm:$0xff]  ;;  %v48_v11 = vpack.c.bf16 %v34_v8, %v33_v6  ;;  %v37_v13 = vld [vmem:[#allocation2 + $0x30] sm:$0xff] }
  0x16   :  { %507 = vmatprep.subr.bf16.mxu1 %v531_v3  ;;  %v49_v12 = vpack.c.bf16 %v36_v10, %v35_v9  ;;  %v38_v14 = vld [vmem:[#allocation2 + $0x38] sm:$0xff]  ;;  %v39_v15 = vld [vmem:[#allocation2 + $0x40] sm:$0xff]  ;;  %v40_v16 = vld [vmem:[#allocation2 + $0x48] sm:$0xff] }
  0x17   :  { %489 = vmatprep.mubr.msk.bf16.mxu0 %vm71_vm0, %v47_v7  ;;  %509 = vmatprep.mubr.msk.bf16.mxu1 %vm71_vm0, %v47_v7  ;;  %v50_v17 = vpack.c.bf16 %v38_v14, %v37_v13  ;;  %v51_v18 = vpack.c.bf16 %v40_v16, %v39_v15  ;;  %v41_v19 = vld [vmem:[#allocation2 + $0x50] sm:$0xff]  ;;  %v42_v20 = vld [vmem:[#allocation2 + $0x58] sm:$0xff]  ;;  %v43_v21 = vld [vmem:[#allocation2 + $0x60] sm:$0xff] }
  0x18   :  { %488 = vmatpush3.bf16.msra.mxu0 %v530_v2  ;;  %v44_v22 = vld [vmem:[#allocation2 + $0x68] sm:$0xff]  ;;  %v52_v23 = vpack.c.bf16 %v42_v20, %v41_v19  ;;  %v45_v25 = vld [vmem:[#allocation2 + $0x70] sm:$0xff]  ;;  %v46_v26 = vld [vmem:[#allocation2 + $0x78] sm:$0xff] }
  0x19   :  { %508 = vmatpush3.bf16.msra.mxu1 %v531_v3  ;;  %v53_v24 = vpack.c.bf16 %v44_v22, %v43_v21  ;;  %v54_v27 = vpack.c.bf16 %v46_v26, %v45_v25 }
  0x1b   :  { %490 = vmatmul.mubr.msk.bf16.vlgmr.msra.gmra.mrb[0].mxu0 %vm71_vm0, %v48_v11 }
  0x1c   :  { %510 = vmatmul.mubr.msk.bf16.vlgmr.msra.gmra.mrb[0].mxu1 %vm71_vm0, %v48_v11  ;;  %493 = vmatprep.mubr.msk.bf16.mxu0 %vm71_vm0, %v49_v12 }
  0x1d   :  { %513 = vmatprep.mubr.msk.bf16.mxu1 %vm71_vm0, %v49_v12 }
  0x23   :  { %494 = vmatmul.mubr.msk.bf16.gmra.mrb[4].mxu0 %vm71_vm0, %v50_v17 }
  0x24   :  { %514 = vmatmul.mubr.msk.bf16.gmra.mrb[4].mxu1 %vm71_vm0, %v50_v17  ;;  %497 = vmatprep.mubr.msk.bf16.mxu0 %vm71_vm0, %v51_v18 }
  0x25   :  { %517 = vmatprep.mubr.msk.bf16.mxu1 %vm71_vm0, %v51_v18 }
  0x2b   :  { %498 = vmatmul.mubr.msk.bf16.gmra.mrb[8].mxu0 %vm71_vm0, %v52_v23 }
  0x2c   :  { %518 = vmatmul.mubr.msk.bf16.gmra.mrb[8].mxu1 %vm71_vm0, %v52_v23  ;;  %501 = vmatprep.mubr.msk.bf16.mxu0 %vm71_vm0, %v53_v24 }
  0x2d   :  { %521 = vmatprep.mubr.msk.bf16.mxu1 %vm71_vm0, %v53_v24 }
  0x33   :  { %502 = vmatmul.mubr.msk.bf16.gmra.mrb[12].mxu0 %vm71_vm0, %v54_v27 }
  0x34   :  { %522 = vmatmul.mubr.msk.bf16.gmra.mrb[12].mxu1 %vm71_vm0, %v54_v27 }
  0xee   :  { %v491_v28 = vpop.f32.mrb[0].mxu0 }
  0xef   :  { %v451_v29 = vpack.c.bf16 %v491_v28, %v491_v28  ;;  %v511_v30 = vpop.f32.mrb[0].mxu1  ;;  %v130_v31 = vpop.f32.mrb[1].mxu0 }
  0xf0   :  { %390 = vst.msk [vmem:[%s756_s4 + $0x10] sm:$0xff] %vm387_vm1, %v511_v30  ;;  %v449_v32 = vpack.c.bf16 %v130_v31, %v130_v31  ;;  %v324_v33 = vpop.f32.mrb[1].mxu1  ;;  %v492_v34 = vpop.f32.mrb[2].mxu0 }
  0xf1   :  { %260 = vst.msk [vmem:[%s755_s3 + $0x8] sm:$0xf] %vm257_vm2, %v451_v29  ;;  %v452_v35 = vpack.c.bf16 %v492_v34, %v492_v34  ;;  %v512_v36 = vpop.f32.mrb[2].mxu1  ;;  %v133_v37 = vpop.f32.mrb[3].mxu0 }
  0xf2   :  { %388 = vst.msk [vmem:[%s756_s4] sm:$0xff] %vm387_vm1, %v324_v33  ;;  %391 = vst.msk [vmem:[%s756_s4 + $0x18] sm:$0xff] %vm387_vm1, %v512_v36  ;;  %v450_v38 = vpack.c.bf16 %v133_v37, %v133_v37  ;;  %v327_v39 = vpop.f32.mrb[3].mxu1 }
  0xf3   :  { %258 = vst.msk [vmem:[%s755_s3] sm:$0xf] %vm257_vm2, %v449_v32  ;;  %261 = vst.msk [vmem:[%s755_s3 + $0xc] sm:$0xf] %vm257_vm2, %v452_v35 }
  0xf4   :  { %389 = vst.msk [vmem:[%s756_s4 + $0x8] sm:$0xff] %vm387_vm1, %v327_v39 }
  0xf5   :  { %259 = vst.msk [vmem:[%s755_s3 + $0x4] sm:$0xf] %vm257_vm2, %v450_v38 }
  0xf6   :  { %v495_v40 = vpop.f32.mrb[4].mxu0 }
  0xf7   :  { %v455_v41 = vpack.c.bf16 %v495_v40, %v495_v40  ;;  %v515_v42 = vpop.f32.mrb[4].mxu1  ;;  %v146_v43 = vpop.f32.mrb[5].mxu0 }
  0xf8   :  { %394 = vst.msk [vmem:[%s756_s4 + $0x30] sm:$0xff] %vm387_vm1, %v515_v42  ;;  %v453_v44 = vpack.c.bf16 %v146_v43, %v146_v43  ;;  %v340_v45 = vpop.f32.mrb[5].mxu1  ;;  %v496_v46 = vpop.f32.mrb[6].mxu0 }
  0xf9   :  { %264 = vst.msk [vmem:[%s755_s3 + $0x18] sm:$0xf] %vm257_vm2, %v455_v41  ;;  %v456_v47 = vpack.c.bf16 %v496_v46, %v496_v46  ;;  %v516_v48 = vpop.f32.mrb[6].mxu1  ;;  %v149_v49 = vpop.f32.mrb[7].mxu0 }
  0xfa   :  { %392 = vst.msk [vmem:[%s756_s4 + $0x20] sm:$0xff] %vm387_vm1, %v340_v45  ;;  %395 = vst.msk [vmem:[%s756_s4 + $0x38] sm:$0xff] %vm387_vm1, %v516_v48  ;;  %v454_v50 = vpack.c.bf16 %v149_v49, %v149_v49  ;;  %v343_v51 = vpop.f32.mrb[7].mxu1 }
  0xfb   :  { %262 = vst.msk [vmem:[%s755_s3 + $0x10] sm:$0xf] %vm257_vm2, %v453_v44  ;;  %265 = vst.msk [vmem:[%s755_s3 + $0x1c] sm:$0xf] %vm257_vm2, %v456_v47 }
  0xfc   :  { %393 = vst.msk [vmem:[%s756_s4 + $0x28] sm:$0xff] %vm387_vm1, %v343_v51 }
  0xfd   :  { %263 = vst.msk [vmem:[%s755_s3 + $0x14] sm:$0xf] %vm257_vm2, %v454_v50 }
  0xfe   :  { %v499_v52 = vpop.f32.mrb[8].mxu0 }
  0xff   :  { %v459_v53 = vpack.c.bf16 %v499_v52, %v499_v52  ;;  %v519_v54 = vpop.f32.mrb[8].mxu1  ;;  %v162_v55 = vpop.f32.mrb[9].mxu0 }
 0x100   :  { %398 = vst.msk [vmem:[%s756_s4 + $0x50] sm:$0xff] %vm387_vm1, %v519_v54  ;;  %v457_v56 = vpack.c.bf16 %v162_v55, %v162_v55  ;;  %v356_v57 = vpop.f32.mrb[9].mxu1  ;;  %v500_v58 = vpop.f32.mrb[10].mxu0 }
 0x101   :  { %268 = vst.msk [vmem:[%s755_s3 + $0x28] sm:$0xf] %vm257_vm2, %v459_v53  ;;  %v460_v59 = vpack.c.bf16 %v500_v58, %v500_v58  ;;  %v520_v60 = vpop.f32.mrb[10].mxu1  ;;  %v165_v61 = vpop.f32.mrb[11].mxu0 }
 0x102   :  { %396 = vst.msk [vmem:[%s756_s4 + $0x40] sm:$0xff] %vm387_vm1, %v356_v57  ;;  %399 = vst.msk [vmem:[%s756_s4 + $0x58] sm:$0xff] %vm387_vm1, %v520_v60  ;;  %v458_v62 = vpack.c.bf16 %v165_v61, %v165_v61  ;;  %v359_v63 = vpop.f32.mrb[11].mxu1 }
 0x103   :  { %266 = vst.msk [vmem:[%s755_s3 + $0x20] sm:$0xf] %vm257_vm2, %v457_v56  ;;  %269 = vst.msk [vmem:[%s755_s3 + $0x2c] sm:$0xf] %vm257_vm2, %v460_v59 }
 0x104   :  { %397 = vst.msk [vmem:[%s756_s4 + $0x48] sm:$0xff] %vm387_vm1, %v359_v63 }
 0x105   :  { %267 = vst.msk [vmem:[%s755_s3 + $0x24] sm:$0xf] %vm257_vm2, %v458_v62 }
 0x106   :  { %v503_v0 = vpop.f32.mrb[12].mxu0 }
 0x107   :  { %v463_v1 = vpack.c.bf16 %v503_v0, %v503_v0  ;;  %v523_v2 = vpop.f32.mrb[12].mxu1  ;;  %v178_v3 = vpop.f32.mrb[13].mxu0 }
 0x108   :  { %402 = vst.msk [vmem:[%s756_s4 + $0x70] sm:$0xff] %vm387_vm1, %v523_v2  ;;  %v461_v4 = vpack.c.bf16 %v178_v3, %v178_v3  ;;  %v372_v5 = vpop.f32.mrb[13].mxu1  ;;  %v504_v6 = vpop.f32.mrb[14].mxu0 }
 0x109   :  { %272 = vst.msk [vmem:[%s755_s3 + $0x38] sm:$0xf] %vm257_vm2, %v463_v1  ;;  %v464_v7 = vpack.c.bf16 %v504_v6, %v504_v6  ;;  %v524_v8 = vpop.f32.mrb[14].mxu1  ;;  %v181_v9 = vpop.f32.mrb[15].mxu0 }
 0x10a   :  { %400 = vst.msk [vmem:[%s756_s4 + $0x60] sm:$0xff] %vm387_vm1, %v372_v5  ;;  %403 = vst.msk [vmem:[%s756_s4 + $0x78] sm:$0xff] %vm387_vm1, %v524_v8  ;;  %v462_v10 = vpack.c.bf16 %v181_v9, %v181_v9  ;;  %v375_v11 = vpop.f32.mrb[15].mxu1 }
 0x10b   :  { %270 = vst.msk [vmem:[%s755_s3 + $0x30] sm:$0xf] %vm257_vm2, %v461_v4  ;;  %273 = vst.msk [vmem:[%s755_s3 + $0x3c] sm:$0xf] %vm257_vm2, %v464_v7 }
 0x10c   :  { %401 = vst.msk [vmem:[%s756_s4 + $0x68] sm:$0xff] %vm387_vm1, %v375_v11 }
 0x10d   :  { %271 = vst.msk [vmem:[%s755_s3 + $0x34] sm:$0xf] %vm257_vm2, %v462_v10 }
 0x10e   :  { %412 = vsyncpa [#allocation3], 1 }

// kernel: _lambda_.8
= control target key start
LH: loop header
LB: loop body
LE: loop exit
PB: predicated region body
PF: predicated region fallthrough
CT: control target
= control target key end

     0   :  { %s1331_s18 = smov 0   ;;  %s1333_s19 = smov 0   ;;  %s1793_s0 = inlined_call_operand.vmem [shape: bf16[2,10,10,64], index: 0, kind: input, shape index: {}, may-alias: {0,1,2}]   ;;  %s1794_s1 = inlined_call_operand.vmem [shape: bf16[2,10,10,64], index: 1, kind: input, shape index: {}, may-alias: {0,1,2}]   ;;  %s1795_s2 = inlined_call_operand.vmem [shape: bf16[2,10,10,64], index: 2, kind: input, shape index: {}, may-alias: {0,1,2}]   ;;  %s1796_s3 = inlined_call_operand.vmem [shape: f32[3,3,64], index: 3, kind: input, shape index: {}]   ;;  %s1797_s4 = inlined_call_operand.vmem [shape: f32[1,1,64], index: 4, kind: input, shape index: {}]   ;;  %s1798_s5 = inlined_call_operand.vmem [shape: bf16[2,8,8,64], index: 5, kind: output, shape index: {}]  }
   0x1   :  { %s1335_s20 = smov 0  }
   0x2 LB: > { %s27_s21 = sadd.s32 1, %s1295_s19  ;;  %p1181_p0 = scmp.ge.s32.totalorder %s1299_s20, 1  ;;  %s1299_s20 = sphi %s1335_s20, %s15_s20   ;;  %s1295_s19 = sphi %s1333_s19, %s1800_s19   ;;  %s1291_s18 = sphi %s1331_s18, %s1799_s18  }
   0x3   : > { %p29_p1 = scmp.ge.s32.totalorder %s27_s21, 2  ;;  %p267_p2 = scmp.lt.s32.totalorder %s1299_s20, 3 }
   0x5   : > { %s1802_s21 = smov (%p29_p1, %s27_s21), 0  ;;  %p268_p3 = pnand %p1181_p0, %p267_p2 }
   0x6   : > { %p337_p4 = scmp.lt.s32.totalorder (!%p268_p3), %s1291_s18, 1  ;;  %v1357_v0 = vld [vmem:[%s1796_s3] ss:$0 sm:$0xff] (!%p268_p3)  ;;  %v1362_v1 = vld [vmem:[%s1796_s3 + $0x1] ss:$0 sm:$0xff] (!%p268_p3)  ;;  %vm486_vm0 = vcmask (!%p268_p3), 1046528  }
   0x7   : > { %271 = sbr.rel (%p268_p3) target bundleno = 157 (0x9d), region = 40  ;;  %v1367_v2 = vld [vmem:[%s1796_s3 + $0x2] ss:$0 sm:$0xff] (!%p268_p3)  ;;  %vm564_vm1 = vcmask (!%p268_p3), 1045504   ;;  %v1378_v3 = vld [vmem:[%s1796_s3 + $0x4] ss:$0 sm:$0xff] (!%p268_p3) }
   0x8   : > { %v1383_v4 = vld [vmem:[%s1796_s3 + $0x5] ss:$0 sm:$0xff] (!%p268_p3)  ;;  %v1398_v17 = vld [vmem:[%s1796_s3 + $0x6] ss:$0 sm:$0xff] (!%p268_p3)  ;;  %v1415_v28 = vld [vmem:[%s1796_s3 + $0x8] ss:$0 sm:$0xff] (!%p268_p3) }
   0x9   : > { %v1420_v29 = vld [vmem:[%s1796_s3 + $0x9] ss:$0 sm:$0xff] (!%p268_p3)  ;;  %v1427_v38 = vld [vmem:[%s1796_s3 + $0xa] ss:$0 sm:$0xff] (!%p268_p3)  ;;  %vm1036_vm2 = vcmask (!%p268_p3), 519168  }
   0xe   : > { %s1804_s18 = smov (!%p337_p4, %s1291_s18), 1 }
   0xf   : > { %s1352_s22 = smul.u32 80, %s1804_s18  ;;  %s1217_s26 = sshll.u32 %s1804_s18, 5 }
  0x10   : > { %s1611_s28 = scalar_lea.vmem %s1798_s5, %s1217_s26 }
  0x11   : > { %s1373_s6 = scalar_lea.vmem %s1793_s0, %s1352_s22  ;;  %s1214_s29 = sadd.s32 64, %s1352_s22 }
  0x12   : > { %v388_v5 = vld [vmem:[%s1373_s6] ss:$8 sps:$4 sm:$0xff]   ;;  %v389_v6 = vld [vmem:[%s1373_s6 + $0x4] sm:$0x1]  ;;  %v391_v7 = vld [vmem:[%s1373_s6 + $0xc] sm:$0x1]  ;;  %s362_s7 = scalar_lea.vmem %s1794_s1, %s1214_s29 }
  0x13   : > { %v392_v8 = vld [vmem:[%s1373_s6 + $0x10] ss:$8 sps:$4 sm:$0xff]   ;;  %v393_v9 = vld [vmem:[%s1373_s6 + $0x14] sm:$0x1]  ;;  %v408_v10 = vunpack.c.l.bf16 %v388_v5  ;;  %v409_v11 = vunpack.c.l.bf16 %v389_v6  ;;  %v410_v12 = vunpack.c.h.bf16 %v388_v5  ;;  %v411_v13 = vunpack.c.l.bf16 %v391_v7  ;;  %v395_v14 = vld [vmem:[%s1373_s6 + $0x1c] sm:$0x1] }
  0x14   : > { %v1391_v15 = vunpack.c.l.bf16 %v392_v8  ;;  %v1393_v16 = vunpack.c.l.bf16 %v393_v9  ;;  %v1400_v18 = vunpack.c.h.bf16 %v392_v8  ;;  %v1402_v19 = vunpack.c.l.bf16 %v395_v14  ;;  %s1216_s8 = sadd.s32 72, %s1352_s22 }
  0x15   : > { %v433_v20 = vmul.f32 %v1357_v0, %v408_v10  ;;  %v454_v21 = vmul.f32 %v1362_v1, %v408_v10  ;;  %v455_v22 = vmul.f32 %v1362_v1, %v409_v11  ;;  %v532_v23 = vmul.f32 %v1367_v2, %v408_v10  ;;  %s375_s10 = scalar_lea.vmem %s1795_s2, %s1216_s8 }
  0x16   : > { %v533_v24 = vmul.f32 %v1367_v2, %v409_v11  ;;  %v611_v25 = vmul.f32 %v1378_v3, %v410_v12  ;;  %v632_v26 = vmul.f32 %v1383_v4, %v410_v12  ;;  %v633_v27 = vmul.f32 %v1383_v4, %v411_v13 }
  0x17   : > { %v487_v30 = vrot.slane %v454_v21, 1  ;;  %v488_v31 = vrot.slane %v455_v22, 1  ;;  %v565_v32 = vrot.slane %v532_v23, 2  ;;  %v709_v33 = vmul.f32 %v1398_v17, %v410_v12 }
  0x18   : > { %v566_v34 = vrot.slane %v533_v24, 2  ;;  %v664_v35 = vrot.slane %v632_v26, 1  ;;  %v665_v36 = vrot.slane %v633_v27, 1  ;;  %v710_v37 = vmul.f32 %v1398_v17, %v411_v13 }
  0x19   : > { %v489_v39 = vsel %vm486_vm0, %v487_v30, %v488_v31  ;;  %v741_v40 = vrot.slane %v709_v33, 2  ;;  %v787_v41 = vmul.f32 %v1415_v28, %v1391_v15  ;;  %v808_v42 = vmul.f32 %v1420_v29, %v1391_v15 }
  0x1a   : > { %v519_v43 = vadd.f32 %v489_v39, %v433_v20  ;;  %v567_v44 = vsel %vm564_vm1, %v565_v32, %v566_v34  ;;  %v666_v45 = vsel %vm486_vm0, %v664_v35, %v665_v36  ;;  %v742_v46 = vrot.slane %v710_v37, 2  ;;  %v396_v35 = vld [vmem:[%s1373_s6 + $0x20] ss:$8 sps:$4 sm:$0xff]   ;;  %v397_v36 = vld [vmem:[%s1373_s6 + $0x24] sm:$0x1] }
  0x1b   : > { %v809_v47 = vmul.f32 %v1420_v29, %v1393_v16  ;;  %v840_v48 = vrot.slane %v808_v42, 1  ;;  %v885_v49 = vmul.f32 %v1427_v38, %v1391_v15  ;;  %v886_v50 = vmul.f32 %v1427_v38, %v1393_v16 }
  0x1c   : > { %v597_v51 = vadd.f32 %v567_v44, %v519_v43  ;;  %v743_v52 = vsel %vm564_vm1, %v741_v40, %v742_v46  ;;  %v434_v53 = vmul.f32 %v1357_v0, %v410_v12  ;;  %v456_v54 = vmul.f32 %v1362_v1, %v410_v12  ;;  %v1479_v46 = vld [vmem:[%s1797_s4] ss:$0 sm:$0xff] }
  0x1d   : > { %v841_v55 = vrot.slane %v809_v47, 1  ;;  %v917_v56 = vrot.slane %v885_v49, 2  ;;  %v918_v57 = vrot.slane %v886_v50, 2  ;;  %v457_v58 = vmul.f32 %v1362_v1, %v411_v13 }
  0x1e   : > { %v619_v59 = vadd.f32 %v611_v25, %v597_v51  ;;  %v490_v60 = vrot.slane %v456_v54, 1  ;;  %v534_v61 = vmul.f32 %v1367_v2, %v410_v12  ;;  %v535_v62 = vmul.f32 %v1367_v2, %v411_v13 }
  0x1f   : > { %v842_v63 = vsel %vm486_vm0, %v840_v48, %v841_v55  ;;  %v919_v5 = vsel %vm564_vm1, %v917_v56, %v918_v57  ;;  %v491_v6 = vrot.slane %v457_v58, 1  ;;  %v612_v7 = vmul.f32 %v1378_v3, %v1391_v15 }
  0x20   : > { %v696_v8 = vadd.f32 %v666_v45, %v619_v59  ;;  %v568_v9 = vrot.slane %v534_v61, 2  ;;  %v569_v10 = vrot.slane %v535_v62, 2  ;;  %v634_v11 = vmul.f32 %v1383_v4, %v1391_v15 }
  0x21   : > { %v492_v14 = vsel %vm486_vm0, %v490_v60, %v491_v6  ;;  %v635_v12 = vmul.f32 %v1383_v4, %v1393_v16  ;;  %v711_v13 = vmul.f32 %v1398_v17, %v1391_v15  ;;  %v712_v20 = vmul.f32 %v1398_v17, %v1393_v16 }
  0x22   : > { %v773_v21 = vadd.f32 %v743_v52, %v696_v8  ;;  %v520_v22 = vadd.f32 %v492_v14, %v434_v53  ;;  %v570_v23 = vsel %vm564_vm1, %v568_v9, %v569_v10  ;;  %v667_v24 = vrot.slane %v634_v11, 1 }
  0x23   : > { %v668_v25 = vrot.slane %v635_v12, 1  ;;  %v744_v26 = vrot.slane %v711_v13, 2  ;;  %v745_v27 = vrot.slane %v712_v20, 2  ;;  %v788_v30 = vmul.f32 %v1415_v28, %v1400_v18 }
  0x24   : > { %v795_v31 = vadd.f32 %v787_v41, %v773_v21  ;;  %v598_v32 = vadd.f32 %v570_v23, %v520_v22  ;;  %v810_v33 = vmul.f32 %v1420_v29, %v1400_v18  ;;  %v811_v34 = vmul.f32 %v1420_v29, %v1402_v19 }
  0x25   : > { %v669_v37 = vsel %vm486_vm0, %v667_v24, %v668_v25  ;;  %v746_v39 = vsel %vm564_vm1, %v744_v26, %v745_v27  ;;  %v887_v40 = vmul.f32 %v1427_v38, %v1400_v18  ;;  %v888_v42 = vmul.f32 %v1427_v38, %v1402_v19 }
  0x26   : > { %v872_v41 = vadd.f32 %v842_v63, %v795_v31  ;;  %v620_v43 = vadd.f32 %v612_v7, %v598_v32  ;;  %v843_v44 = vrot.slane %v810_v33, 1  ;;  %v844_v45 = vrot.slane %v811_v34, 1  ;;  %v399_v32 = vld [vmem:[%s1373_s6 + $0x2c] sm:$0x1] }
  0x27   : > { %v920_v47 = vrot.slane %v887_v40, 2  ;;  %v921_v48 = vrot.slane %v888_v42, 2  ;;  %v1481_v49 = vunpack.c.l.bf16 %v396_v35  ;;  %v1483_v50 = vunpack.c.l.bf16 %v397_v36 }
  0x28   : > { %v949_v51 = vadd.f32 %v919_v5, %v872_v41  ;;  %v697_v52 = vadd.f32 %v669_v37, %v620_v43  ;;  %v845_v53 = vsel %vm486_vm0, %v843_v44, %v844_v45  ;;  %v435_v54 = vmul.f32 %v1357_v0, %v1391_v15 }
  0x29   : > { %v922_v55 = vsel %vm564_vm1, %v920_v47, %v921_v48  ;;  %v458_v56 = vmul.f32 %v1362_v1, %v1391_v15  ;;  %v459_v57 = vmul.f32 %v1362_v1, %v1393_v16  ;;  %v536_v58 = vmul.f32 %v1367_v2, %v1391_v15 }
  0x2a   : > { %v1496_v59 = vadd.f32 %v1479_v46, %v949_v51  ;;  %v774_v60 = vadd.f32 %v746_v39, %v697_v52  ;;  %v537_v61 = vmul.f32 %v1367_v2, %v1393_v16  ;;  %v613_v62 = vmul.f32 %v1378_v3, %v1400_v18 }
  0x2b   : > { %v493_v63 = vrot.slane %v458_v56, 1  ;;  %v494_v5 = vrot.slane %v459_v57, 1  ;;  %v571_v6 = vrot.slane %v536_v58, 2  ;;  %v636_v7 = vmul.f32 %v1383_v4, %v1400_v18 }
  0x2c   : > { %v1203_v8 = vmul.f32 -1.442695, %v1496_v59  ;;  %v796_v9 = vadd.f32 %v788_v30, %v774_v60  ;;  %v572_v15 = vrot.slane %v537_v61, 2  ;;  %v637_v10 = vmul.f32 %v1383_v4, %v1402_v19 }
  0x2d   : > { %v495_v11 = vsel %vm486_vm0, %v493_v63, %v494_v5  ;;  %v670_v16 = vrot.slane %v636_v7, 1  ;;  %v713_v14 = vmul.f32 %v1398_v17, %v1400_v18  ;;  %v714_v12 = vmul.f32 %v1398_v17, %v1402_v19 }
  0x2e   : > { %1245 = vpow2.f32 %v1203_v8  ;;  %v873_v13 = vadd.f32 %v845_v53, %v796_v9  ;;  %v521_v20 = vadd.f32 %v495_v11, %v435_v54  ;;  %v573_v21 = vsel %vm564_vm1, %v571_v6, %v572_v15 }
  0x2f   : > { %v671_v22 = vrot.slane %v637_v10, 1  ;;  %v747_v23 = vrot.slane %v713_v14, 2  ;;  %v748_v24 = vrot.slane %v714_v12, 2  ;;  %v789_v25 = vmul.f32 %v1415_v28, %v1481_v49 }
  0x30   : > { %v950_v26 = vadd.f32 %v922_v55, %v873_v13  ;;  %v599_v27 = vadd.f32 %v573_v21, %v521_v20  ;;  %v812_v30 = vmul.f32 %v1420_v29, %v1481_v49  ;;  %v813_v31 = vmul.f32 %v1420_v29, %v1483_v50 }
  0x31   : > { %v672_v33 = vsel %vm486_vm0, %v670_v16, %v671_v22  ;;  %v749_v34 = vsel %vm564_vm1, %v747_v23, %v748_v24  ;;  %v889_v36 = vmul.f32 %v1427_v38, %v1481_v49  ;;  %v890_v37 = vmul.f32 %v1427_v38, %v1483_v50  ;;  %v1561_v23 = vld [vmem:[%s1373_s6 + $0x30] ss:$8 sps:$4 sm:$0xff]  }
  0x32   : > { %v1527_v39 = vadd.f32 %v1479_v46, %v950_v26  ;;  %v621_v40 = vadd.f32 %v613_v62, %v599_v27  ;;  %v846_v42 = vrot.slane %v812_v30, 1  ;;  %v847_v41 = vrot.slane %v813_v31, 1  ;;  %v401_v30 = vld [vmem:[%s1373_s6 + $0x34] sm:$0x1] }
  0x33   : > { %v923_v43 = vrot.slane %v889_v36, 2  ;;  %v924_v44 = vrot.slane %v890_v37, 2  ;;  %v1529_v45 = vunpack.c.h.bf16 %v396_v35  ;;  %v1531_v47 = vunpack.c.l.bf16 %v399_v32 }
  0x34   : > { %v1204_v48 = vmul.f32 -1.442695, %v1527_v39  ;;  %v698_v51 = vadd.f32 %v672_v33, %v621_v40  ;;  %v848_v52 = vsel %vm486_vm0, %v846_v42, %v847_v41  ;;  %v436_v53 = vmul.f32 %v1357_v0, %v1400_v18 }
  0x35   : > { %v925_v54 = vsel %vm564_vm1, %v923_v43, %v924_v44  ;;  %v460_v55 = vmul.f32 %v1362_v1, %v1400_v18  ;;  %v461_v56 = vmul.f32 %v1362_v1, %v1402_v19  ;;  %v538_v35 = vmul.f32 %v1367_v2, %v1400_v18 }
  0x36   : > { %1247 = vpow2.f32 %v1204_v48  ;;  %v775_v57 = vadd.f32 %v749_v34, %v698_v51  ;;  %v539_v58 = vmul.f32 %v1367_v2, %v1402_v19  ;;  %v614_v60 = vmul.f32 %v1378_v3, %v1481_v49 }
  0x37   : > { %v496_v61 = vrot.slane %v460_v55, 1  ;;  %v497_v62 = vrot.slane %v461_v56, 1  ;;  %v574_v63 = vrot.slane %v538_v35, 2  ;;  %v638_v5 = vmul.f32 %v1383_v4, %v1481_v49 }
  0x38   : > { %v1246_v6 = vpop.eup %1245  ;;  %v797_v7 = vadd.f32 %v789_v25, %v775_v57  ;;  %v575_v8 = vrot.slane %v539_v58, 2  ;;  %v639_v18 = vmul.f32 %v1383_v4, %v1483_v50  ;;  %v715_v9 = vmul.f32 %v1398_v17, %v1481_v49 }
  0x39   : > { %v996_v19 = vadd.f32 1.0, %v1246_v6  ;;  %v498_v15 = vsel %vm486_vm0, %v496_v61, %v497_v62  ;;  %v673_v10 = vrot.slane %v638_v5, 1  ;;  %v716_v11 = vmul.f32 %v1398_v17, %v1483_v50 }
  0x3a   : > { %v874_v16 = vadd.f32 %v848_v52, %v797_v7  ;;  %v522_v14 = vadd.f32 %v498_v15, %v436_v53  ;;  %v576_v12 = vsel %vm564_vm1, %v574_v63, %v575_v8  ;;  %v674_v13 = vrot.slane %v639_v18, 1 }
  0x3b   : > { %1249 = vrcp.f32 %v996_v19  ;;  %v750_v20 = vrot.slane %v715_v9, 2  ;;  %v751_v21 = vrot.slane %v716_v11, 2  ;;  %v790_v22 = vmul.f32 %v1415_v28, %v1529_v45 }
  0x3c   : > { %v951_v24 = vadd.f32 %v925_v54, %v874_v16  ;;  %v600_v25 = vadd.f32 %v576_v12, %v522_v14  ;;  %v675_v26 = vsel %vm486_vm0, %v673_v10, %v674_v13  ;;  %v814_v27 = vmul.f32 %v1420_v29, %v1529_v45 }
  0x3d   : > { %v752_v31 = vsel %vm564_vm1, %v750_v20, %v751_v21  ;;  %v815_v32 = vmul.f32 %v1420_v29, %v1531_v47  ;;  %v891_v33 = vmul.f32 %v1427_v38, %v1529_v45  ;;  %v892_v34 = vmul.f32 %v1427_v38, %v1531_v47 }
  0x3e   : > { %v1575_v36 = vadd.f32 %v1479_v46, %v951_v24  ;;  %v622_v37 = vadd.f32 %v614_v60, %v600_v25  ;;  %v849_v40 = vrot.slane %v814_v27, 1  ;;  %v1578_v42 = vunpack.c.l.bf16 %v1561_v23  ;;  %v403_v27 = vld [vmem:[%s1373_s6 + $0x3c] sm:$0x1] }
  0x3f   : > { %v850_v41 = vrot.slane %v815_v32, 1  ;;  %v926_v43 = vrot.slane %v891_v33, 2  ;;  %v927_v44 = vrot.slane %v892_v34, 2  ;;  %v1580_v48 = vunpack.c.l.bf16 %v401_v30 }
  0x40   : > { %v1248_v51 = vpop.eup %1247  ;;  %v1205_v52 = vmul.f32 -1.442695, %v1575_v36  ;;  %v699_v53 = vadd.f32 %v675_v26, %v622_v37  ;;  %v437_v54 = vmul.f32 %v1357_v0, %v1481_v49  ;;  %v462_v55 = vmul.f32 %v1362_v1, %v1481_v49 }
  0x41   : > { %v997_v56 = vadd.f32 1.0, %v1248_v51  ;;  %v851_v35 = vsel %vm486_vm0, %v849_v40, %v850_v41  ;;  %v928_v57 = vsel %vm564_vm1, %v926_v43, %v927_v44  ;;  %v463_v58 = vmul.f32 %v1362_v1, %v1483_v50 }
  0x42   : > { %1251 = vpow2.f32 %v1205_v52  ;;  %v776_v60 = vadd.f32 %v752_v31, %v699_v53  ;;  %v499_v61 = vrot.slane %v462_v55, 1  ;;  %v540_v62 = vmul.f32 %v1367_v2, %v1481_v49 }
  0x43   : > { %1253 = vrcp.f32 %v997_v56  ;;  %v500_v63 = vrot.slane %v463_v58, 1  ;;  %v541_v5 = vmul.f32 %v1367_v2, %v1483_v50  ;;  %v615_v6 = vmul.f32 %v1378_v3, %v1529_v45 }
  0x44   : > { %v798_v7 = vadd.f32 %v790_v22, %v776_v60  ;;  %v577_v8 = vrot.slane %v540_v62, 2  ;;  %v640_v18 = vmul.f32 %v1383_v4, %v1529_v45  ;;  %v641_v9 = vmul.f32 %v1383_v4, %v1531_v47 }
  0x45   : > { %v1250_v19 = vpop.eup %1249  ;;  %v501_v49 = vsel %vm486_vm0, %v499_v61, %v500_v63  ;;  %v578_v15 = vrot.slane %v541_v5, 2  ;;  %v717_v50 = vmul.f32 %v1398_v17, %v1529_v45  ;;  %v718_v10 = vmul.f32 %v1398_v17, %v1531_v47 }
  0x46   : > { %v1020_v11 = vmul.f32 %v1250_v19, %v1496_v59  ;;  %v875_v16 = vadd.f32 %v851_v35, %v798_v7  ;;  %v523_v14 = vadd.f32 %v501_v49, %v437_v54  ;;  %v676_v12 = vrot.slane %v640_v18, 1 }
  0x47   : > { %v579_v13 = vsel %vm564_vm1, %v577_v8, %v578_v15  ;;  %v677_v20 = vrot.slane %v641_v9, 1  ;;  %v753_v21 = vrot.slane %v717_v50, 2  ;;  %v754_v22 = vrot.slane %v718_v10, 2 }
  0x48   : > { %v1028_v24 = vpack.c.bf16 %v1020_v11, %v1020_v11  ;;  %v952_v25 = vadd.f32 %v928_v57, %v875_v16  ;;  %v601_v26 = vadd.f32 %v579_v13, %v523_v14  ;;  %v791_v59 = vmul.f32 %v1415_v28, %v1578_v42 }
  0x49   : > { %v678_v30 = vsel %vm486_vm0, %v676_v12, %v677_v20  ;;  %v755_v31 = vsel %vm564_vm1, %v753_v21, %v754_v22  ;;  %v816_v32 = vmul.f32 %v1420_v29, %v1578_v42  ;;  %v817_v33 = vmul.f32 %v1420_v29, %v1580_v48 }
  0x4a   : > { %1037 = vst.msk [vmem:[%s1611_s28] sm:$0xf] %vm1036_vm2, %v1028_v24  ;;  %v1626_v34 = vadd.f32 %v1479_v46, %v952_v25  ;;  %v623_v37 = vadd.f32 %v615_v6, %v601_v26  ;;  %v893_v40 = vmul.f32 %v1427_v38, %v1578_v42  ;;  %v894_v41 = vmul.f32 %v1427_v38, %v1580_v48  ;;  %v404_v26 = vld [vmem:[%s362_s7] sm:$0xf] }
  0x4b   : > { %v852_v43 = vrot.slane %v816_v32, 1  ;;  %v853_v44 = vrot.slane %v817_v33, 1  ;;  %v1633_v51 = vunpack.c.h.bf16 %v1561_v23  ;;  %v1635_v52 = vunpack.c.l.bf16 %v403_v27 }
  0x4c   : > { %v1252_v53 = vpop.eup %1251  ;;  %v1206_v54 = vmul.f32 -1.442695, %v1626_v34  ;;  %v700_v55 = vadd.f32 %v678_v30, %v623_v37  ;;  %v929_v56 = vrot.slane %v893_v40, 2  ;;  %v930_v35 = vrot.slane %v894_v41, 2  ;;  %v405_v41 = vld [vmem:[%s362_s7 + $0x4] sm:$0x1] }
  0x4d   : > { %v1254_v57 = vpop.eup %1253  ;;  %v998_v58 = vadd.f32 1.0, %v1252_v53  ;;  %v854_v60 = vsel %vm486_vm0, %v852_v43, %v853_v44  ;;  %v438_v61 = vmul.f32 %v1357_v0, %v1529_v45  ;;  %v464_v23 = vmul.f32 %v1362_v1, %v1529_v45 }
  0x4e   : > { %v1021_v62 = vmul.f32 %v1254_v57, %v1527_v39  ;;  %1255 = vpow2.f32 %v1206_v54  ;;  %v777_v63 = vadd.f32 %v755_v31, %v700_v55  ;;  %v931_v5 = vsel %vm564_vm1, %v929_v56, %v930_v35 }
  0x4f   : > { %1257 = vrcp.f32 %v998_v58  ;;  %v465_v6 = vmul.f32 %v1362_v1, %v1531_v47  ;;  %v502_v7 = vrot.slane %v464_v23, 1  ;;  %v542_v8 = vmul.f32 %v1367_v2, %v1529_v45 }
  0x50   : > { %v1029_v18 = vpack.c.bf16 %v1021_v62, %v1021_v62  ;;  %v799_v9 = vadd.f32 %v791_v59, %v777_v63  ;;  %v543_v19 = vmul.f32 %v1367_v2, %v1531_v47  ;;  %v616_v39 = vmul.f32 %v1378_v3, %v1578_v42 }
  0x51   : > { %v503_v49 = vrot.slane %v465_v6, 1  ;;  %v580_v15 = vrot.slane %v542_v8, 2  ;;  %v642_v50 = vmul.f32 %v1383_v4, %v1578_v42  ;;  %v643_v10 = vmul.f32 %v1383_v4, %v1580_v48 }
  0x52   : > { %1038 = vst.msk [vmem:[%s1611_s28 + $0x4] sm:$0xf] %vm1036_vm2, %v1029_v18  ;;  %v876_v45 = vadd.f32 %v854_v60, %v799_v9  ;;  %v581_v11 = vrot.slane %v543_v19, 2  ;;  %v719_v47 = vmul.f32 %v1398_v17, %v1578_v42  ;;  %v720_v16 = vmul.f32 %v1398_v17, %v1580_v48 }
  0x53   : > { %v504_v14 = vsel %vm486_vm0, %v502_v7, %v503_v49  ;;  %v679_v12 = vrot.slane %v642_v50, 1  ;;  %v680_v13 = vrot.slane %v643_v10, 1  ;;  %v792_v20 = vmul.f32 %v1415_v28, %v1633_v51 }
  0x54   : > { %v953_v21 = vadd.f32 %v931_v5, %v876_v45  ;;  %v524_v22 = vadd.f32 %v504_v14, %v438_v61  ;;  %v582_v24 = vsel %vm564_vm1, %v580_v15, %v581_v11  ;;  %v756_v25 = vrot.slane %v719_v47, 2 }
  0x55   : > { %v681_v59 = vsel %vm486_vm0, %v679_v12, %v680_v13  ;;  %v757_v27 = vrot.slane %v720_v16, 2  ;;  %v818_v30 = vmul.f32 %v1420_v29, %v1633_v51  ;;  %v819_v31 = vmul.f32 %v1420_v29, %v1635_v52 }
  0x56   : > { %v1677_v32 = vadd.f32 %v1479_v46, %v953_v21  ;;  %v602_v33 = vadd.f32 %v582_v24, %v524_v22  ;;  %v895_v37 = vmul.f32 %v1427_v38, %v1633_v51  ;;  %v896_v40 = vmul.f32 %v1427_v38, %v1635_v52 }
  0x57   : > { %v758_v43 = vsel %vm564_vm1, %v756_v25, %v757_v27  ;;  %v855_v44 = vrot.slane %v818_v30, 1  ;;  %v856_v53 = vrot.slane %v819_v31, 1  ;;  %v1684_v54 = vunpack.c.l.bf16 %v404_v26  ;;  %v406_v30 = vld [vmem:[%s375_s10] sm:$0xf] }
  0x58   : > { %v1256_v55 = vpop.eup %1255  ;;  %v1207_v56 = vmul.f32 -1.442695, %v1677_v32  ;;  %v624_v35 = vadd.f32 %v616_v39, %v602_v33  ;;  %v932_v57 = vrot.slane %v895_v37, 2  ;;  %v933_v58 = vrot.slane %v896_v40, 2 }
  0x59   : > { %v1258_v60 = vpop.eup %1257  ;;  %v999_v61 = vadd.f32 1.0, %v1256_v55  ;;  %v857_v23 = vsel %vm486_vm0, %v855_v44, %v856_v53  ;;  %v1688_v62 = vunpack.c.l.bf16 %v405_v41  ;;  %v439_v63 = vmul.f32 %v1357_v0, %v1578_v42  ;;  %v407_v41 = vld [vmem:[%s375_s10 + $0x4] sm:$0x1] }
  0x5a   : > { %v1022_v5 = vmul.f32 %v1258_v60, %v1575_v36  ;;  %1259 = vpow2.f32 %v1207_v56  ;;  %v701_v6 = vadd.f32 %v681_v59, %v624_v35  ;;  %v934_v7 = vsel %vm564_vm1, %v932_v57, %v933_v58 }
  0x5b   : > { %1261 = vrcp.f32 %v999_v61  ;;  %v466_v8 = vmul.f32 %v1362_v1, %v1578_v42  ;;  %v467_v18 = vmul.f32 %v1362_v1, %v1580_v48  ;;  %v544_v9 = vmul.f32 %v1367_v2, %v1578_v42 }
  0x5c   : > { %v1030_v19 = vpack.c.bf16 %v1022_v5, %v1022_v5  ;;  %v778_v39 = vadd.f32 %v758_v43, %v701_v6  ;;  %v545_v36 = vmul.f32 %v1367_v2, %v1580_v48  ;;  %v617_v49 = vmul.f32 %v1378_v3, %v1633_v51 }
  0x5d   : > { %v505_v15 = vrot.slane %v466_v8, 1  ;;  %v506_v50 = vrot.slane %v467_v18, 1  ;;  %v583_v10 = vrot.slane %v544_v9, 2  ;;  %v644_v45 = vmul.f32 %v1383_v4, %v1633_v51 }
  0x5e   : > { %1039 = vst.msk [vmem:[%s1611_s28 + $0x8] sm:$0xf] %vm1036_vm2, %v1030_v19  ;;  %v800_v11 = vadd.f32 %v792_v20, %v778_v39  ;;  %v584_v47 = vrot.slane %v545_v36, 2  ;;  %v645_v42 = vmul.f32 %v1383_v4, %v1635_v52  ;;  %v721_v16 = vmul.f32 %v1398_v17, %v1633_v51 }
  0x5f   : > { %v507_v48 = vsel %vm486_vm0, %v505_v15, %v506_v50  ;;  %v682_v14 = vrot.slane %v644_v45, 1  ;;  %v722_v12 = vmul.f32 %v1398_v17, %v1635_v52  ;;  %v793_v13 = vmul.f32 %v1415_v28, %v1684_v54 }
  0x60   : > { %v877_v20 = vadd.f32 %v857_v23, %v800_v11  ;;  %v525_v21 = vadd.f32 %v507_v48, %v439_v63  ;;  %v585_v22 = vsel %vm564_vm1, %v583_v10, %v584_v47  ;;  %v683_v24 = vrot.slane %v645_v42, 1 }
  0x61   : > { %v759_v25 = vrot.slane %v721_v16, 2  ;;  %v760_v26 = vrot.slane %v722_v12, 2  ;;  %v820_v59 = vmul.f32 %v1420_v29, %v1684_v54  ;;  %v821_v27 = vmul.f32 %v1420_v29, %v1688_v62 }
  0x62   : > { %v954_v31 = vadd.f32 %v934_v7, %v877_v20  ;;  %v603_v33 = vadd.f32 %v585_v22, %v525_v21  ;;  %v684_v37 = vsel %vm486_vm0, %v682_v14, %v683_v24  ;;  %v897_v40 = vmul.f32 %v1427_v38, %v1684_v54 }
  0x63   : > { %v761_v43 = vsel %vm564_vm1, %v759_v25, %v760_v26  ;;  %v858_v44 = vrot.slane %v820_v59, 1  ;;  %v859_v53 = vrot.slane %v821_v27, 1  ;;  %v898_v55 = vmul.f32 %v1427_v38, %v1688_v62 }
  0x64   : > { %v1260_v56 = vpop.eup %1259  ;;  %v1733_v35 = vadd.f32 %v1479_v46, %v954_v31  ;;  %v625_v57 = vadd.f32 %v617_v49, %v603_v33  ;;  %v935_v58 = vrot.slane %v897_v40, 2  ;;  %v426_v60 = vunpack.c.l.bf16 %v406_v30 }
  0x65   : > { %v1262_v61 = vpop.eup %1261  ;;  %v1000_v23 = vadd.f32 1.0, %v1260_v56  ;;  %v860_v63 = vsel %vm486_vm0, %v858_v44, %v859_v53  ;;  %v936_v5 = vrot.slane %v898_v55, 2  ;;  %v427_v6 = vunpack.c.l.bf16 %v407_v41 }
  0x66   : > { %v1023_v7 = vmul.f32 %v1262_v61, %v1626_v34  ;;  %v1208_v8 = vmul.f32 -1.442695, %v1733_v35  ;;  %v702_v18 = vadd.f32 %v684_v37, %v625_v57  ;;  %v440_v9 = vmul.f32 %v1357_v0, %v1633_v51 }
  0x67   : > { %1263 = vrcp.f32 %v1000_v23  ;;  %v937_v19 = vsel %vm564_vm1, %v935_v58, %v936_v5  ;;  %v468_v39 = vmul.f32 %v1362_v1, %v1633_v51  ;;  %v469_v36 = vmul.f32 %v1362_v1, %v1635_v52 }
  0x68   : > { %v1031_v49 = vpack.c.bf16 %v1023_v7, %v1023_v7  ;;  %1265 = vpow2.f32 %v1208_v8  ;;  %v779_v15 = vadd.f32 %v761_v43, %v702_v18  ;;  %v546_v34 = vmul.f32 %v1367_v2, %v1633_v51 }
  0x69   : > { %v508_v50 = vrot.slane %v468_v39, 1  ;;  %v509_v10 = vrot.slane %v469_v36, 1  ;;  %v547_v0 = vmul.f32 %v1367_v2, %v1635_v52  ;;  %v618_v45 = vmul.f32 %v1378_v3, %v1684_v54 }
  0x6a   : > { %1040 = vst.msk [vmem:[%s1611_s28 + $0xc] sm:$0xf] %vm1036_vm2, %v1031_v49  ;;  %v801_v11 = vadd.f32 %v793_v13, %v779_v15  ;;  %v586_v47 = vrot.slane %v546_v34, 2  ;;  %v646_v1 = vmul.f32 %v1383_v4, %v1684_v54  ;;  %v647_v42 = vmul.f32 %v1383_v4, %v1688_v62 }
  0x6b   : > { %v510_v51 = vsel %vm486_vm0, %v508_v50, %v509_v10  ;;  %v587_v16 = vrot.slane %v547_v0, 2  ;;  %v723_v48 = vmul.f32 %v1398_v17, %v1684_v54  ;;  %v724_v2 = vmul.f32 %v1398_v17, %v1688_v62 }
  0x6c   : > { %v878_v3 = vadd.f32 %v860_v63, %v801_v11  ;;  %v526_v52 = vadd.f32 %v510_v51, %v440_v9  ;;  %v685_v14 = vrot.slane %v646_v1, 1  ;;  %v686_v12 = vrot.slane %v647_v42, 1 }
  0x6d   : > { %v588_v13 = vsel %vm564_vm1, %v586_v47, %v587_v16  ;;  %v762_v20 = vrot.slane %v723_v48, 2  ;;  %v763_v21 = vrot.slane %v724_v2, 2  ;;  %v822_v4 = vmul.f32 %v1420_v29, %v426_v60 }
  0x6e   : > { %v955_v22 = vadd.f32 %v937_v19, %v878_v3  ;;  %v604_v24 = vadd.f32 %v588_v13, %v526_v52  ;;  %v687_v25 = vsel %vm486_vm0, %v685_v14, %v686_v12  ;;  %v823_v26 = vmul.f32 %v1420_v29, %v427_v6 }
  0x6f   : > { %v899_v54 = vmul.f32 %v1427_v38, %v426_v60  ;;  %v900_v17 = vmul.f32 %v1427_v38, %v427_v6  ;;  %v764_v30 = vsel %vm564_vm1, %v762_v20, %v763_v21  ;;  %v861_v31 = vrot.slane %v822_v4, 1 }
  0x70   : > { %v970_v62 = vadd.f32 %v1479_v46, %v955_v22  ;;  %v626_v59 = vadd.f32 %v618_v45, %v604_v24  ;;  %v862_v33 = vrot.slane %v823_v26, 1  ;;  %v794_v29 = vmul.f32 %v1415_v28, %v426_v60 }
  0x71   : > { %v1264_v27 = vpop.eup %1263  ;;  %v938_v53 = vrot.slane %v899_v54, 2  ;;  %v939_v55 = vrot.slane %v900_v17, 2 }
  0x72   : > { %v1266_v37 = vpop.eup %1265  ;;  %v1024_v40 = vmul.f32 %v1264_v27, %v1677_v32  ;;  %v1209_v41 = vmul.f32 -1.442695, %v970_v62  ;;  %v703_v43 = vadd.f32 %v687_v25, %v626_v59  ;;  %v863_v57 = vsel %vm486_vm0, %v861_v31, %v862_v33 }
  0x73   : > { %v1001_v44 = vadd.f32 1.0, %v1266_v37  ;;  %v940_v61 = vsel %vm564_vm1, %v938_v53, %v939_v55 }
  0x74   : > { %v1032_v38 = vpack.c.bf16 %v1024_v40, %v1024_v40  ;;  %1267 = vpow2.f32 %v1209_v41  ;;  %v780_v56 = vadd.f32 %v764_v30, %v703_v43 }
  0x75   : > { %1269 = vrcp.f32 %v1001_v44 }
  0x76   : > { %1041 = vst.msk [vmem:[%s1611_s28 + $0x10] sm:$0xf] %vm1036_vm2, %v1032_v38  ;;  %v802_v58 = vadd.f32 %v794_v29, %v780_v56 }
  0x78   : > { %v879_v32 = vadd.f32 %v863_v57, %v802_v58 }
  0x7a   : > { %v956_v23 = vadd.f32 %v940_v61, %v879_v32 }
  0x7c   : > { %v971_v63 = vadd.f32 %v1479_v46, %v956_v23 }
  0x7e   : > { %v1268_v28 = vpop.eup %1267  ;;  %v1210_v60 = vmul.f32 -1.442695, %v971_v63 }
  0x7f   : > { %v1270_v5 = vpop.eup %1269  ;;  %v1002_v6 = vadd.f32 1.0, %v1268_v28 }
  0x80   : > { %v1025_v7 = vmul.f32 %v1270_v5, %v1733_v35  ;;  %1271 = vpow2.f32 %v1210_v60 }
  0x81   : > { %1273 = vrcp.f32 %v1002_v6 }
  0x82   : > { %v1033_v8 = vpack.c.bf16 %v1025_v7, %v1025_v7 }
  0x84   : > { %1042 = vst.msk [vmem:[%s1611_s28 + $0x14] sm:$0xf] %vm1036_vm2, %v1033_v8 }
  0x8a   : > { %v1272_v18 = vpop.eup %1271 }
  0x8b   : > { %v1274_v9 = vpop.eup %1273  ;;  %v1003_v19 = vadd.f32 1.0, %v1272_v18 }
  0x8c   : > { %v1026_v39 = vmul.f32 %v1274_v9, %v970_v62 }
  0x8d   : > { %1275 = vrcp.f32 %v1003_v19 }
  0x8e   : > { %v1034_v36 = vpack.c.bf16 %v1026_v39, %v1026_v39 }
  0x90   : > { %1043 = vst.msk [vmem:[%s1611_s28 + $0x18] sm:$0xf] %vm1036_vm2, %v1034_v36 }
  0x97   : > { %v1276_v46 = vpop.eup %1275 }
  0x98   : > { %v1027_v49 = vmul.f32 %v1276_v46, %v971_v63 }
  0x9a   : > { %v1035_v15 = vpack.c.bf16 %v1027_v49, %v1027_v49 }
  0x9c   : > { %1044 = vst.msk [vmem:[%s1611_s28 + $0x1c] sm:$0xf] %vm1036_vm2, %v1035_v15 }
  0x9d PF: > { %s15_s20 = sadd.s32 1, %s1299_s20   ;;  %s1799_s18 = smov %s1295_s19 }
  0x9e   : > { %p12_p5 = scmp.ge.s32.totalorder %s15_s20, 4   ;;  %s1800_s19 = smov %s1802_s21 }
  0xa0   :  { %14 = sbr.rel (!%p12_p5) target bundleno = 2 (0x2), region = 78 }

// kernel: _lambda_.13
= control target key start
LH: loop header
LB: loop body
LE: loop exit
PB: predicated region body
PF: predicated region fallthrough
CT: control target
= control target key end

     0   :  { %vm38_vm0 = vcmask 523264   ;;  %s1285_s0 = inlined_call_operand.vmem [shape: f32[128,64], index: 0, kind: input, shape index: {}]   ;;  %s1286_s1 = inlined_call_operand.vmem [shape: f32[128,64], index: 1, kind: input, shape index: {}]   ;;  %s1287_s2 = inlined_call_operand.vmem [shape: f32[1,64], index: 2, kind: input, shape index: {}]   ;;  %s1288_s3 = inlined_call_operand.vmem [shape: f32[1,64], index: 3, kind: input, shape index: {}]   ;;  %s1289_s4 = inlined_call_operand.vmem [shape: bf16[64,128], index: 4, kind: input, shape index: {}]   ;;  %s1290_s5 = inlined_call_operand.hbm [shape: f32[128,128], index: 5, kind: output, shape index: {}]  }
   0x1   :  { %v22_v0 = vld [vmem:[%s1285_s0] sm:$0xff]  ;;  %v23_v2 = vld [vmem:[%s1285_s0 + $0x8] sm:$0xff]  ;;  %v882_v6 = vld [vmem:[%s1285_s0 + $0x10] sm:$0xff] }
   0x2   :  { %v30_v1 = vld [vmem:[%s1285_s0 + $0x40] sm:$0xff]  ;;  %v39_v3 = vsel %vm38_vm0, %v22_v0, 0.0  ;;  %v31_v5 = vld [vmem:[%s1285_s0 + $0x48] sm:$0xff]  ;;  %v42_v7 = vsel %vm38_vm0, %v23_v2, 0.0  ;;  %v25_v9 = vld [vmem:[%s1285_s0 + $0x18] sm:$0xff]  ;;  %v45_v10 = vsel %vm38_vm0, %v882_v6, 0.0 }
   0x3   :  { %v63_v4 = vsel %vm38_vm0, %v30_v1, 0.0  ;;  %40 = vadd.xlane.f32.xlu0 %v39_v3  ;;  %v66_v8 = vsel %vm38_vm0, %v31_v5, 0.0  ;;  %v48_v11 = vsel %vm38_vm0, %v25_v9, 0.0  ;;  %v895_v12 = vld [vmem:[%s1285_s0 + $0x50] sm:$0xff]  ;;  %v900_v13 = vld [vmem:[%s1285_s0 + $0x58] sm:$0xff] }
   0x4   :  { %64 = vadd.xlane.f32.xlu1 %v63_v4 }
   0x7   :  { %43 = vadd.xlane.f32.xlu0 %v42_v7 }
   0x8   :  { %67 = vadd.xlane.f32.xlu1 %v66_v8 }
   0x9   :  { %10 = vsyncpa [#allocation3], 0  ;;  %v69_v14 = vsel %vm38_vm0, %v895_v12, 0.0  ;;  %v72_v15 = vsel %vm38_vm0, %v900_v13, 0.0  ;;  %v909_v16 = vld [vmem:[%s1285_s0 + $0x20] sm:$0xff]  ;;  %v914_v17 = vld [vmem:[%s1285_s0 + $0x28] sm:$0xff] }
   0xa   :  { %v51_v18 = vsel %vm38_vm0, %v909_v16, 0.0  ;;  %v54_v19 = vsel %vm38_vm0, %v914_v17, 0.0  ;;  %v923_v20 = vld [vmem:[%s1285_s0 + $0x60] sm:$0xff]  ;;  %v928_v21 = vld [vmem:[%s1285_s0 + $0x68] sm:$0xff]  ;;  %v937_v24 = vld [vmem:[%s1285_s0 + $0x30] sm:$0xff] }
   0xb   :  { %46 = vadd.xlane.f32.xlu0 %v45_v10  ;;  %v75_v22 = vsel %vm38_vm0, %v923_v20, 0.0  ;;  %v78_v23 = vsel %vm38_vm0, %v928_v21, 0.0  ;;  %v942_v25 = vld [vmem:[%s1285_s0 + $0x38] sm:$0xff]  ;;  %v57_v26 = vsel %vm38_vm0, %v937_v24, 0.0  ;;  %v951_v28 = vld [vmem:[%s1285_s0 + $0x70] sm:$0xff] }
   0xc   :  { %49 = vadd.xlane.f32.xlu1 %v48_v11  ;;  %v60_v27 = vsel %vm38_vm0, %v942_v25, 0.0  ;;  %v956_v29 = vld [vmem:[%s1285_s0 + $0x78] sm:$0xff]  ;;  %v81_v30 = vsel %vm38_vm0, %v951_v28, 0.0 }
   0xd   :  { %v84_v31 = vsel %vm38_vm0, %v956_v29, 0.0 }
   0xf   :  { %70 = vadd.xlane.f32.xlu0 %v69_v14 }
  0x10   :  { %73 = vadd.xlane.f32.xlu1 %v72_v15 }
  0x13   :  { %52 = vadd.xlane.f32.xlu0 %v51_v18 }
  0x14   :  { %55 = vadd.xlane.f32.xlu1 %v54_v19 }
  0x17   :  { %76 = vadd.xlane.f32.xlu0 %v75_v22 }
  0x18   :  { %79 = vadd.xlane.f32.xlu1 %v78_v23 }
  0x1b   :  { %58 = vadd.xlane.f32.xlu0 %v57_v26 }
  0x1c   :  { %61 = vadd.xlane.f32.xlu1 %v60_v27 }
  0x1f   :  { %82 = vadd.xlane.f32.xlu0 %v81_v30 }
  0x20   :  { %85 = vadd.xlane.f32.xlu1 %v84_v31 }
  0x90   :  { %v41_v32 = vpop.xlane.xlu0 %40 }
  0x91   :  { %v65_v33 = vpop.xlane.xlu1 %64  ;;  %v88_v34 = vmul.f32 0.015625, %v41_v32 }
  0x92   :  { %v96_v35 = vmul.f32 0.015625, %v65_v33 }
  0x93   :  { %v962_v36 = vsub.f32 %v22_v0, %v88_v34 }
  0x94   :  { %v964_v37 = vsub.f32 %v30_v1, %v96_v35  ;;  %v44_v38 = vpop.xlane.xlu0 %43 }
  0x95   :  { %v68_v39 = vpop.xlane.xlu1 %67  ;;  %v89_v40 = vmul.f32 0.015625, %v44_v38  ;;  %v120_v42 = vmul.f32 %v962_v36, %v962_v36 }
  0x96   :  { %v97_v41 = vmul.f32 0.015625, %v68_v39  ;;  %v128_v43 = vmul.f32 %v964_v37, %v964_v37 }
  0x97   :  { %v970_v44 = vsub.f32 %v23_v2, %v89_v40  ;;  %v136_v46 = vsel %vm38_vm0, %v120_v42, 0.0 }
  0x98   :  { %v972_v45 = vsub.f32 %v31_v5, %v97_v41  ;;  %137 = vadd.xlane.f32.xlu0 %v136_v46  ;;  %v47_v47 = vpop.xlane.xlu0 %46  ;;  %v160_v49 = vsel %vm38_vm0, %v128_v43, 0.0 }
  0x99   :  { %v50_v48 = vpop.xlane.xlu1 %49  ;;  %v90_v50 = vmul.f32 0.015625, %v47_v47  ;;  %v121_v52 = vmul.f32 %v970_v44, %v970_v44 }
  0x9a   :  { %v91_v51 = vmul.f32 0.015625, %v50_v48  ;;  %v129_v53 = vmul.f32 %v972_v45, %v972_v45 }
  0x9b   :  { %v981_v54 = vsub.f32 %v882_v6, %v90_v50  ;;  %v139_v56 = vsel %vm38_vm0, %v121_v52, 0.0 }
  0x9c   :  { %v983_v55 = vsub.f32 %v25_v9, %v91_v51  ;;  %161 = vadd.xlane.f32.xlu0 %v160_v49  ;;  %140 = vadd.xlane.f32.xlu1 %v139_v56  ;;  %v71_v57 = vpop.xlane.xlu0 %70  ;;  %v163_v59 = vsel %vm38_vm0, %v129_v53, 0.0  ;;  %v709_v53 = vld [vmem:[%s1289_s4 + $0x8] sm:$0xff]   ;;  %v710_v56 = vld [vmem:[%s1289_s4 + $0x10] sm:$0xff]  }
  0x9d   :  { %v74_v58 = vpop.xlane.xlu1 %73  ;;  %v98_v60 = vmul.f32 0.015625, %v71_v57  ;;  %v122_v62 = vmul.f32 %v981_v54, %v981_v54  ;;  %v711_v57 = vld [vmem:[%s1289_s4 + $0x18] sm:$0xff]  }
  0x9e   :  { %v99_v61 = vmul.f32 0.015625, %v74_v58  ;;  %v123_v63 = vmul.f32 %v983_v55, %v983_v55  ;;  %v1068_v58 = vld [vmem:[%s1286_s1] sm:$0xff] }
  0x9f   :  { %v992_v0 = vsub.f32 %v895_v12, %v98_v60  ;;  %v142_v2 = vsel %vm38_vm0, %v122_v62, 0.0  ;;  %v633_v60 = vmul.f32 -1.442695, %v1068_v58 }
  0xa0   :  { %v995_v1 = vsub.f32 %v900_v13, %v99_v61  ;;  %164 = vadd.xlane.f32.xlu1 %v163_v59  ;;  %143 = vadd.xlane.f32.xlu0 %v142_v2  ;;  %v53_v3 = vpop.xlane.xlu0 %52  ;;  %v145_v5 = vsel %vm38_vm0, %v123_v63, 0.0  ;;  %v1073_v59 = vld [vmem:[%s1286_s1 + $0x8] sm:$0xff]  ;;  %v1079_v61 = vld [vmem:[%s1286_s1 + $0x40] sm:$0xff] }
  0xa1   :  { %v56_v4 = vpop.xlane.xlu1 %55  ;;  %v92_v6 = vmul.f32 0.015625, %v53_v3  ;;  %v130_v8 = vmul.f32 %v992_v0, %v992_v0  ;;  %v634_v62 = vmul.f32 -1.442695, %v1073_v59  ;;  %v1085_v63 = vld [vmem:[%s1286_s1 + $0x48] sm:$0xff]  ;;  %712 = vpow2.f32 %v633_v60  ;;  %v1091_v3 = vld [vmem:[%s1286_s1 + $0x10] sm:$0xff] }
  0xa2   :  { %v93_v7 = vmul.f32 0.015625, %v56_v4  ;;  %v131_v9 = vmul.f32 %v995_v1, %v995_v1  ;;  %v641_v2 = vmul.f32 -1.442695, %v1079_v61  ;;  %v642_v4 = vmul.f32 -1.442695, %v1085_v63 }
  0xa3   :  { %v1004_v10 = vsub.f32 %v909_v16, %v92_v6  ;;  %v166_v12 = vsel %vm38_vm0, %v130_v8, 0.0  ;;  %714 = vpow2.f32 %v634_v62  ;;  %v635_v6 = vmul.f32 -1.442695, %v1091_v3 }
  0xa4   :  { %v1007_v11 = vsub.f32 %v914_v17, %v93_v7  ;;  %146 = vadd.xlane.f32.xlu1 %v145_v5  ;;  %167 = vadd.xlane.f32.xlu0 %v166_v12  ;;  %v77_v13 = vpop.xlane.xlu0 %76  ;;  %v169_v15 = vsel %vm38_vm0, %v131_v9, 0.0  ;;  %v1097_v5 = vld [vmem:[%s1286_s1 + $0x18] sm:$0xff]  ;;  %716 = vpow2.f32 %v641_v2  ;;  %v1103_v7 = vld [vmem:[%s1286_s1 + $0x50] sm:$0xff] }
  0xa5   :  { %v80_v14 = vpop.xlane.xlu1 %79  ;;  %v100_v18 = vmul.f32 0.015625, %v77_v13  ;;  %v124_v22 = vmul.f32 %v1004_v10, %v1004_v10  ;;  %718 = vpow2.f32 %v642_v4  ;;  %v636_v8 = vmul.f32 -1.442695, %v1097_v5  ;;  %v1109_v9 = vld [vmem:[%s1286_s1 + $0x58] sm:$0xff] }
  0xa6   :  { %v101_v19 = vmul.f32 0.015625, %v80_v14  ;;  %v125_v16 = vmul.f32 %v1007_v11, %v1007_v11  ;;  %720 = vpow2.f32 %v635_v6  ;;  %v643_v12 = vmul.f32 -1.442695, %v1103_v7 }
  0xa7   :  { %v1016_v23 = vsub.f32 %v923_v20, %v100_v18  ;;  %v148_v26 = vsel %vm38_vm0, %v124_v22, 0.0  ;;  %722 = vpow2.f32 %v636_v8  ;;  %v644_v14 = vmul.f32 -1.442695, %v1109_v9  ;;  %v1121_v18 = vld [vmem:[%s1286_s1 + $0x28] sm:$0xff] }
  0xa8   :  { %v1019_v17 = vsub.f32 %v928_v21, %v101_v19  ;;  %170 = vadd.xlane.f32.xlu1 %v169_v15  ;;  %149 = vadd.xlane.f32.xlu0 %v148_v26  ;;  %v59_v27 = vpop.xlane.xlu0 %58  ;;  %v151_v31 = vsel %vm38_vm0, %v125_v16, 0.0  ;;  %724 = vpow2.f32 %v643_v12  ;;  %v1116_v15 = vld [vmem:[%s1286_s1 + $0x20] sm:$0xff] }
  0xa9   :  { %v62_v30 = vpop.xlane.xlu1 %61  ;;  %v94_v32 = vmul.f32 0.015625, %v59_v27  ;;  %v132_v34 = vmul.f32 %v1016_v23, %v1016_v23  ;;  %726 = vpow2.f32 %v644_v14  ;;  %v637_v26 = vmul.f32 -1.442695, %v1116_v15 }
  0xaa   :  { %v95_v33 = vmul.f32 0.015625, %v62_v30  ;;  %v133_v20 = vmul.f32 %v1019_v17, %v1019_v17  ;;  %v638_v27 = vmul.f32 -1.442695, %v1121_v18  ;;  %v1128_v30 = vld [vmem:[%s1286_s1 + $0x60] sm:$0xff] }
  0xab   :  { %v1028_v35 = vsub.f32 %v937_v24, %v94_v32  ;;  %v172_v38 = vsel %vm38_vm0, %v132_v34, 0.0  ;;  %v713_v13 = vpop.eup %712 }
  0xac   :  { %v1031_v21 = vsub.f32 %v942_v25, %v95_v33  ;;  %152 = vadd.xlane.f32.xlu1 %v151_v31  ;;  %173 = vadd.xlane.f32.xlu0 %v172_v38  ;;  %v83_v39 = vpop.xlane.xlu0 %82  ;;  %v175_v41 = vsel %vm38_vm0, %v133_v20, 0.0  ;;  %v358_v22 = vadd.f32 1.0, %v713_v13  ;;  %v1133_v20 = vld [vmem:[%s1286_s1 + $0x68] sm:$0xff]  ;;  %v645_v38 = vmul.f32 -1.442695, %v1128_v30 }
  0xad   :  { %v86_v40 = vpop.xlane.xlu1 %85  ;;  %v102_v42 = vmul.f32 0.015625, %v83_v39  ;;  %v126_v46 = vmul.f32 %v1028_v35, %v1028_v35  ;;  %v715_v19 = vpop.eup %714 }
  0xae   :  { %v103_v43 = vmul.f32 0.015625, %v86_v40  ;;  %v127_v24 = vmul.f32 %v1031_v21, %v1031_v21  ;;  %v717_v16 = vpop.eup %716  ;;  %v359_v32 = vadd.f32 1.0, %v715_v19  ;;  %728 = vrcp.f32 %v358_v22  ;;  %v1139_v40 = vld [vmem:[%s1286_s1 + $0x30] sm:$0xff] }
  0xaf   :  { %v1040_v47 = vsub.f32 %v951_v28, %v102_v42  ;;  %v154_v48 = vsel %vm38_vm0, %v126_v46, 0.0  ;;  %v719_v31 = vpop.eup %718  ;;  %v366_v34 = vadd.f32 1.0, %v717_v16  ;;  %730 = vpow2.f32 %v637_v26 }
  0xb0   :  { %v1043_v25 = vsub.f32 %v956_v29, %v103_v43  ;;  %176 = vadd.xlane.f32.xlu1 %v175_v41  ;;  %155 = vadd.xlane.f32.xlu0 %v154_v48  ;;  %v157_v49 = vsel %vm38_vm0, %v127_v24, 0.0  ;;  %v708_v29 = vld [vmem:[%s1289_s4] sm:$0xff]   ;;  %v721_v33 = vpop.eup %720  ;;  %v367_v39 = vadd.f32 1.0, %v719_v31  ;;  %732 = vpow2.f32 %v638_v27 }
  0xb1   :  { %v134_v50 = vmul.f32 %v1040_v47, %v1040_v47  ;;  %673 = vmatprep.subr.bf16.mxu0 %v708_v29  ;;  %697 = vmatprep.subr.bf16.mxu1 %v708_v29  ;;  %v723_v41 = vpop.eup %722  ;;  %734 = vrcp.f32 %v359_v32  ;;  %v360_v42 = vadd.f32 1.0, %v721_v33  ;;  %v646_v46 = vmul.f32 -1.442695, %v1133_v20 }
  0xb2   :  { %v135_v51 = vmul.f32 %v1043_v25, %v1043_v25  ;;  %674 = vmatpush3.bf16.msra.mxu0 %v708_v29  ;;  %701 = vmatpush3.bf16.msra.mxu1 %v708_v29  ;;  %v725_v43 = vpop.eup %724  ;;  %736 = vrcp.f32 %v366_v34  ;;  %v639_v24 = vmul.f32 -1.442695, %v1139_v40  ;;  %v361_v48 = vadd.f32 1.0, %v723_v41  ;;  %v1151_v29 = vld [vmem:[%s1286_s1 + $0x70] sm:$0xff]  ;;  %v1160_v41 = vld [vmem:[%s1286_s1 + $0x78] sm:$0xff] }
  0xb3   :  { %v178_v52 = vsel %vm38_vm0, %v134_v50, 0.0  ;;  %675 = vmatprep.subr.bf16.mxu0 %v709_v53  ;;  %698 = vmatprep.subr.bf16.mxu1 %v709_v53  ;;  %738 = vpow2.f32 %v645_v38  ;;  %v727_v50 = vpop.eup %726  ;;  %v647_v6 = vmul.f32 -1.442695, %v1151_v29 }
  0xb4   :  { %158 = vadd.xlane.f32.xlu1 %v157_v49  ;;  %179 = vadd.xlane.f32.xlu0 %v178_v52  ;;  %v181_v28 = vsel %vm38_vm0, %v135_v51, 0.0  ;;  %740 = vrcp.f32 %v367_v39  ;;  %v1146_v49 = vld [vmem:[%s1286_s1 + $0x38] sm:$0xff]  ;;  %v368_v52 = vadd.f32 1.0, %v725_v43  ;;  %v369_v60 = vadd.f32 1.0, %v727_v50 }
  0xb5   :  { %742 = vrcp.f32 %v360_v42 }
  0xb6   :  { %676 = vmatpush3.bf16.msra.mxu0 %v709_v53  ;;  %702 = vmatpush3.bf16.msra.mxu1 %v709_v53  ;;  %744 = vpow2.f32 %v646_v46  ;;  %v640_v53 = vmul.f32 -1.442695, %v1146_v49 }
  0xb7   :  { %677 = vmatprep.subr.bf16.mxu0 %v710_v56  ;;  %699 = vmatprep.subr.bf16.mxu1 %v710_v56  ;;  %746 = vpow2.f32 %v639_v24 }
  0xb8   :  { %182 = vadd.xlane.f32.xlu1 %v181_v28  ;;  %748 = vrcp.f32 %v361_v48 }
  0xb9   :  { %750 = vrcp.f32 %v368_v52 }
  0xba   :  { %678 = vmatpush3.bf16.msra.mxu0 %v710_v56  ;;  %703 = vmatpush3.bf16.msra.mxu1 %v710_v56  ;;  %v1154_v56 = vpop.eup %728 }
  0xbb   :  { %679 = vmatprep.subr.bf16.mxu0 %v711_v57  ;;  %700 = vmatprep.subr.bf16.mxu1 %v711_v57  ;;  %v731_v62 = vpop.eup %730 }
  0xbc   :  { %v733_v8 = vpop.eup %732  ;;  %v362_v26 = vadd.f32 1.0, %v731_v62 }
  0xbd   :  { %v735_v14 = vpop.eup %734  ;;  %v363_v33 = vadd.f32 1.0, %v733_v8 }
  0xbe   :  { %680 = vmatpush3.bf16.msra.mxu0 %v711_v57  ;;  %704 = vmatpush3.bf16.msra.mxu1 %v711_v57  ;;  %v737_v19 = vpop.eup %736 }
  0xbf   :  { %v739_v27 = vpop.eup %738 }
  0xc0   :  { %v741_v34 = vpop.eup %740  ;;  %v370_v48 = vadd.f32 1.0, %v739_v27 }
  0xc1   :  { %v743_v42 = vpop.eup %742 }
  0xc2   :  { %v745_v43 = vpop.eup %744 }
  0xc3   :  { %v747_v50 = vpop.eup %746 }
  0xc4   :  { %v364_v27 = vadd.f32 1.0, %v747_v50 }
 0x125   :  { %v138_v51 = vpop.xlane.xlu0 %137 }
 0x126   :  { %v184_v28 = vmul.f32 0.015625, %v138_v51 }
 0x128   :  { %v200_v57 = vadd.f32 1e-05, %v184_v28  ;;  %v648_v28 = vmul.f32 -1.442695, %v1160_v41 }
 0x129   :  { %v141_v2 = vpop.xlane.xlu1 %140  ;;  %v162_v4 = vpop.xlane.xlu0 %161 }
 0x12a   :  { %752 = vrsqrt.f32 %v200_v57  ;;  %v185_v12 = vmul.f32 0.015625, %v141_v2  ;;  %v192_v13 = vmul.f32 0.015625, %v162_v4  ;;  %v1166_v2 = vld [vmem:[%s1287_s2] ss:$0 sm:$0xff]  ;;  %s832_s2 = smov [#allocation2]  }
 0x12b   :  { %754 = vpow2.f32 %v640_v53  ;;  %v749_v53 = vpop.eup %748 }
 0x12c   :  { %v201_v22 = vadd.f32 1e-05, %v185_v12  ;;  %v208_v16 = vadd.f32 1e-05, %v192_v13  ;;  %756 = vrcp.f32 %v369_v60  ;;  %v751_v62 = vpop.eup %750  ;;  %v371_v12 = vadd.f32 1.0, %v745_v43 }
 0x12d   :  { %v165_v31 = vpop.xlane.xlu1 %164  ;;  %v144_v32 = vpop.xlane.xlu0 %143  ;;  %758 = vpow2.f32 %v647_v6 }
 0x12e   :  { %760 = vrsqrt.f32 %v201_v22  ;;  %v193_v38 = vmul.f32 0.015625, %v165_v31  ;;  %v186_v39 = vmul.f32 0.015625, %v144_v32 }
 0x12f   :  { %762 = vrsqrt.f32 %v208_v16 }
 0x130   :  { %v209_v46 = vadd.f32 1e-05, %v193_v38  ;;  %v202_v24 = vadd.f32 1e-05, %v186_v39  ;;  %764 = vrcp.f32 %v362_v26  ;;  %v1172_v38 = vld [vmem:[%s1288_s3] ss:$0 sm:$0xff]  ;;  %v406_v39 = vmul.f32 %v1154_v56, %v1068_v58 }
 0x131   :  { %v147_v51 = vpop.xlane.xlu1 %146  ;;  %v168_v52 = vpop.xlane.xlu0 %167  ;;  %766 = vrcp.f32 %v363_v33  ;;  %s620_s3 = sshll.u32 %s832_s2, 4  ;;  %s621_s3 = int_to_ptr.vmem [resolvable:$true] %s620_s3 }
 0x132   :  { %768 = vrsqrt.f32 %v209_v46  ;;  %v187_v57 = vmul.f32 0.015625, %v147_v51  ;;  %v194_v60 = vmul.f32 0.015625, %v168_v52  ;;  %v415_v52 = vmul.f32 %v741_v34, %v1085_v63  ;;  %s808_s14 = scalar_lea.vmem %s621_s3, 2048  ;;  %p813_p1 = scmp.lt.s32.totalorder %s621_s3, %s621_s3 }
 0x133   :  { %770 = vrsqrt.f32 %v202_v24  ;;  %v414_v24 = vmul.f32 %v737_v19, %v1079_v61  ;;  %p809_p0 = scmp.ne.s32.totalorder %s621_s3, %s808_s14  ;;  %p814_p2 = scmp.lt.s32.totalorder %s808_s14, %s808_s14 }
 0x134   :  { %v753_v4 = vpop.eup %752  ;;  %v203_v6 = vadd.f32 1e-05, %v187_v57  ;;  %v210_v8 = vadd.f32 1e-05, %v194_v60  ;;  %772 = vrcp.f32 %v370_v48 }
 0x135   :  { %v755_v13 = vpop.eup %754  ;;  %v171_v22 = vpop.xlane.xlu1 %170  ;;  %v232_v26 = vmul.f32 %v753_v4, %v962_v36  ;;  %774 = vpow2.f32 %v648_v28  ;;  %v407_v36 = vmul.f32 %v735_v14, %v1073_v59  ;;  %v1185_v4 = vmul.f32 %v743_v42, %v1091_v3  ;;  %p815_p3 = por %p814_p2, %p813_p1 }
 0x136   :  { %v150_v16 = vpop.xlane.xlu0 %149  ;;  %v757_v31 = vpop.eup %756  ;;  %776 = vrsqrt.f32 %v203_v6  ;;  %v195_v32 = vmul.f32 0.015625, %v171_v22  ;;  %v1197_v6 = vmul.f32 %v751_v62, %v1103_v7  ;;  %v365_v22 = vadd.f32 1.0, %v755_v13 }
 0x137   :  { %v188_v33 = vmul.f32 0.015625, %v150_v16  ;;  %v1176_v43 = vpop.eup %758  ;;  %778 = vrsqrt.f32 %v210_v8  ;;  %v255_v46 = vmul.f32 %v1166_v2, %v232_v26  ;;  %p816_p4 = pnand %p815_p3, %p809_p0 }
 0x138   :  { %v761_v48 = vpop.eup %760  ;;  %v211_v50 = vadd.f32 1e-05, %v195_v32  ;;  %780 = vrcp.f32 %v371_v12 }
 0x139   :  { %v204_v51 = vadd.f32 1e-05, %v188_v33  ;;  %v763_v28 = vpop.eup %762  ;;  %v153_v57 = vpop.xlane.xlu1 %152  ;;  %v233_v58 = vmul.f32 %v761_v48, %v970_v44  ;;  %v278_v56 = vadd.f32 %v1172_v38, %v255_v46  ;;  %782 = vrcp.f32 %v364_v27 }
 0x13a   :  { %v174_v60 = vpop.xlane.xlu0 %173  ;;  %v1187_v59 = vpop.eup %764  ;;  %784 = vrsqrt.f32 %v211_v50  ;;  %v189_v61 = vmul.f32 0.015625, %v153_v57  ;;  %v240_v19 = vmul.f32 %v763_v28, %v964_v37  ;;  %v1194_v44 = vmul.f32 %v749_v53, %v1097_v5 }
 0x13b   :  { %v196_v14 = vmul.f32 0.015625, %v174_v60  ;;  %v1190_v63 = vpop.eup %766  ;;  %786 = vrsqrt.f32 %v204_v51  ;;  %v256_v34 = vmul.f32 %v1166_v2, %v233_v58  ;;  %v422_v32 = vmul.f32 %v406_v39, %v278_v56 }
 0x13c   :  { %v769_v3 = vpop.eup %768  ;;  %v205_v42 = vadd.f32 1e-05, %v189_v61  ;;  %v263_v12 = vmul.f32 %v1166_v2, %v240_v19  ;;  %v1203_v5 = vmul.f32 %v757_v31, %v1109_v9 }
 0x13d   :  { %v212_v8 = vadd.f32 1e-05, %v196_v14  ;;  %v771_v16 = vpop.eup %770  ;;  %v177_v26 = vpop.xlane.xlu1 %176  ;;  %v279_v27 = vadd.f32 %v1172_v38, %v256_v34  ;;  %v241_v33 = vmul.f32 %v769_v3, %v972_v45 }
 0x13e   :  { %v156_v37 = vpop.xlane.xlu0 %155  ;;  %v1205_v53 = vpop.eup %772  ;;  %v234_v7 = vmul.f32 %v771_v16, %v981_v54  ;;  %788 = vrsqrt.f32 %v205_v42  ;;  %v197_v62 = vmul.f32 0.015625, %v177_v26  ;;  %v286_v51 = vadd.f32 %v1172_v38, %v263_v12 }
 0x13f   :  { %v190_v46 = vmul.f32 0.015625, %v156_v37  ;;  %v775_v48 = vpop.eup %774  ;;  %790 = vrsqrt.f32 %v212_v8  ;;  %v423_v13 = vmul.f32 %v407_v36, %v279_v27  ;;  %v264_v50 = vmul.f32 %v1166_v2, %v241_v33 }
 0x140   :  { %v777_v39 = vpop.eup %776  ;;  %v213_v28 = vadd.f32 1e-05, %v197_v62  ;;  %v257_v9 = vmul.f32 %v1166_v2, %v234_v7  ;;  %792 = vrcp.f32 %v365_v22  ;;  %v430_v61 = vmul.f32 %v414_v24, %v286_v51 }
 0x141   :  { %v206_v45 = vadd.f32 1e-05, %v190_v46  ;;  %v779_v31 = vpop.eup %778  ;;  %v235_v57 = vmul.f32 %v777_v39, %v983_v55  ;;  %v159_v54 = vpop.xlane.xlu1 %158  ;;  %v438_v58 = vpack.c.bf16 %v423_v13, %v422_v32  ;;  %v287_v56 = vadd.f32 %v1172_v38, %v264_v50 }
 0x142   :  { %v180_v60 = vpop.xlane.xlu0 %179  ;;  %v781_v36 = vpop.eup %780  ;;  %v242_v14 = vmul.f32 %v779_v31, %v992_v0  ;;  %794 = vrsqrt.f32 %v213_v28  ;;  %v191_v19 = vmul.f32 0.015625, %v159_v54  ;;  %v280_v8 = vadd.f32 %v1172_v38, %v257_v9 }
 0x143   :  { %v198_v34 = vmul.f32 0.015625, %v180_v60  ;;  %v1214_v3 = vpop.eup %782  ;;  %796 = vrsqrt.f32 %v206_v45  ;;  %681 = vmatprep.mubr.msk.bf16.mxu0 %vm38_vm0, %v438_v58  ;;  %v431_v42 = vmul.f32 %v415_v52, %v287_v56  ;;  %v258_v55 = vmul.f32 %v1166_v2, %v235_v57 }
 0x144   :  { %v785_v12 = vpop.eup %784  ;;  %v207_v22 = vadd.f32 1e-05, %v191_v19  ;;  %v265_v24 = vmul.f32 %v1166_v2, %v242_v14  ;;  %v372_v0 = vadd.f32 1.0, %v1176_v43  ;;  %v373_v7 = vadd.f32 1.0, %v775_v48 }
 0x145   :  { %v214_v16 = vadd.f32 1e-05, %v198_v34  ;;  %v787_v26 = vpop.eup %786  ;;  %v243_v37 = vmul.f32 %v785_v12, %v995_v1  ;;  %v183_v27 = vpop.xlane.xlu1 %182  ;;  %v442_v32 = vpack.c.bf16 %v431_v42, %v430_v61  ;;  %v281_v33 = vadd.f32 %v1172_v38, %v258_v55 }
 0x146   :  { %v236_v52 = vmul.f32 %v787_v26, %v1004_v10  ;;  %798 = vrsqrt.f32 %v207_v22  ;;  %v199_v62 = vmul.f32 0.015625, %v183_v27  ;;  %v424_v46 = vmul.f32 %v1185_v4, %v280_v8 }
 0x147   :  { %800 = vrsqrt.f32 %v214_v16  ;;  %689 = vmatprep.mubr.msk.bf16.mxu1 %vm38_vm0, %v442_v32  ;;  %v425_v13 = vmul.f32 %v1194_v44, %v281_v33  ;;  %v266_v43 = vmul.f32 %v1166_v2, %v243_v37  ;;  %v288_v1 = vadd.f32 %v1172_v38, %v265_v24 }
 0x148   :  { %v789_v50 = vpop.eup %788  ;;  %v215_v51 = vadd.f32 1e-05, %v199_v62  ;;  %v259_v39 = vmul.f32 %v1166_v2, %v236_v52  ;;  %802 = vrcp.f32 %v372_v0  ;;  %v410_v44 = vmul.f32 %v1187_v59, %v1116_v15 }
 0x149   :  { %v791_v48 = vpop.eup %790  ;;  %v237_v10 = vmul.f32 %v789_v50, %v1007_v11  ;;  %v439_v28 = vpack.c.bf16 %v425_v13, %v424_v46  ;;  %v289_v4 = vadd.f32 %v1172_v38, %v266_v43  ;;  %804 = vrcp.f32 %v373_v7 }
 0x14a   :  { %v793_v45 = vpop.eup %792  ;;  %v244_v9 = vmul.f32 %v791_v48, %v1016_v23  ;;  %806 = vrsqrt.f32 %v215_v51  ;;  %v411_v31 = vmul.f32 %v1190_v63, %v1121_v18  ;;  %v432_v57 = vmul.f32 %v1197_v6, %v288_v1 }
 0x14b   :  { %682 = vmatmul.mubr.msk.bf16.vlgmr.msra.gmra.mrb[0].mxu0 %vm38_vm0, %v439_v28  ;;  %v433_v11 = vmul.f32 %v1203_v5, %v289_v4  ;;  %v260_v54 = vmul.f32 %v1166_v2, %v237_v10  ;;  %v282_v60 = vadd.f32 %v1172_v38, %v259_v39  ;;  %v418_v63 = vmul.f32 %v1205_v53, %v1128_v30 }
 0x14c   :  { %v795_v58 = vpop.eup %794  ;;  %v267_v23 = vmul.f32 %v1166_v2, %v244_v9  ;;  %v419_v6 = vmul.f32 %v781_v36, %v1133_v20  ;;  %v412_v53 = vmul.f32 %v1214_v3, %v1139_v40  ;;  %v413_v36 = vmul.f32 %v793_v45, %v1146_v49 }
 0x14d   :  { %v797_v56 = vpop.eup %796  ;;  %v245_v61 = vmul.f32 %v795_v58, %v1019_v17  ;;  %v443_v15 = vpack.c.bf16 %v433_v11, %v432_v57  ;;  %v283_v59 = vadd.f32 %v1172_v38, %v260_v54  ;;  %v426_v5 = vmul.f32 %v410_v44, %v282_v60 }
 0x14e   :  { %v238_v18 = vmul.f32 %v797_v56, %v1028_v35  ;;  %v290_v34 = vadd.f32 %v1172_v38, %v267_v23 }
 0x14f   :  { %690 = vmatmul.mubr.msk.bf16.vlgmr.msra.gmra.mrb[0].mxu1 %vm38_vm0, %v443_v15  ;;  %v427_v14 = vmul.f32 %v411_v31, %v283_v59  ;;  %v268_v19 = vmul.f32 %v1166_v2, %v245_v61 }
 0x150   :  { %v799_v42 = vpop.eup %798  ;;  %v261_v17 = vmul.f32 %v1166_v2, %v238_v18  ;;  %v434_v16 = vmul.f32 %v418_v63, %v290_v34 }
 0x151   :  { %v801_v55 = vpop.eup %800  ;;  %v239_v8 = vmul.f32 %v799_v42, %v1031_v21  ;;  %v440_v35 = vpack.c.bf16 %v427_v14, %v426_v5  ;;  %v291_v12 = vadd.f32 %v1172_v38, %v268_v19 }
 0x152   :  { %v803_v30 = vpop.eup %802  ;;  %v246_v20 = vmul.f32 %v801_v55, %v1040_v47  ;;  %v284_v21 = vadd.f32 %v1172_v38, %v261_v17 }
 0x153   :  { %v805_v22 = vpop.eup %804  ;;  %685 = vmatprep.mubr.msk.bf16.mxu0 %vm38_vm0, %v440_v35  ;;  %v435_v24 = vmul.f32 %v419_v6, %v291_v12  ;;  %v262_v0 = vmul.f32 %v1166_v2, %v239_v8  ;;  %v420_v40 = vmul.f32 %v803_v30, %v1151_v29 }
 0x154   :  { %v807_v26 = vpop.eup %806  ;;  %v269_v37 = vmul.f32 %v1166_v2, %v246_v20  ;;  %v421_v49 = vmul.f32 %v805_v22, %v1160_v41  ;;  %v428_v3 = vmul.f32 %v412_v53, %v284_v21 }
 0x155   :  { %v247_v27 = vmul.f32 %v807_v26, %v1043_v25  ;;  %v444_v47 = vpack.c.bf16 %v435_v24, %v434_v16  ;;  %v285_v32 = vadd.f32 %v1172_v38, %v262_v0 }
 0x156   :  { %v292_v52 = vadd.f32 %v1172_v38, %v269_v37 }
 0x157   :  { %693 = vmatprep.mubr.msk.bf16.mxu1 %vm38_vm0, %v444_v47  ;;  %v429_v33 = vmul.f32 %v413_v36, %v285_v32  ;;  %v270_v7 = vmul.f32 %v1166_v2, %v247_v27 }
 0x158   :  { %v436_v25 = vmul.f32 %v420_v40, %v292_v52 }
 0x159   :  { %v441_v62 = vpack.c.bf16 %v429_v33, %v428_v3  ;;  %v293_v46 = vadd.f32 %v1172_v38, %v270_v7 }
 0x15b   :  { %686 = vmatmul.mubr.msk.bf16.gmra.mrb[4].mxu0 %vm38_vm0, %v441_v62  ;;  %v437_v13 = vmul.f32 %v421_v49, %v293_v46 }
 0x15d   :  { %v445_v43 = vpack.c.bf16 %v437_v13, %v436_v25 }
 0x15f   :  { %694 = vmatmul.mubr.msk.bf16.gmra.mrb[4].mxu1 %vm38_vm0, %v445_v43 }
 0x21e   :  { %v683_v29 = vpop.f32.mrb[0].mxu0 }
 0x21f   :  { %601 = vst [vmem:[#allocation2 + $0x10] sm:$0xff] %v683_v29  ;;  %v536_v41 = vpop.f32.mrb[1].mxu0 }
 0x220   :  { %599 = vst [vmem:[#allocation2] sm:$0xff] %v536_v41  ;;  %v684_v1 = vpop.f32.mrb[2].mxu0 }
 0x221   :  { %602 = vst [vmem:[#allocation2 + $0x18] sm:$0xff] %v684_v1  ;;  %v539_v50 = vpop.f32.mrb[3].mxu0 }
 0x222   :  { %600 = vst [vmem:[#allocation2 + $0x8] sm:$0xff] %v539_v50  ;;  %v691_v2 = vpop.f32.mrb[0].mxu1 }
 0x223   :  { %609 = vst [vmem:[#allocation2 + $0x50] sm:$0xff] %v691_v2  ;;  %v568_v51 = vpop.f32.mrb[1].mxu1 }
 0x224   :  { %607 = vst [vmem:[#allocation2 + $0x40] sm:$0xff] %v568_v51  ;;  %v692_v38 = vpop.f32.mrb[2].mxu1 }
 0x225   :  { %610 = vst [vmem:[#allocation2 + $0x58] sm:$0xff] %v692_v38  ;;  %v571_v39 = vpop.f32.mrb[3].mxu1 }
 0x226   :  { %608 = vst [vmem:[#allocation2 + $0x48] sm:$0xff] %v571_v39 }
 0x22e   :  { %v687_v48 = vpop.f32.mrb[4].mxu0 }
 0x22f   :  { %605 = vst [vmem:[#allocation2 + $0x30] sm:$0xff] %v687_v48  ;;  %v552_v10 = vpop.f32.mrb[5].mxu0 }
 0x230   :  { %603 = vst [vmem:[#allocation2 + $0x20] sm:$0xff] %v552_v10  ;;  %v688_v28 = vpop.f32.mrb[6].mxu0 }
 0x231   :  { %606 = vst [vmem:[#allocation2 + $0x38] sm:$0xff] %v688_v28  ;;  %v555_v4 = vpop.f32.mrb[7].mxu0 }
 0x232   :  { %604 = vst [vmem:[#allocation2 + $0x28] sm:$0xff] %v555_v4  ;;  %v695_v45 = vpop.f32.mrb[4].mxu1 }
 0x233   :  { %613 = vst [vmem:[#allocation2 + $0x70] sm:$0xff] %v695_v45  ;;  %v584_v9 = vpop.f32.mrb[5].mxu1 }
 0x234   :  { %611 = vst [vmem:[#allocation2 + $0x60] sm:$0xff] %v584_v9  ;;  %v696_v44 = vpop.f32.mrb[6].mxu1 }
 0x235   :  { %614 = vst [vmem:[#allocation2 + $0x78] sm:$0xff] %v696_v44  ;;  %v587_v31 = vpop.f32.mrb[7].mxu1 }
 0x236   :  { %612 = vst [vmem:[#allocation2 + $0x68] sm:$0xff] %v587_v31 }
 0x237   :  { %819 = shalt.err (!%p816_p4)
}
 0x238   :  { %s820_s17 = scalar_lea.hbm %s1290_s5, 2048 }
 0x239   :  { %p821_p5 = scmp.ne.s32.totalorder %s1290_s5, %s820_s17  ;;  %p824_p6 = scmp.lt.u32.totalorder %s820_s17, %s1290_s5 }
 0x23b   :  { %p826_p7 = pnand %p824_p6, %p821_p5 }
 0x23d   :  { %829 = shalt.err (!%p826_p7)
}
 0x23e   :  { %s833_s22 = smov 128   ;;  %s834_s23 = smov 8  }
 0x23f   :  { %626 = dma.vmem_to_hbm [thread:$0]  %s621_s3, 2048, %s1290_s5, [#allocation3], %s833_s22, %s833_s22, %s834_s23  }
 0x240   :  { %830 = dma.done.wait [#allocation3], 2048  }
 0x241   :  { %831 = vsyncadd [#allocation3], 4294965248 }
 0x242   :  { %630 = vsyncpa [#allocation3], 1 }

// kernel: _lambda_.10
= control target key start
LH: loop header
LB: loop body
LE: loop exit
PB: predicated region body
PF: predicated region fallthrough
CT: control target
= control target key end

     0   :  { %s1837_s24 = smov 0   ;;  %s1839_s25 = smov 0   ;;  %s2318_s0 = inlined_call_operand.vmem [shape: bf16[2,64,64], index: 0, kind: input, shape index: {}]   ;;  %s2319_s1 = inlined_call_operand.vmem [shape: bf16[64,2], index: 1, kind: input, shape index: {}]   ;;  %s2320_s2 = inlined_call_operand.vmem [shape: bf16[32,64], index: 2, kind: input, shape index: {}]   ;;  %s2321_s3 = inlined_call_operand.vmem [shape: f32[2,64], index: 3, kind: input, shape index: {}]   ;;  %s2322_s4 = inlined_call_operand.vmem [shape: f32[16,64], index: 4, kind: input, shape index: {}]   ;;  %s2323_s5 = inlined_call_operand.vmem [shape: f32[1,64], index: 5, kind: input, shape index: {}]   ;;  %s2324_s6 = inlined_call_operand.vmem [shape: f32[1,64], index: 6, kind: input, shape index: {}]   ;;  %s2325_s7 = inlined_call_operand.vmem [shape: f32[2,64,64], index: 7, kind: output, shape index: {}]  }
   0x1   :  { %s1841_s26 = smov 0  }
   0x2 LB: > { %s29_s27 = sadd.s32 1, %s1763_s25  ;;  %p1462_p0 = scmp.ge.s32.totalorder %s1767_s26, 1  ;;  %s1767_s26 = sphi %s1841_s26, %s17_s26   ;;  %s1763_s25 = sphi %s1839_s25, %s2330_s25   ;;  %s1759_s24 = sphi %s1837_s24, %s2329_s24  }
   0x3   : > { %p31_p1 = scmp.ge.s32.totalorder %s29_s27, 2  ;;  %p258_p2 = scmp.lt.s32.totalorder %s1767_s26, 3 }
   0x5   : > { %s2332_s27 = smov (%p31_p1, %s29_s27), 0  ;;  %p259_p3 = pnand %p1462_p0, %p258_p2 }
   0x6   : > { %v1633_v0 = vld [vmem:[%s2319_s1] sm:$0xff] (!%p259_p3)   ;;  %v1634_v1 = vld [vmem:[%s2319_s1 + $0x8] sm:$0xff] (!%p259_p3)   ;;  %p299_p4 = scmp.lt.s32.totalorder (!%p259_p3), %s1759_s24, 1  ;;  %vm323_vm0 = vcmask (!%p259_p3), 523264   ;;  %v1781_v2 = vmov (!%p259_p3), 0.0   ;;  %v1635_v3 = vld [vmem:[%s2319_s1 + $0x10] sm:$0xff] (!%p259_p3)  }
   0x7   : > { %262 = sbr.rel (%p259_p3) target bundleno = 896 (0x380), region = 48  ;;  %1523 = vmatprep.subr.bf16.mxu0 (!%p259_p3), %v1633_v0  ;;  %324 = vst.msk [vmem:[#allocation2] sm:$0xff] (!%p259_p3), %vm323_vm0, %v1781_v2  ;;  %325 = vst.msk [vmem:[#allocation2 + $0x8] sm:$0xff] (!%p259_p3), %vm323_vm0, %v1781_v2  ;;  %v472_v4 = vld [vmem:[%s2321_s3] sm:$0x3] (!%p259_p3)  ;;  %vm505_vm1 = vcmask (!%p259_p3), 1041408  }
   0x8   : > { %1524 = vmatpush3.bf16.msra.mxu0 (!%p259_p3), %v1633_v0  ;;  %1539 = vmatprep.subr.msk.mxu1 (!%p259_p3), %vm505_vm1, %v472_v4  ;;  %v1879_v6 = vld [vmem:[%s2323_s5] ss:$0 sm:$0xff] (!%p259_p3)  ;;  %v1636_v7 = vld [vmem:[%s2319_s1 + $0x18] sm:$0xff] (!%p259_p3)   ;;  %vm480_vm2 = vcmask (!%p259_p3), 15360   ;;  %v1642_v28 = vld [vmem:[%s2320_s2 + $0x8] sm:$0xff] (!%p259_p3)   ;;  %vm779_vm3 = vcmask (!%p259_p3), 64512  }
   0x9   : > { %1525 = vmatprep.subr.bf16.mxu0 (!%p259_p3), %v1634_v1  ;;  %1540 = vmatpush3.msk.msra.mxu1 (!%p259_p3), %vm505_vm1, %v472_v4  ;;  %v1641_v25 = vld [vmem:[%s2320_s2] sm:$0xff] (!%p259_p3)   ;;  %s1782_s11 = smov (!%p259_p3), 112   ;;  %s1783_s12 = smov (!%p259_p3), 120  }
   0xa   : > { %v1479_v41 = vld [vmem:[%s2324_s6] ss:$0 sm:$0xff] (!%p259_p3)  ;;  %s1785_s14 = smov (!%p259_p3), 96   ;;  %s1786_s15 = smov (!%p259_p3), 88  }
   0xb   : > { %s1788_s21 = smov (!%p259_p3), 72   ;;  %s2162_s22 = smov (!%p259_p3), 0  }
   0xc   : > { %1526 = vmatpush3.bf16.msra.mxu0 (!%p259_p3), %v1634_v1 }
   0xd   : > { %1527 = vmatprep.subr.bf16.mxu0 (!%p259_p3), %v1635_v3 }
   0xe   : > { %s2334_s24 = smov (!%p299_p4, %s1759_s24), 1 }
   0xf   : > { %s1498_s13 = sshll.u32 %s2334_s24, 5  ;;  %s1499_s17 = sshll.u32 %s2334_s24, 6 }
  0x10   : > { %s306_s16 = scalar_lea.vmem %s2318_s0, %s1498_s13  ;;  %s1889_s24 = scalar_lea.vmem %s2325_s7, %s1499_s17  ;;  %1528 = vmatpush3.bf16.msra.mxu0 %v1635_v3 }
  0x11   : > { %v1874_v5 = vld [vmem:[%s306_s16] sm:$0xff]   ;;  %v1901_v12 = vld [vmem:[%s306_s16 + $0x8] sm:$0xff]   ;;  %1529 = vmatprep.subr.bf16.mxu0 %v1636_v7  ;;  %v1907_v13 = vld [vmem:[%s306_s16 + $0x10] sm:$0xff]   ;;  %s1784_s13 = smov 104  }
  0x12   : > { %v334_v8 = vunpack.c.l.bf16 %v1874_v5  ;;  %v335_v9 = vunpack.c.h.bf16 %v1874_v5  ;;  %1531 = vmatprep.mubr.msk.bf16.mxu0 %vm323_vm0, %v1874_v5  ;;  %1565 = vmatprep.subr.msk.bf16.mxu1 %vm323_vm0, %v1874_v5  ;;  %v1913_v14 = vld [vmem:[%s306_s16 + $0x18] sm:$0xff]   ;;  %v396_v18 = vsel %vm323_vm0, %v1874_v5, 0  ;;  %v399_v23 = vsel %vm323_vm0, %v1901_v12, 0  ;;  %s1787_s16 = smov 80  }
  0x13   : > { %v402_v26 = vsel %vm323_vm0, %v1907_v13, 0  ;;  %v405_v27 = vsel %vm323_vm0, %v1913_v14, 0  ;;  %v337_v29 = vunpack.c.h.bf16 %v1901_v12  ;;  %v336_v30 = vunpack.c.l.bf16 %v1901_v12 }
  0x14   : > { %v914_v10 = vmul.f32 %v1879_v6, %v334_v8  ;;  %v915_v11 = vmul.f32 %v1879_v6, %v335_v9  ;;  %1530 = vmatpush3.bf16.msra.mxu0 %v1636_v7  ;;  %v339_v33 = vunpack.c.h.bf16 %v1907_v13  ;;  %v338_v34 = vunpack.c.l.bf16 %v1907_v13 }
  0x15   : > { %v917_v31 = vmul.f32 %v1879_v6, %v337_v29  ;;  %v916_v32 = vmul.f32 %v1879_v6, %v336_v30  ;;  %v341_v37 = vunpack.c.h.bf16 %v1913_v14  ;;  %v340_v39 = vunpack.c.l.bf16 %v1913_v14 }
  0x16   : > { %922 = vst.msk [vmem:[%s1889_s24] sm:$0xff] %vm323_vm0, %v914_v10  ;;  %923 = vst.msk [vmem:[%s1889_s24 + $0x8] sm:$0xff] %vm323_vm0, %v915_v11  ;;  %v919_v35 = vmul.f32 %v1879_v6, %v339_v33  ;;  %v918_v36 = vmul.f32 %v1879_v6, %v338_v34 }
  0x17   : > { %1532 = vmatmul.mubr.msk.bf16.vlgmr.msra.gmra.mrb[0].mxu0 %vm323_vm0, %v1901_v12  ;;  %925 = vst.msk [vmem:[%s1889_s24 + $0x18] sm:$0xff] %vm323_vm0, %v917_v31  ;;  %924 = vst.msk [vmem:[%s1889_s24 + $0x10] sm:$0xff] %vm323_vm0, %v916_v32  ;;  %v921_v38 = vmul.f32 %v1879_v6, %v341_v37  ;;  %v920_v40 = vmul.f32 %v1879_v6, %v340_v39 }
  0x18   : > { %1535 = vmatprep.mubr.msk.bf16.mxu0 %vm323_vm0, %v1907_v13  ;;  %927 = vst.msk [vmem:[%s1889_s24 + $0x28] sm:$0xff] %vm323_vm0, %v919_v35  ;;  %926 = vst.msk [vmem:[%s1889_s24 + $0x20] sm:$0xff] %vm323_vm0, %v918_v36 }
  0x19   : > { %929 = vst.msk [vmem:[%s1889_s24 + $0x38] sm:$0xff] %vm323_vm0, %v921_v38  ;;  %928 = vst.msk [vmem:[%s1889_s24 + $0x30] sm:$0xff] %vm323_vm0, %v920_v40 }
  0x1f   : > { %1536 = vmatmul.mubr.msk.bf16.gmra.mrb[4].mxu0 %vm323_vm0, %v1913_v14 }
  0xea   : > { %v1533_v15 = vpop.f32.mrb[0].mxu0 }
  0xeb   : > { %v441_v16 = vpop.f32.mrb[1].mxu0 }
  0xec   : > { %v1534_v17 = vpop.f32.mrb[2].mxu0  ;;  %1541 = vmatprep.mubr.msk.f32.mxu1 %vm480_vm2, %v441_v16 }
  0xed   : > { %v444_v19 = vpop.f32.mrb[3].mxu0 }
  0xee   : > { %1542 = vmatmul.mubr.msk.f32.vlgmr.msra.gmra.mrb[0].mxu1 %vm480_vm2, %v444_v19 }
  0xef   : > { %1554 = vmatpush3.bf16.xpose.msra.mxu1 %v396_v18  ;;  %1544 = vmatprep.mubr.msk.f32.mxu1 %vm480_vm2, %v1533_v15 }
  0xf0   : > { %1566 = vmatprep.subr.msk.bf16.mxu1 %vm323_vm0, %v1901_v12 }
  0xf2   : > { %v1537_v20 = vpop.f32.mrb[4].mxu0  ;;  %1545 = vmatmul.mubr.msk.f32.gmra.mrb[2].mxu1 %vm480_vm2, %v1534_v17 }
  0xf3   : > { %v457_v21 = vpop.f32.mrb[5].mxu0 }
  0xf4   : > { %v1538_v22 = vpop.f32.mrb[6].mxu0  ;;  %1547 = vmatprep.mubr.msk.f32.mxu1 %vm480_vm2, %v457_v21 }
  0xf5   : > { %v460_v24 = vpop.f32.mrb[7].mxu0 }
  0xf6   : > { %1548 = vmatmul.mubr.msk.f32.gmra.mrb[4].mxu1 %vm480_vm2, %v460_v24 }
  0xf7   : > { %1556 = vmatpush3.bf16.xpose.msra.mxu1 %v399_v23  ;;  %1550 = vmatprep.mubr.msk.f32.mxu1 %vm480_vm2, %v1537_v20 }
  0xf8   : > { %1567 = vmatprep.subr.msk.bf16.mxu1 %vm323_vm0, %v1907_v13 }
  0xfa   : > { %1551 = vmatmul.mubr.msk.f32.gmra.mrb[6].mxu1 %vm480_vm2, %v1538_v22 }
  0xfb   : > { %1561 = vmatprep.mubr.msk.bf16.mxu1 %vm323_vm0, %v1641_v25 }
  0xff   : > { %1558 = vmatpush3.bf16.xpose.msra.mxu1 %v402_v26 }
 0x100   : > { %1568 = vmatprep.subr.msk.bf16.mxu1 %vm323_vm0, %v1913_v14  ;;  %v2107_v14 = vld [vmem:[%s2322_s4] sm:$0xff] }
 0x107   : > { %1560 = vmatpush3.bf16.xpose.msra.mxu1 %v405_v27 }
 0x10e   : > { %1562 = vmatmul.mubr.msk.bf16.vlgmr.msra.gmra.mrb[8].mxu1 %vm323_vm0, %v1642_v28 }
 0x1c1   : > { %v1543_v42 = vpop.f32.mrb[0].mxu1 }
 0x1c2   : > { %v1986_v43 = vadd.f32 %v1543_v42, %v1479_v41  ;;  %v575_v44 = vpop.f32.mrb[1].mxu1 }
 0x1c3   : > { %v1988_v45 = vadd.f32 %v1479_v41, %v575_v44 }
 0x1c4   : > { %v623_v46 = vand.u32 2147483647, %v1986_v43 }
 0x1c5   : > { %v622_v47 = vand.u32 2147483647, %v1988_v45  ;;  %v1546_v48 = vpop.f32.mrb[2].mxu1 }
 0x1c6   : > { %v631_v49 = vsub.f32 0.0, %v623_v46  ;;  %v1992_v50 = vadd.f32 %v1546_v48, %v1479_v41  ;;  %v585_v51 = vpop.f32.mrb[3].mxu1 }
 0x1c7   : > { %v630_v52 = vsub.f32 0.0, %v622_v47  ;;  %v1994_v53 = vadd.f32 %v1479_v41, %v585_v51 }
 0x1c8   : > { %v640_v54 = vmul.f32 1.442695, %v631_v49  ;;  %v625_v55 = vand.u32 2147483647, %v1992_v50  ;;  %v615_v49 = vmax.f32 %v1986_v43, 0.0 }
 0x1c9   : > { %v638_v56 = vmul.f32 1.442695, %v630_v52  ;;  %v624_v57 = vand.u32 2147483647, %v1994_v53  ;;  %v1549_v58 = vpop.f32.mrb[4].mxu1 }
 0x1ca   : > { %1647 = vpow2.f32 %v640_v54  ;;  %v633_v59 = vsub.f32 0.0, %v625_v55  ;;  %v1998_v60 = vadd.f32 %v1549_v58, %v1479_v41  ;;  %v595_v61 = vpop.f32.mrb[5].mxu1  ;;  %v614_v55 = vmax.f32 %v1988_v45, 0.0 }
 0x1cb   : > { %1649 = vpow2.f32 %v638_v56  ;;  %v632_v62 = vsub.f32 0.0, %v624_v57  ;;  %v2000_v63 = vadd.f32 %v1479_v41, %v595_v61 }
 0x1cc   : > { %v644_v0 = vmul.f32 1.442695, %v633_v59  ;;  %v627_v1 = vand.u32 2147483647, %v1998_v60 }
 0x1cd   : > { %v642_v2 = vmul.f32 1.442695, %v632_v62  ;;  %v626_v3 = vand.u32 2147483647, %v2000_v63  ;;  %v1552_v4 = vpop.f32.mrb[6].mxu1 }
 0x1ce   : > { %1651 = vpow2.f32 %v644_v0  ;;  %v635_v6 = vsub.f32 0.0, %v627_v1  ;;  %v2004_v7 = vadd.f32 %v1552_v4, %v1479_v41  ;;  %v605_v10 = vpop.f32.mrb[7].mxu1  ;;  %v617_v1 = vmax.f32 %v1992_v50, 0.0 }
 0x1cf   : > { %1653 = vpow2.f32 %v642_v2  ;;  %v634_v11 = vsub.f32 0.0, %v626_v3  ;;  %v2006_v15 = vadd.f32 %v1479_v41, %v605_v10  ;;  %v616_v4 = vmax.f32 %v1994_v53, 0.0 }
 0x1d0   : > { %v648_v16 = vmul.f32 1.442695, %v635_v6  ;;  %v629_v17 = vand.u32 2147483647, %v2004_v7  ;;  %v618_v53 = vmax.f32 %v2000_v63, 0.0 }
 0x1d1   : > { %v646_v18 = vmul.f32 1.442695, %v634_v11  ;;  %v628_v19 = vand.u32 2147483647, %v2006_v15 }
 0x1d2   : > { %1655 = vpow2.f32 %v648_v16  ;;  %v637_v20 = vsub.f32 0.0, %v629_v17  ;;  %v619_v17 = vmax.f32 %v1998_v60, 0.0 }
 0x1d3   : > { %1657 = vpow2.f32 %v646_v18  ;;  %v636_v21 = vsub.f32 0.0, %v628_v19 }
 0x1d4   : > { %v1648_v22 = vpop.eup %1647  ;;  %v652_v23 = vmul.f32 1.442695, %v637_v20 }
 0x1d5   : > { %v1650_v24 = vpop.eup %1649  ;;  %v655_v25 = vadd.f32 1.0, %v1648_v22  ;;  %v650_v26 = vmul.f32 1.442695, %v636_v21  ;;  %v621_v21 = vmax.f32 %v2004_v7, 0.0 }
 0x1d6   : > { %v654_v27 = vadd.f32 1.0, %v1650_v24  ;;  %1659 = vpow2.f32 %v652_v23 }
 0x1d7   : > { %1661 = vlog2.f32 %v655_v25 }
 0x1d8   : > { %v1652_v28 = vpop.eup %1651  ;;  %1663 = vlog2.f32 %v654_v27 }
 0x1d9   : > { %v1654_v31 = vpop.eup %1653  ;;  %v657_v32 = vadd.f32 1.0, %v1652_v28  ;;  %1665 = vpow2.f32 %v650_v26 }
 0x1da   : > { %v656_v35 = vadd.f32 1.0, %v1654_v31 }
 0x1db   : > { %1667 = vlog2.f32 %v657_v32 }
 0x1dc   : > { %v1656_v36 = vpop.eup %1655  ;;  %1669 = vlog2.f32 %v656_v35 }
 0x1dd   : > { %v1658_v38 = vpop.eup %1657  ;;  %v659_v40 = vadd.f32 1.0, %v1656_v36 }
 0x1de   : > { %v658_v41 = vadd.f32 1.0, %v1658_v38 }
 0x1df   : > { %1671 = vlog2.f32 %v659_v40 }
 0x1e0   : > { %v1660_v42 = vpop.eup %1659  ;;  %1673 = vlog2.f32 %v658_v41 }
 0x1e1   : > { %v1662_v44 = vpop.eup %1661  ;;  %v661_v46 = vadd.f32 1.0, %v1660_v42  ;;  %v2010_v47 = vpop.f32.mrb[8].mxu1 }
 0x1e2   : > { %v1664_v48 = vpop.eup %1663  ;;  %v665_v51 = vmul.f32 0.6931472, %v1662_v44  ;;  %782 = vst.msk [vmem:[#allocation5 + $0x10] sm:$0xff] %vm779_vm3, %v2010_v47  ;;  %809 = vrot.lane.b32.xlu0 %v2010_v47, %s1782_s11  ;;  %792 = vrot.lane.b32.xlu1 %v2010_v47, %s1783_s12  ;;  %v2019_v52 = vpop.f32.mrb[9].mxu1 }
 0x1e3   : > { %v1666_v54 = vpop.eup %1665  ;;  %v663_v56 = vmul.f32 0.6931472, %v1664_v48  ;;  %1675 = vlog2.f32 %v661_v46  ;;  %780 = vst.msk [vmem:[#allocation5] sm:$0xff] %vm779_vm3, %v2019_v52  ;;  %v2024_v43 = vpop.f32.mrb[10].mxu1 }
 0x1e4   : > { %v679_v57 = vadd.f32 %v665_v51, %v615_v49  ;;  %v660_v58 = vadd.f32 1.0, %v1666_v54  ;;  %783 = vst.msk [vmem:[#allocation5 + $0x18] sm:$0xff] %vm779_vm3, %v2024_v43  ;;  %v2028_v59 = vpop.f32.mrb[11].mxu1 }
 0x1e5   : > { %v1668_v61 = vpop.eup %1667  ;;  %v678_v62 = vadd.f32 %v663_v56, %v614_v55  ;;  %781 = vst.msk [vmem:[#allocation5 + $0x8] sm:$0xff] %vm779_vm3, %v2028_v59 }
 0x1e6   : > { %v1670_v45 = vpop.eup %1669  ;;  %687 = vst.msk [vmem:[#allocation3 + $0x8] sm:$0xff] %vm323_vm0, %v679_v57  ;;  %v695_v0 = vmul.f32 %v679_v57, %v335_v9  ;;  %v669_v2 = vmul.f32 0.6931472, %v1668_v61  ;;  %1677 = vlog2.f32 %v660_v58  ;;  %826 = vrot.lane.b32.xlu0 %v2010_v47, %s1784_s13  ;;  %794 = vrot.lane.b32.xlu1 %v2024_v43, %s1783_s12 }
 0x1e7   : > { %686 = vst.msk [vmem:[#allocation3] sm:$0xff] %vm323_vm0, %v678_v62  ;;  %v694_v3 = vmul.f32 %v678_v62, %v334_v8  ;;  %v667_v6 = vmul.f32 0.6931472, %v1670_v45 }
 0x1e8   : > { %703 = vst.msk [vmem:[#allocation4 + $0x8] sm:$0xff] %vm323_vm0, %v695_v0  ;;  %v681_v9 = vadd.f32 %v669_v2, %v617_v1 }
 0x1e9   : > { %v1672_v50 = vpop.eup %1671  ;;  %702 = vst.msk [vmem:[#allocation4] sm:$0xff] %vm323_vm0, %v694_v3  ;;  %v680_v10 = vadd.f32 %v667_v6, %v616_v4 }
 0x1ea   : > { %v1674_v11 = vpop.eup %1673  ;;  %689 = vst.msk [vmem:[#allocation3 + $0x18] sm:$0xff] %vm323_vm0, %v681_v9  ;;  %v697_v16 = vmul.f32 %v681_v9, %v337_v29  ;;  %v673_v5 = vmul.f32 0.6931472, %v1672_v50  ;;  %843 = vrot.lane.b32.xlu0 %v2010_v47, %s1785_s14  ;;  %811 = vrot.lane.b32.xlu1 %v2024_v43, %s1782_s11 }
 0x1eb   : > { %688 = vst.msk [vmem:[#allocation3 + $0x10] sm:$0xff] %vm323_vm0, %v680_v10  ;;  %v696_v8 = vmul.f32 %v680_v10, %v336_v30  ;;  %v671_v18 = vmul.f32 0.6931472, %v1674_v11 }
 0x1ec   : > { %705 = vst.msk [vmem:[#allocation4 + $0x18] sm:$0xff] %vm323_vm0, %v697_v16  ;;  %v683_v29 = vadd.f32 %v673_v5, %v619_v17 }
 0x1ed   : > { %v1676_v60 = vpop.eup %1675  ;;  %704 = vst.msk [vmem:[#allocation4 + $0x10] sm:$0xff] %vm323_vm0, %v696_v8  ;;  %v682_v19 = vadd.f32 %v671_v18, %v618_v53 }
 0x1ee   : > { %691 = vst.msk [vmem:[#allocation3 + $0x28] sm:$0xff] %vm323_vm0, %v683_v29  ;;  %v699_v20 = vmul.f32 %v683_v29, %v339_v33  ;;  %v677_v22 = vmul.f32 0.6931472, %v1676_v60  ;;  %860 = vrot.lane.b32.xlu0 %v2010_v47, %s1786_s15  ;;  %828 = vrot.lane.b32.xlu1 %v2024_v43, %s1784_s13  ;;  %v620_v33 = vmax.f32 %v2006_v15, 0.0  ;;  %v2119_v15 = vld [vmem:[#allocation2 + $0x8] sm:$0xff]  }
 0x1ef   : > { %690 = vst.msk [vmem:[#allocation3 + $0x20] sm:$0xff] %vm323_vm0, %v682_v19  ;;  %v698_v12 = vmul.f32 %v682_v19, %v338_v34 }
 0x1f0   : > { %v1678_v30 = vpop.eup %1677  ;;  %707 = vst.msk [vmem:[#allocation4 + $0x28] sm:$0xff] %vm323_vm0, %v699_v20  ;;  %v685_v63 = vadd.f32 %v677_v22, %v621_v21 }
 0x1f1   : > { %706 = vst.msk [vmem:[#allocation4 + $0x20] sm:$0xff] %vm323_vm0, %v698_v12  ;;  %v675_v7 = vmul.f32 0.6931472, %v1678_v30 }
 0x1f2   : > { %693 = vst.msk [vmem:[#allocation3 + $0x38] sm:$0xff] %vm323_vm0, %v685_v63  ;;  %v701_v23 = vmul.f32 %v685_v63, %v341_v37  ;;  %877 = vrot.lane.b32.xlu0 %v2010_v47, %s1787_s16  ;;  %845 = vrot.lane.b32.xlu1 %v2024_v43, %s1785_s14  ;;  %v2112_v37 = vld [vmem:[%s2322_s4 + $0x8] sm:$0xff] }
 0x1f3   : > { %v684_v13 = vadd.f32 %v675_v7, %v620_v33 }
 0x1f4   : > { %709 = vst.msk [vmem:[#allocation4 + $0x38] sm:$0xff] %vm323_vm0, %v701_v23 }
 0x1f5   : > { %692 = vst.msk [vmem:[#allocation3 + $0x30] sm:$0xff] %vm323_vm0, %v684_v13  ;;  %v700_v34 = vmul.f32 %v684_v13, %v340_v39  ;;  %v2114_v39 = vld [vmem:[#allocation2] sm:$0xff]  }
 0x1f6   : > { %788 = vrot.lane.b32.xlu0 %v2019_v52, %s1783_s12  ;;  %862 = vrot.lane.b32.xlu1 %v2024_v43, %s1786_s15 }
 0x1f7   : > { %708 = vst.msk [vmem:[#allocation4 + $0x30] sm:$0xff] %vm323_vm0, %v700_v34 }
 0x1fa   : > { %805 = vrot.lane.b32.xlu0 %v2019_v52, %s1782_s11  ;;  %879 = vrot.lane.b32.xlu1 %v2024_v43, %s1787_s16 }
 0x1fe   : > { %822 = vrot.lane.b32.xlu0 %v2019_v52, %s1784_s13  ;;  %807 = vrot.lane.b32.xlu1 %v2028_v59, %s1782_s11 }
 0x202   : > { %839 = vrot.lane.b32.xlu0 %v2019_v52, %s1785_s14  ;;  %824 = vrot.lane.b32.xlu1 %v2028_v59, %s1784_s13 }
 0x206   : > { %856 = vrot.lane.b32.xlu0 %v2019_v52, %s1786_s15  ;;  %841 = vrot.lane.b32.xlu1 %v2028_v59, %s1785_s14 }
 0x20a   : > { %873 = vrot.lane.b32.xlu0 %v2019_v52, %s1787_s16  ;;  %858 = vrot.lane.b32.xlu1 %v2028_v59, %s1786_s15 }
 0x20e   : > { %890 = vrot.lane.b32.xlu0 %v2019_v52, %s1788_s21  ;;  %875 = vrot.lane.b32.xlu1 %v2028_v59, %s1787_s16 }
 0x212   : > { %892 = vrot.lane.b32.xlu1 %v2028_v59, %s1788_s21  ;;  %790 = vrot.lane.b32.xlu0 %v2028_v59, %s1783_s12 }
 0x216   : > { %896 = vrot.lane.b32.xlu1 %v2024_v43, %s1788_s21  ;;  %894 = vrot.lane.b32.xlu0 %v2010_v47, %s1788_s21 }
 0x254   : > { %v810_v24 = vpop.permute.xlu0 %809  ;;  %v793_v25 = vpop.permute.xlu1 %792 }
 0x255   : > { %820 = vst.msk [vmem:[#allocation5 + $0x50] sm:$0xff] %vm779_vm3, %v810_v24  ;;  %803 = vst.msk [vmem:[#allocation5 + $0x30] sm:$0xff] %vm779_vm3, %v793_v25 }
 0x258   : > { %v827_v26 = vpop.permute.xlu0 %826  ;;  %v795_v27 = vpop.permute.xlu1 %794 }
 0x259   : > { %837 = vst.msk [vmem:[#allocation5 + $0x70] sm:$0xff] %vm779_vm3, %v827_v26  ;;  %804 = vst.msk [vmem:[#allocation5 + $0x38] sm:$0xff] %vm779_vm3, %v795_v27 }
 0x25c   : > { %v844_v28 = vpop.permute.xlu0 %843  ;;  %v812_v31 = vpop.permute.xlu1 %811 }
 0x25d   : > { %854 = vst.msk [vmem:[#allocation5 + $0x90] sm:$0xff] %vm779_vm3, %v844_v28  ;;  %821 = vst.msk [vmem:[#allocation5 + $0x58] sm:$0xff] %vm779_vm3, %v812_v31 }
 0x260   : > { %v861_v32 = vpop.permute.xlu0 %860  ;;  %v829_v35 = vpop.permute.xlu1 %828 }
 0x261   : > { %871 = vst.msk [vmem:[#allocation5 + $0xb0] sm:$0xff] %vm779_vm3, %v861_v32  ;;  %838 = vst.msk [vmem:[#allocation5 + $0x78] sm:$0xff] %vm779_vm3, %v829_v35 }
 0x264   : > { %v878_v36 = vpop.permute.xlu0 %877  ;;  %v846_v38 = vpop.permute.xlu1 %845 }
 0x265   : > { %888 = vst.msk [vmem:[#allocation5 + $0xd0] sm:$0xff] %vm779_vm3, %v878_v36  ;;  %855 = vst.msk [vmem:[#allocation5 + $0x98] sm:$0xff] %vm779_vm3, %v846_v38 }
 0x268   : > { %v789_v40 = vpop.permute.xlu0 %788  ;;  %v863_v41 = vpop.permute.xlu1 %862 }
 0x269   : > { %801 = vst.msk [vmem:[#allocation5 + $0x20] sm:$0xff] %vm779_vm3, %v789_v40  ;;  %872 = vst.msk [vmem:[#allocation5 + $0xb8] sm:$0xff] %vm779_vm3, %v863_v41 }
 0x26c   : > { %v806_v42 = vpop.permute.xlu0 %805  ;;  %v880_v44 = vpop.permute.xlu1 %879 }
 0x26d   : > { %818 = vst.msk [vmem:[#allocation5 + $0x40] sm:$0xff] %vm779_vm3, %v806_v42  ;;  %889 = vst.msk [vmem:[#allocation5 + $0xd8] sm:$0xff] %vm779_vm3, %v880_v44 }
 0x270   : > { %v823_v46 = vpop.permute.xlu0 %822  ;;  %v808_v47 = vpop.permute.xlu1 %807 }
 0x271   : > { %835 = vst.msk [vmem:[#allocation5 + $0x60] sm:$0xff] %vm779_vm3, %v823_v46  ;;  %819 = vst.msk [vmem:[#allocation5 + $0x48] sm:$0xff] %vm779_vm3, %v808_v47 }
 0x274   : > { %v840_v48 = vpop.permute.xlu0 %839  ;;  %v825_v49 = vpop.permute.xlu1 %824 }
 0x275   : > { %852 = vst.msk [vmem:[#allocation5 + $0x80] sm:$0xff] %vm779_vm3, %v840_v48  ;;  %836 = vst.msk [vmem:[#allocation5 + $0x68] sm:$0xff] %vm779_vm3, %v825_v49 }
 0x278   : > { %v857_v51 = vpop.permute.xlu0 %856  ;;  %v842_v52 = vpop.permute.xlu1 %841 }
 0x279   : > { %869 = vst.msk [vmem:[#allocation5 + $0xa0] sm:$0xff] %vm779_vm3, %v857_v51  ;;  %853 = vst.msk [vmem:[#allocation5 + $0x88] sm:$0xff] %vm779_vm3, %v842_v52 }
 0x27c   : > { %v874_v54 = vpop.permute.xlu0 %873  ;;  %v859_v55 = vpop.permute.xlu1 %858 }
 0x27d   : > { %886 = vst.msk [vmem:[#allocation5 + $0xc0] sm:$0xff] %vm779_vm3, %v874_v54  ;;  %870 = vst.msk [vmem:[#allocation5 + $0xa8] sm:$0xff] %vm779_vm3, %v859_v55 }
 0x280   : > { %v891_v56 = vpop.permute.xlu0 %890  ;;  %v876_v43 = vpop.permute.xlu1 %875 }
 0x281   : > { %903 = vst.msk [vmem:[#allocation5 + $0xe0] sm:$0xff] %vm779_vm3, %v891_v56  ;;  %887 = vst.msk [vmem:[#allocation5 + $0xc8] sm:$0xff] %vm779_vm3, %v876_v43 }
 0x284   : > { %v893_v57 = vpop.permute.xlu1 %892  ;;  %v791_v58 = vpop.permute.xlu0 %790 }
 0x285   : > { %904 = vst.msk [vmem:[#allocation5 + $0xe8] sm:$0xff] %vm779_vm3, %v893_v57  ;;  %802 = vst.msk [vmem:[#allocation5 + $0x28] sm:$0xff] %vm779_vm3, %v791_v58 }
 0x288   : > { %v897_v59 = vpop.permute.xlu1 %896  ;;  %v895_v61 = vpop.permute.xlu0 %894 }
 0x289   : > { %906 = vst.msk [vmem:[#allocation5 + $0xf8] sm:$0xff] %vm779_vm3, %v897_v59  ;;  %905 = vst.msk [vmem:[#allocation5 + $0xf0] sm:$0xff] %vm779_vm3, %v895_v61 }
 0x28a LB: >> { %v1789_v62 = vmov 0   ;;  %s1495_s23 = sshll.u32 %s1779_s22, 5  ;;  %v1790_v3 = vmov 1   ;;  %v1791_v4 = vmov 5   ;;  %v1792_v6 = vmov 2   ;;  %s2175_s29 = sshll.u32 %s1779_s22, 3  ;;  %s1779_s22 = sphi %s2162_s22, %s939_s22   ;;  %v1775_v39 = vphi %v2114_v39, %v2328_v39   ;;  %v1771_v15 = vphi %v2119_v15, %v2327_v15  }
 0x28b   : >> { %1680 = vset.pattern.permute.xlu1 %v1789_v62  ;;  %1679 = vset.pattern.permute.xlu0 %v1789_v62  ;;  %s948_s28 = scalar_lea.vmem [#allocation5], %s1495_s23  ;;  %v1793_v9 = vmov 3   ;;  %v1794_v50 = vmov 4   ;;  %v1795_v10 = vmov 6   ;;  %v1796_v11 = vmov 7   ;;  %s943_s30 = scalar_lea.vmem [#allocation3], %s2175_s29 }
 0x28c   : >> { %v953_v16 = vlaneseq  ;;  %v2181_v8 = vld [vmem:[%s943_s30] sm:$0xff]  ;;  %s945_s8 = scalar_lea.vmem [#allocation4], %s2175_s29  ;;  %vm1333_vm4 = vcmask 1040384   ;;  %vm1336_vm5 = vcmask 1042432   ;;  %vm1338_vm6 = vcmask 1043456   ;;  %s1346_s9 = scalar_lea.vmem %s1889_s24, %s2175_s29 }
 0x28d   : >> { %v2187_v20 = vld [vmem:[%s945_s8] sm:$0xff]  ;;  %vm1340_vm7 = vcmask 1044480   ;;  %vm1342_vm8 = vcmask 1045504   ;;  %vm1344_vm9 = vcmask 1046528   ;;  %s939_s22 = sadd.s32 1, %s1779_s22  }
 0x28e   : >> { %v2177_v17 = vshrl.u32 %v953_v16, 7  ;;  %p936_p5 = scmp.ge.s32.totalorder %s939_s22, 8  }
 0x290   : >> { %v951_v45 = vld [vmem:[%s948_s28 + $0x10] sm:$0xff]  ;;  %v949_v0 = vld [vmem:[%s948_s28] sm:$0xff]  ;;  %v952_v1 = vld [vmem:[%s948_s28 + $0x18] sm:$0xff]  ;;  %v955_v5 = vsub.s32 0, %v2177_v17  ;;  %v1006_v32 = vsub.s32 1, %v2177_v17  ;;  %v1053_v42 = vsub.s32 2, %v2177_v17 }
 0x291   : >> { %985 = vperm.xlu1 %1680, %v951_v45   ;;  %971 = vperm.xlu0 %1679, %v949_v0   ;;  %v950_v2 = vld [vmem:[%s948_s28 + $0x8] sm:$0xff]  ;;  %v1100_v54 = vsub.s32 3, %v2177_v17 }
 0x292   : >> { %v956_v53 = vrot.slane %v2181_v8, %v955_v5  ;;  %v968_v22 = vrot.slane %v2187_v20, %v955_v5  ;;  %v1007_v38 = vrot.slane %v2181_v8, %v1006_v32  ;;  %v1054_v48 = vrot.slane %v2181_v8, %v1053_v42 }
 0x293   : >> { %v1101_v57 = vrot.slane %v2181_v8, %v1100_v54 }
 0x294   : >> { %v957_v18 = vmul.f32 %v956_v53, %v2107_v14  ;;  %v958_v29 = vmul.f32 %v956_v53, %v2112_v37  ;;  %v1009_v41 = vmul.f32 %v1007_v38, %v2112_v37  ;;  %v1055_v52 = vmul.f32 %v1054_v48, %v2107_v14 }
 0x295   : >> { %990 = vperm.xlu1 %1680, %v952_v1   ;;  %976 = vperm.xlu0 %1679, %v950_v2   ;;  %v1056_v55 = vmul.f32 %v1054_v48, %v2112_v37  ;;  %v1103_v61 = vmul.f32 %v1101_v57, %v2112_v37  ;;  %v1102_v62 = vmul.f32 %v1101_v57, %v2107_v14 }
 0x296   : >> { %v959_v60 = vmul.f32 1.442695, %v957_v18  ;;  %v961_v19 = vmul.f32 1.442695, %v958_v29  ;;  %v1012_v47 = vmul.f32 1.442695, %v1009_v41  ;;  %v1113_v48 = vrot.slane %v2187_v20, %v1100_v54 }
 0x297   : >> { %v1057_v43 = vmul.f32 1.442695, %v1055_v52  ;;  %v1059_v58 = vmul.f32 1.442695, %v1056_v55  ;;  %v1194_v18 = vsub.s32 5, %v2177_v17 }
 0x298   : >> { %1701 = vpow2.f32 %v959_v60 }
 0x299   : >> { %1681 = vset.pattern.permute.xlu1 %v1790_v3  ;;  %1686 = vset.pattern.permute.xlu0 %v1791_v4  ;;  %1703 = vpow2.f32 %v961_v19 }
 0x29a   : >> { %1025 = vperm.xlu1 %1681, %v950_v2   ;;  %1213 = vperm.xlu0 %1686, %v950_v2  }
 0x29e   : >> { %1682 = vset.pattern.permute.xlu1 %v1792_v6  ;;  %1687 = vset.pattern.permute.xlu0 %v1790_v3 }
 0x29f   : >> { %1068 = vperm.xlu1 %1682, %v949_v0   ;;  %1021 = vperm.xlu0 %1687, %v949_v0  }
 0x2a2   : >> { %v1702_v21 = vpop.eup %1701 }
 0x2a3   : >> { %1683 = vset.pattern.permute.xlu1 %v1793_v9  ;;  %1033 = vperm.xlu0 %1687, %v951_v45   ;;  %v963_v12 = vmul.f32 %v1775_v39, %v1702_v21  ;;  %v1704_v30 = vpop.eup %1703 }
 0x2a4   : >> { %1115 = vperm.xlu1 %1683, %v949_v0   ;;  %v964_v13 = vmul.f32 %v1771_v15, %v1704_v30  ;;  %v1008_v15 = vmul.f32 %v1007_v38, %v2107_v14 }
 0x2a6   : >> { %v1010_v46 = vmul.f32 1.442695, %v1008_v15 }
 0x2a7   : >> { %1689 = vset.pattern.permute.xlu0 %v1792_v6 }
 0x2a8   : >> { %1119 = vperm.xlu1 %1683, %v950_v2   ;;  %1072 = vperm.xlu0 %1689, %v950_v2   ;;  %1705 = vpow2.f32 %v1010_v46 }
 0x2a9   : >> { %1707 = vpow2.f32 %v1012_v47 }
 0x2aa   : >> { %1709 = vpow2.f32 %v1057_v43 }
 0x2ab   : >> { %1711 = vpow2.f32 %v1059_v58 }
 0x2ac   : >> { %1684 = vset.pattern.permute.xlu1 %v1794_v50  ;;  %1084 = vperm.xlu0 %1689, %v952_v1  }
 0x2ad   : >> { %1166 = vperm.xlu1 %1684, %v950_v2  }
 0x2b0   : >> { %1692 = vset.pattern.permute.xlu0 %v1794_v50 }
 0x2b1   : >> { %1685 = vset.pattern.permute.xlu1 %v1791_v4  ;;  %1162 = vperm.xlu0 %1692, %v949_v0  }
 0x2b2   : >> { %1209 = vperm.xlu1 %1685, %v949_v0  }
 0x2b5   : >> { %1178 = vperm.xlu0 %1692, %v952_v1  }
 0x2b6   : >> { %1688 = vset.pattern.permute.xlu1 %v1795_v10 }
 0x2b7   : >> { %1256 = vperm.xlu1 %1688, %v949_v0  }
 0x2b9   : >> { %1697 = vset.pattern.permute.xlu0 %v1795_v10 }
 0x2ba   : >> { %1268 = vperm.xlu0 %1697, %v951_v45  }
 0x2bb   : >> { %1260 = vperm.xlu1 %1688, %v950_v2  }
 0x2be   : >> { %1698 = vset.pattern.permute.xlu0 %v1796_v11 }
 0x2bf   : >> { %1690 = vset.pattern.permute.xlu1 %v1790_v3  ;;  %1303 = vperm.xlu0 %1698, %v949_v0  }
 0x2c0   : >> { %1037 = vperm.xlu1 %1690, %v952_v1  }
 0x2c3   : >> { %1319 = vperm.xlu0 %1698, %v952_v1  }
 0x2c4   : >> { %1691 = vset.pattern.permute.xlu1 %v1792_v6 }
 0x2c5   : >> { %1080 = vperm.xlu1 %1691, %v951_v45  }
 0x2c9   : >> { %1693 = vset.pattern.permute.xlu1 %v1793_v9  ;;  %v1104_v9 = vmul.f32 1.442695, %v1102_v62 }
 0x2ca   : >> { %1127 = vperm.xlu1 %1693, %v951_v45  }
 0x2ce   : >> { %1131 = vperm.xlu1 %1693, %v952_v1  }
 0x2d2   : >> { %1694 = vset.pattern.permute.xlu1 %v1796_v11 }
 0x2d3   : >> { %1307 = vperm.xlu1 %1694, %v950_v2   ;;  %v1019_v2 = vrot.slane %v2187_v20, %v1006_v32 }
 0x2d7   : >> { %1695 = vset.pattern.permute.xlu1 %v1794_v50 }
 0x2d8   : >> { %1174 = vperm.xlu1 %1695, %v951_v45  }
 0x2dc   : >> { %1696 = vset.pattern.permute.xlu1 %v1791_v4  ;;  %v1106_v4 = vmul.f32 1.442695, %v1103_v61  ;;  %v1288_v61 = vsub.s32 7, %v2177_v17 }
 0x2dd   : >> { %1221 = vperm.xlu1 %1696, %v951_v45  }
 0x2de   : >> { %1713 = vpow2.f32 %v1106_v4 }
 0x2df   : >> { %1715 = vpow2.f32 %v1104_v9 }
 0x2e1   : >> { %1225 = vperm.xlu1 %1696, %v952_v1  }
 0x2e5   : >> { %1699 = vset.pattern.permute.xlu1 %v1795_v10 }
 0x2e6   : >> { %1272 = vperm.xlu1 %1699, %v952_v1   ;;  %v1706_v1 = vpop.eup %1705 }
 0x2e7   : >> { %v1708_v3 = vpop.eup %1707 }
 0x2ea   : >> { %1700 = vset.pattern.permute.xlu1 %v1796_v11 }
 0x2eb   : >> { %1315 = vperm.xlu1 %1700, %v951_v45   ;;  %v1147_v45 = vsub.s32 4, %v2177_v17 }
 0x2ed   : >> { %v1148_v50 = vrot.slane %v2181_v8, %v1147_v45  ;;  %v1160_v4 = vrot.slane %v2187_v20, %v1147_v45 }
 0x2ef   : >> { %v1150_v29 = vmul.f32 %v1148_v50, %v2112_v37  ;;  %v1149_v60 = vmul.f32 %v1148_v50, %v2107_v14 }
 0x310   : >> { %v986_v63 = vpop.permute.xlu1 %985  ;;  %v972_v33 = vpop.permute.xlu0 %971 }
 0x311   : >> { %v979_v7 = vmul.f32 %v972_v33, %v968_v22  ;;  %v1066_v33 = vrot.slane %v2187_v20, %v1053_v42 }
 0x313   : >> { %v981_v23 = vadd.f32 %v979_v7, %v963_v12  ;;  %v1710_v12 = vpop.eup %1709 }
 0x314   : >> { %v991_v34 = vpop.permute.xlu1 %990  ;;  %v977_v24 = vpop.permute.xlu0 %976 }
 0x315   : >> { %v980_v25 = vmul.f32 %v977_v24, %v968_v22  ;;  %v993_v26 = vmul.f32 %v986_v63, %v981_v23  ;;  %v1014_v10 = vmul.f32 %v1706_v1, %v981_v23  ;;  %v1195_v63 = vrot.slane %v2181_v8, %v1194_v18  ;;  %v1712_v7 = vpop.eup %1711 }
 0x316   : >> { %v1153_v23 = vmul.f32 1.442695, %v1150_v29 }
 0x317   : >> { %v982_v27 = vadd.f32 %v980_v25, %v964_v13  ;;  %v995_v35 = vsel %vm323_vm0, %v993_v26, 0.0  ;;  %v1196_v25 = vmul.f32 %v1195_v63, %v2107_v14 }
 0x318   : >> { %1717 = vpow2.f32 %v1153_v23 }
 0x319   : >> { %v994_v28 = vmul.f32 %v991_v34, %v982_v27  ;;  %v1026_v31 = vpop.permute.xlu1 %1025  ;;  %v2206_v51 = vpop.permute.xlu0 %1213  ;;  %v1015_v5 = vmul.f32 %v1708_v3, %v982_v27  ;;  %v1151_v34 = vmul.f32 1.442695, %v1149_v60  ;;  %v1241_v27 = vsub.s32 6, %v2177_v17 }
 0x31a   : >> { %v1029_v53 = vmul.f32 %v1026_v31, %v1019_v2  ;;  %v1197_v31 = vmul.f32 %v1195_v63, %v2112_v37  ;;  %v1198_v41 = vmul.f32 1.442695, %v1196_v25 }
 0x31b   : >> { %v996_v39 = vsel %vm323_vm0, %v994_v28, 0.0  ;;  %1719 = vpow2.f32 %v1151_v34  ;;  %v1242_v46 = vrot.slane %v2181_v8, %v1241_v27 }
 0x31c   : >> { %v2195_v36 = vadd.f32 %v996_v39, %v995_v35  ;;  %v1031_v30 = vadd.f32 %v1029_v53, %v1015_v5  ;;  %v1714_v39 = vpop.eup %1713  ;;  %v1200_v47 = vmul.f32 1.442695, %v1197_v31  ;;  %1721 = vpow2.f32 %v1198_v41 }
 0x31d   : >> { %v1716_v15 = vpop.eup %1715  ;;  %v1243_v57 = vmul.f32 %v1242_v46, %v2107_v14 }
 0x31e   : >> { %v1069_v40 = vpop.permute.xlu1 %1068  ;;  %v1022_v59 = vpop.permute.xlu0 %1021  ;;  %v1062_v26 = vmul.f32 %v1712_v7, %v1031_v30  ;;  %1723 = vpow2.f32 %v1200_v47 }
 0x31f   : >> { %v1028_v11 = vmul.f32 %v1022_v59, %v1019_v2  ;;  %v1075_v32 = vmul.f32 %v1069_v40, %v1066_v33  ;;  %v1244_v59 = vmul.f32 %v1242_v46, %v2112_v37 }
 0x321   : >> { %v2230_v19 = vadd.f32 %v1028_v11, %v1014_v10  ;;  %v1247_v10 = vmul.f32 1.442695, %v1244_v59 }
 0x322   : >> { %v2220_v6 = vpop.permute.xlu0 %1033  ;;  %v1718_v3 = vpop.eup %1717 }
 0x323   : >> { %v2201_v44 = vpop.permute.xlu1 %1115  ;;  %v1061_v24 = vmul.f32 %v1710_v12, %v2230_v19 }
 0x324   : >> { %v1122_v58 = vmul.f32 %v2201_v44, %v1113_v48  ;;  %v1289_v44 = vrot.slane %v2181_v8, %v1288_v61 }
 0x325   : >> { %v1077_v38 = vadd.f32 %v1075_v32, %v1061_v24  ;;  %v1720_v9 = vpop.eup %1719 }
 0x326   : >> { %v1291_v29 = vmul.f32 %v1289_v44, %v2112_v37  ;;  %v1722_v12 = vpop.eup %1721  ;;  %v1290_v7 = vmul.f32 %v1289_v44, %v2107_v14 }
 0x327   : >> { %v2204_v49 = vpop.permute.xlu1 %1119  ;;  %v1073_v21 = vpop.permute.xlu0 %1072  ;;  %v1108_v43 = vmul.f32 %v1716_v15, %v1077_v38 }
 0x328   : >> { %v1076_v13 = vmul.f32 %v1073_v21, %v1066_v33  ;;  %v1123_v40 = vmul.f32 %v2204_v49, %v1113_v48  ;;  %v1245_v49 = vmul.f32 1.442695, %v1243_v57  ;;  %v1724_v63 = vpop.eup %1723  ;;  %v1207_v33 = vrot.slane %v2187_v20, %v1194_v18 }
 0x329   : >> { %v1124_v54 = vadd.f32 %v1122_v58, %v1108_v43  ;;  %v1294_v8 = vmul.f32 1.442695, %v1291_v29  ;;  %v1292_v41 = vmul.f32 1.442695, %v1290_v7 }
 0x32a   : >> { %v1078_v35 = vadd.f32 %v1076_v13, %v1062_v26  ;;  %1725 = vpow2.f32 %v1245_v49  ;;  %v1040_v13 = vmul.f32 %v2220_v6, %v2230_v19  ;;  %v1217_v25 = vmul.f32 %v2206_v51, %v1207_v33 }
 0x32b   : >> { %v1085_v42 = vpop.permute.xlu0 %1084  ;;  %v1155_v53 = vmul.f32 %v1720_v9, %v1124_v54  ;;  %1727 = vpow2.f32 %v1247_v10 }
 0x32c   : >> { %v2211_v56 = vpop.permute.xlu1 %1166  ;;  %v1109_v55 = vmul.f32 %v1714_v39, %v1078_v35  ;;  %v1088_v39 = vmul.f32 %v1085_v42, %v1078_v35  ;;  %1729 = vpow2.f32 %v1294_v8  ;;  %v1042_v18 = vsel %vm323_vm0, %v1040_v13, 0.0 }
 0x32d   : >> { %v1170_v60 = vmul.f32 %v2211_v56, %v1160_v4  ;;  %v1254_v35 = vrot.slane %v2187_v20, %v1241_v27  ;;  %1731 = vpow2.f32 %v1292_v41 }
 0x32e   : >> { %v1125_v1 = vadd.f32 %v1123_v40, %v1109_v55 }
 0x330   : >> { %v1163_v62 = vpop.permute.xlu0 %1162  ;;  %v1156_v11 = vmul.f32 %v1718_v3, %v1125_v1 }
 0x331   : >> { %v2217_v0 = vpop.permute.xlu1 %1209  ;;  %v1169_v50 = vmul.f32 %v1163_v62, %v1160_v4  ;;  %v998_v4 = vrot.slane %v2195_v36, 4 }
 0x332   : >> { %v1172_v45 = vadd.f32 %v1170_v60, %v1156_v11  ;;  %v1216_v15 = vmul.f32 %v2217_v0, %v1207_v33 }
 0x333   : >> { %v1171_v21 = vadd.f32 %v1169_v50, %v1155_v53 }
 0x334   : >> { %v1179_v26 = vpop.permute.xlu0 %1178  ;;  %v1203_v31 = vmul.f32 %v1724_v63, %v1172_v45  ;;  %v1726_v51 = vpop.eup %1725 }
 0x335   : >> { %v1202_v24 = vmul.f32 %v1722_v12, %v1171_v21  ;;  %v1182_v19 = vmul.f32 %v1179_v26, %v1172_v45  ;;  %v1728_v42 = vpop.eup %1727  ;;  %v999_v45 = vadd.f32 %v998_v4, %v2195_v36 }
 0x336   : >> { %v2225_v16 = vpop.permute.xlu1 %1256  ;;  %v1730_v11 = vpop.eup %1729 }
 0x337   : >> { %v1218_v6 = vadd.f32 %v1216_v15, %v1202_v24  ;;  %v1184_v59 = vsel %vm323_vm0, %v1182_v19, 0.0  ;;  %v1263_v9 = vmul.f32 %v2225_v16, %v1254_v35 }
 0x339   : >> { %v1269_v62 = vpop.permute.xlu0 %1268 }
 0x33a   : >> { %v2232_v22 = vpop.permute.xlu1 %1260 }
 0x33b   : >> { %v1264_v40 = vmul.f32 %v2232_v22, %v1254_v35  ;;  %v1301_v22 = vrot.slane %v2187_v20, %v1288_v61  ;;  %v1732_v20 = vpop.eup %1731 }
 0x33e   : >> { %v1304_v63 = vpop.permute.xlu0 %1303 }
 0x33f   : >> { %v1038_v28 = vpop.permute.xlu1 %1037  ;;  %v1310_v24 = vmul.f32 %v1304_v63, %v1301_v22 }
 0x340   : >> { %v1041_v34 = vmul.f32 %v1038_v28, %v1031_v30 }
 0x342   : >> { %v1043_v46 = vsel %vm323_vm0, %v1041_v34, 0.0 }
 0x343   : >> { %v1044_v55 = vadd.f32 %v1043_v46, %v1042_v18 }
 0x344   : >> { %v1081_v52 = vpop.permute.xlu1 %1080 }
 0x345   : >> { %v1087_v56 = vmul.f32 %v1081_v52, %v1077_v38  ;;  %v1219_v38 = vadd.f32 %v1217_v25, %v1203_v31  ;;  %v1090_v52 = vsel %vm323_vm0, %v1088_v39, 0.0  ;;  %v1045_v49 = vrot.slane %v1044_v55, 4  ;;  %v1320_v31 = vpop.permute.xlu0 %1319 }
 0x346   : >> { %v1000_v39 = vrot.slane %v999_v45, 2 }
 0x347   : >> { %v1089_v30 = vsel %vm323_vm0, %v1087_v56, 0.0  ;;  %v1250_v3 = vmul.f32 %v1728_v42, %v1219_v38  ;;  %v1046_v33 = vadd.f32 %v1045_v49, %v1044_v55 }
 0x348   : >> { %v1091_v57 = vadd.f32 %v1090_v52, %v1089_v30  ;;  %v1001_v55 = vadd.f32 %v1000_v39, %v999_v45 }
 0x349   : >> { %v1128_v2 = vpop.permute.xlu1 %1127  ;;  %v1266_v50 = vadd.f32 %v1264_v40, %v1250_v3  ;;  %v1047_v26 = vrot.slane %v1046_v33, 2 }
 0x34a   : >> { %v1134_v47 = vmul.f32 %v1128_v2, %v1124_v54  ;;  %v1092_v10 = vrot.slane %v1091_v57, 4 }
 0x34b   : >> { %v1297_v7 = vmul.f32 %v1730_v11, %v1266_v50 }
 0x34c   : >> { %v1136_v58 = vsel %vm323_vm0, %v1134_v47, 0.0  ;;  %v1093_v16 = vadd.f32 %v1092_v10, %v1091_v57 }
 0x34d   : >> { %v1132_v5 = vpop.permute.xlu1 %1131 }
 0x34e   : >> { %v1135_v32 = vmul.f32 %v1132_v5, %v1125_v1  ;;  %v1249_v1 = vmul.f32 %v1726_v51, %v1218_v6  ;;  %v1094_v41 = vrot.slane %v1093_v16, 2 }
 0x350   : >> { %v1137_v0 = vsel %vm323_vm0, %v1135_v32, 0.0  ;;  %v1265_v5 = vadd.f32 %v1263_v9, %v1249_v1 }
 0x351   : >> { %v1138_v27 = vadd.f32 %v1137_v0, %v1136_v58  ;;  %v1095_v0 = vadd.f32 %v1094_v41, %v1093_v16 }
 0x352   : >> { %v1308_v23 = vpop.permute.xlu1 %1307  ;;  %v1275_v61 = vmul.f32 %v1269_v62, %v1265_v5  ;;  %v1296_v18 = vmul.f32 %v1732_v20, %v1265_v5 }
 0x353   : >> { %v1139_v53 = vrot.slane %v1138_v27, 4  ;;  %v1311_v60 = vmul.f32 %v1308_v23, %v1301_v22 }
 0x354   : >> { %v1277_v46 = vsel %vm323_vm0, %v1275_v61, 0.0  ;;  %v1312_v51 = vadd.f32 %v1310_v24, %v1296_v18  }
 0x355   : >> { %v1140_v13 = vadd.f32 %v1139_v53, %v1138_v27  ;;  %v2287_v15 = vadd.f32 %v1311_v60, %v1297_v7  }
 0x356   : >> { %v2328_v39 = vmov %v1312_v51  ;;  %1350 = vst.msk [vmem:[#allocation2] sm:$0xff] (%p936_p5), %vm323_vm0, %v1312_v51 }
 0x357   : >> { %v1175_v48 = vpop.permute.xlu1 %1174  ;;  %v2326_v56 = vmov %v2287_v15  ;;  %v1141_v47 = vrot.slane %v1140_v13, 2  ;;  %v1048_v15 = vadd.f32 %v1047_v26, %v1046_v33 }
 0x358   : >> { %v1181_v28 = vmul.f32 %v1175_v48, %v1171_v21  ;;  %v1323_v19 = vmul.f32 %v1320_v31, %v2326_v56  ;;  %1351 = vst.msk [vmem:[#allocation2 + $0x8] sm:$0xff] (%p936_p5), %vm323_vm0, %v2326_v56 }
 0x359   : >> { %v1049_v62 = vrot.slane %v1048_v15, 1 }
 0x35a   : >> { %v1183_v43 = vsel %vm323_vm0, %v1181_v28, 0.0  ;;  %v1325_v40 = vsel %vm323_vm0, %v1323_v19, 0.0 }
 0x35b   : >> { %v1185_v54 = vadd.f32 %v1184_v59, %v1183_v43  ;;  %v1142_v43 = vadd.f32 %v1141_v47, %v1140_v13  ;;  %v1050_v22 = vadd.f32 %v1049_v62, %v1048_v15  ;;  %v1347_v13 = vld [vmem:[%s1346_s9] sm:$0xff]  ;;  %v2327_v15 = vmov %v2326_v56 }
 0x35c   : >> { %v1222_v2 = vpop.permute.xlu1 %1221 }
 0x35d   : >> { %v1228_v44 = vmul.f32 %v1222_v2, %v1218_v6  ;;  %v1186_v21 = vrot.slane %v1185_v54, 4  ;;  %v1096_v2 = vrot.slane %v1095_v0, 1  ;;  %v1143_v4 = vrot.slane %v1142_v43, 1 }
 0x35f   : >> { %v1230_v8 = vsel %vm323_vm0, %v1228_v44, 0.0  ;;  %v1187_v23 = vadd.f32 %v1186_v21, %v1185_v54  ;;  %v1002_v54 = vrot.slane %v1001_v55, 1  ;;  %v1097_v11 = vadd.f32 %v1096_v2, %v1095_v0 }
 0x360   : >> { %v1226_v29 = vpop.permute.xlu1 %1225 }
 0x361   : >> { %v1229_v12 = vmul.f32 %v1226_v29, %v1219_v38  ;;  %v1188_v30 = vrot.slane %v1187_v23, 2  ;;  %v1003_v53 = vadd.f32 %v1002_v54, %v1001_v55  ;;  %v1144_v29 = vadd.f32 %v1143_v4, %v1142_v43 }
 0x363   : >> { %v1231_v17 = vsel %vm323_vm0, %v1229_v12, 0.0  ;;  %v1189_v57 = vadd.f32 %v1188_v30, %v1187_v23  ;;  %v1334_v12 = vsel %vm1333_vm4, %v1003_v53, %v1050_v22 }
 0x364   : >> { %v1232_v34 = vadd.f32 %v1231_v17, %v1230_v8  ;;  %v1335_v33 = vsel %vm505_vm1, %v1334_v12, %v1097_v11 }
 0x365   : >> { %v1273_v25 = vpop.permute.xlu1 %1272  ;;  %v1190_v49 = vrot.slane %v1189_v57, 1  ;;  %v1337_v7 = vsel %vm1336_vm5, %v1335_v33, %v1144_v29 }
 0x366   : >> { %v1233_v36 = vrot.slane %v1232_v34, 4  ;;  %v1276_v32 = vmul.f32 %v1273_v25, %v1266_v50 }
 0x367   : >> { %v1191_v21 = vadd.f32 %v1190_v49, %v1189_v57 }
 0x368   : >> { %v1234_v48 = vadd.f32 %v1233_v36, %v1232_v34  ;;  %v1278_v6 = vsel %vm323_vm0, %v1276_v32, 0.0 }
 0x369   : >> { %v1279_v28 = vadd.f32 %v1278_v6, %v1277_v46  ;;  %v1339_v17 = vsel %vm1338_vm6, %v1337_v7, %v1191_v21 }
 0x36a   : >> { %v1235_v35 = vrot.slane %v1234_v48, 2  ;;  %v1316_v38 = vpop.permute.xlu1 %1315 }
 0x36b   : >> { %v1280_v42 = vrot.slane %v1279_v28, 4  ;;  %v1322_v52 = vmul.f32 %v1316_v38, %v1312_v51 }
 0x36c   : >> { %v1236_v1 = vadd.f32 %v1235_v35, %v1234_v48 }
 0x36d   : >> { %v1281_v58 = vadd.f32 %v1280_v42, %v1279_v28  ;;  %v1324_v59 = vsel %vm323_vm0, %v1322_v52, 0.0 }
 0x36e   : >> { %v1326_v27 = vadd.f32 %v1325_v40, %v1324_v59  ;;  %v1237_v10 = vrot.slane %v1236_v1, 1 }
 0x36f   : >> { %v1282_v3 = vrot.slane %v1281_v58, 2 }
 0x370   : >> { %v1327_v9 = vrot.slane %v1326_v27, 4  ;;  %v1238_v45 = vadd.f32 %v1237_v10, %v1236_v1 }
 0x371   : >> { %v1283_v50 = vadd.f32 %v1282_v3, %v1281_v58 }
 0x372   : >> { %v1328_v44 = vadd.f32 %v1327_v9, %v1326_v27  ;;  %v1341_v20 = vsel %vm1340_vm7, %v1339_v17, %v1238_v45 }
 0x373   : >> { %v1284_v5 = vrot.slane %v1283_v50, 1 }
 0x374   : >> { %v1329_v60 = vrot.slane %v1328_v44, 2 }
 0x375   : >> { %v1285_v16 = vadd.f32 %v1284_v5, %v1283_v50 }
 0x376   : >> { %v1330_v63 = vadd.f32 %v1329_v60, %v1328_v44 }
 0x377   : >> { %v1343_v34 = vsel %vm1342_vm8, %v1341_v20, %v1285_v16 }
 0x378   : >> { %v1331_v8 = vrot.slane %v1330_v63, 1 }
 0x379   : > { %938 = sbr.rel (!%p936_p5) target bundleno = 650 (0x28a), region = 100 }
 0x37a   : >> { %v1332_v61 = vadd.f32 %v1331_v8, %v1330_v63 }
 0x37c   : >> { %v1345_v24 = vsel %vm1344_vm9, %v1343_v34, %v1332_v61 }
 0x37d   : >> { %v1348_v23 = vadd.f32 %v1347_v13, %v1345_v24 }
 0x37f   : >> { %1349 = vst.msk [vmem:[%s1346_s9] sm:$0xff] %vm323_vm0, %v1348_v23 }
 0x380 PF: > { %s17_s26 = sadd.s32 1, %s1767_s26   ;;  %s2329_s24 = smov %s1763_s25 }
 0x381   : > { %p14_p6 = scmp.ge.s32.totalorder %s17_s26, 4   ;;  %s2330_s25 = smov %s2332_s27 }
 0x383   :  { %16 = sbr.rel (!%p14_p6) target bundleno = 2 (0x2), region = 111 }

// kernel: _lambda_.12
= control target key start
LH: loop header
LB: loop body
LE: loop exit
PB: predicated region body
PF: predicated region fallthrough
CT: control target
= control target key end

     0   :  { %s1858_s24 = smov 0   ;;  %s1860_s25 = smov 0   ;;  %s2357_s0 = inlined_call_operand.vmem [shape: bf16[2,64,64], index: 0, kind: input, shape index: {}]   ;;  %s2358_s1 = inlined_call_operand.vmem [shape: bf16[64,2], index: 1, kind: input, shape index: {}]   ;;  %s2359_s2 = inlined_call_operand.vmem [shape: bf16[32,64], index: 2, kind: input, shape index: {}]   ;;  %s2360_s3 = inlined_call_operand.vmem [shape: f32[2,64], index: 3, kind: input, shape index: {}]   ;;  %s2361_s4 = inlined_call_operand.vmem [shape: f32[16,64], index: 4, kind: input, shape index: {}]   ;;  %s2362_s5 = inlined_call_operand.vmem [shape: f32[1,64], index: 5, kind: input, shape index: {}]   ;;  %s2363_s6 = inlined_call_operand.vmem [shape: f32[1,64], index: 6, kind: input, shape index: {}]   ;;  %s2364_s7 = inlined_call_operand.vmem [shape: f32[2,64,64], index: 7, kind: output, shape index: {}]  }
   0x1   :  { %s1862_s26 = smov 0  }
   0x2 LB: > { %s29_s27 = sadd.s32 1, %s1784_s25  ;;  %p1478_p0 = scmp.ge.s32.totalorder %s1788_s26, 1  ;;  %s1788_s26 = sphi %s1862_s26, %s17_s26   ;;  %s1784_s25 = sphi %s1860_s25, %s2370_s25   ;;  %s1780_s24 = sphi %s1858_s24, %s2369_s24  }
   0x3   : > { %p31_p1 = scmp.ge.s32.totalorder %s29_s27, 2  ;;  %p264_p2 = scmp.lt.s32.totalorder %s1788_s26, 3 }
   0x5   : > { %s2372_s27 = smov (%p31_p1, %s29_s27), 0  ;;  %p265_p3 = pnand %p1478_p0, %p264_p2 }
   0x6   : > { %v1649_v0 = vld [vmem:[%s2358_s1] sm:$0xff] (!%p265_p3)   ;;  %v1650_v1 = vld [vmem:[%s2358_s1 + $0x8] sm:$0xff] (!%p265_p3)   ;;  %p308_p4 = scmp.lt.s32.totalorder (!%p265_p3), %s1780_s24, 1  ;;  %vm335_vm0 = vcmask (!%p265_p3), 523264   ;;  %v1802_v2 = vmov (!%p265_p3), 0.0   ;;  %v1651_v3 = vld [vmem:[%s2358_s1 + $0x10] sm:$0xff] (!%p265_p3)  }
   0x7   : > { %268 = sbr.rel (%p265_p3) target bundleno = 897 (0x381), region = 48  ;;  %1539 = vmatprep.subr.bf16.mxu0 (!%p265_p3), %v1649_v0  ;;  %336 = vst.msk [vmem:[#allocation2] sm:$0xff] (!%p265_p3), %vm335_vm0, %v1802_v2  ;;  %337 = vst.msk [vmem:[#allocation2 + $0x8] sm:$0xff] (!%p265_p3), %vm335_vm0, %v1802_v2  ;;  %v484_v4 = vld [vmem:[%s2360_s3] sm:$0x3] (!%p265_p3)  ;;  %vm517_vm1 = vcmask (!%p265_p3), 1041408  }
   0x8   : > { %1540 = vmatpush3.bf16.msra.mxu0 (!%p265_p3), %v1649_v0  ;;  %1555 = vmatprep.subr.msk.mxu1 (!%p265_p3), %vm517_vm1, %v484_v4  ;;  %v1900_v6 = vld [vmem:[%s2362_s5] ss:$0 sm:$0xff] (!%p265_p3)  ;;  %v1652_v7 = vld [vmem:[%s2358_s1 + $0x18] sm:$0xff] (!%p265_p3)   ;;  %vm492_vm2 = vcmask (!%p265_p3), 15360   ;;  %v1658_v28 = vld [vmem:[%s2359_s2 + $0x8] sm:$0xff] (!%p265_p3)   ;;  %vm791_vm3 = vcmask (!%p265_p3), 64512  }
   0x9   : > { %1541 = vmatprep.subr.bf16.mxu0 (!%p265_p3), %v1650_v1  ;;  %1556 = vmatpush3.msk.msra.mxu1 (!%p265_p3), %vm517_vm1, %v484_v4  ;;  %v1657_v25 = vld [vmem:[%s2359_s2] sm:$0xff] (!%p265_p3)   ;;  %s1803_s11 = smov (!%p265_p3), 112   ;;  %s1804_s12 = smov (!%p265_p3), 120  }
   0xa   : > { %v1495_v41 = vld [vmem:[%s2363_s6] ss:$0 sm:$0xff] (!%p265_p3)  ;;  %s1806_s14 = smov (!%p265_p3), 96   ;;  %s1807_s15 = smov (!%p265_p3), 88  }
   0xb   : > { %s1809_s21 = smov (!%p265_p3), 72   ;;  %s2183_s22 = smov (!%p265_p3), 0  }
   0xc   : > { %1542 = vmatpush3.bf16.msra.mxu0 (!%p265_p3), %v1650_v1 }
   0xd   : > { %1543 = vmatprep.subr.bf16.mxu0 (!%p265_p3), %v1651_v3 }
   0xe   : > { %s2374_s24 = smov (!%p308_p4, %s1780_s24), 1 }
   0xf   : > { %s1514_s13 = sshll.u32 %s2374_s24, 5  ;;  %s1515_s17 = sshll.u32 %s2374_s24, 6 }
  0x10   : > { %s315_s16 = scalar_lea.vmem %s2357_s0, %s1514_s13  ;;  %s1910_s24 = scalar_lea.vmem %s2364_s7, %s1515_s17  ;;  %1544 = vmatpush3.bf16.msra.mxu0 %v1651_v3 }
  0x11   : > { %v1895_v5 = vld [vmem:[%s315_s16] sm:$0xff]   ;;  %v1922_v12 = vld [vmem:[%s315_s16 + $0x8] sm:$0xff]   ;;  %1545 = vmatprep.subr.bf16.mxu0 %v1652_v7  ;;  %v1928_v13 = vld [vmem:[%s315_s16 + $0x10] sm:$0xff]   ;;  %s1805_s13 = smov 104  }
  0x12   : > { %v346_v8 = vunpack.c.l.bf16 %v1895_v5  ;;  %v347_v9 = vunpack.c.h.bf16 %v1895_v5  ;;  %1547 = vmatprep.mubr.msk.bf16.mxu0 %vm335_vm0, %v1895_v5  ;;  %1581 = vmatprep.subr.msk.bf16.mxu1 %vm335_vm0, %v1895_v5  ;;  %v1934_v14 = vld [vmem:[%s315_s16 + $0x18] sm:$0xff]   ;;  %v408_v18 = vsel %vm335_vm0, %v1895_v5, 0  ;;  %v411_v23 = vsel %vm335_vm0, %v1922_v12, 0  ;;  %s1808_s16 = smov 80  }
  0x13   : > { %v414_v26 = vsel %vm335_vm0, %v1928_v13, 0  ;;  %v417_v27 = vsel %vm335_vm0, %v1934_v14, 0  ;;  %v349_v29 = vunpack.c.h.bf16 %v1922_v12  ;;  %v348_v30 = vunpack.c.l.bf16 %v1922_v12 }
  0x14   : > { %v926_v10 = vmul.f32 %v1900_v6, %v346_v8  ;;  %v927_v11 = vmul.f32 %v1900_v6, %v347_v9  ;;  %1546 = vmatpush3.bf16.msra.mxu0 %v1652_v7  ;;  %v351_v33 = vunpack.c.h.bf16 %v1928_v13  ;;  %v350_v34 = vunpack.c.l.bf16 %v1928_v13 }
  0x15   : > { %v929_v31 = vmul.f32 %v1900_v6, %v349_v29  ;;  %v928_v32 = vmul.f32 %v1900_v6, %v348_v30  ;;  %v353_v37 = vunpack.c.h.bf16 %v1934_v14  ;;  %v352_v39 = vunpack.c.l.bf16 %v1934_v14 }
  0x16   : > { %934 = vst.msk [vmem:[%s1910_s24] sm:$0xff] %vm335_vm0, %v926_v10  ;;  %935 = vst.msk [vmem:[%s1910_s24 + $0x8] sm:$0xff] %vm335_vm0, %v927_v11  ;;  %v931_v35 = vmul.f32 %v1900_v6, %v351_v33  ;;  %v930_v36 = vmul.f32 %v1900_v6, %v350_v34 }
  0x17   : > { %1548 = vmatmul.mubr.msk.bf16.vlgmr.msra.gmra.mrb[0].mxu0 %vm335_vm0, %v1922_v12  ;;  %937 = vst.msk [vmem:[%s1910_s24 + $0x18] sm:$0xff] %vm335_vm0, %v929_v31  ;;  %936 = vst.msk [vmem:[%s1910_s24 + $0x10] sm:$0xff] %vm335_vm0, %v928_v32  ;;  %v933_v38 = vmul.f32 %v1900_v6, %v353_v37  ;;  %v932_v40 = vmul.f32 %v1900_v6, %v352_v39 }
  0x18   : > { %1551 = vmatprep.mubr.msk.bf16.mxu0 %vm335_vm0, %v1928_v13  ;;  %939 = vst.msk [vmem:[%s1910_s24 + $0x28] sm:$0xff] %vm335_vm0, %v931_v35  ;;  %938 = vst.msk [vmem:[%s1910_s24 + $0x20] sm:$0xff] %vm335_vm0, %v930_v36 }
  0x19   : > { %941 = vst.msk [vmem:[%s1910_s24 + $0x38] sm:$0xff] %vm335_vm0, %v933_v38  ;;  %940 = vst.msk [vmem:[%s1910_s24 + $0x30] sm:$0xff] %vm335_vm0, %v932_v40 }
  0x1f   : > { %1552 = vmatmul.mubr.msk.bf16.gmra.mrb[4].mxu0 %vm335_vm0, %v1934_v14 }
  0xea   : > { %v1549_v15 = vpop.f32.mrb[0].mxu0 }
  0xeb   : > { %v453_v16 = vpop.f32.mrb[1].mxu0 }
  0xec   : > { %v1550_v17 = vpop.f32.mrb[2].mxu0  ;;  %1557 = vmatprep.mubr.msk.f32.mxu1 %vm492_vm2, %v453_v16 }
  0xed   : > { %v456_v19 = vpop.f32.mrb[3].mxu0 }
  0xee   : > { %1558 = vmatmul.mubr.msk.f32.vlgmr.msra.gmra.mrb[0].mxu1 %vm492_vm2, %v456_v19 }
  0xef   : > { %1570 = vmatpush3.bf16.xpose.msra.mxu1 %v408_v18  ;;  %1560 = vmatprep.mubr.msk.f32.mxu1 %vm492_vm2, %v1549_v15 }
  0xf0   : > { %1582 = vmatprep.subr.msk.bf16.mxu1 %vm335_vm0, %v1922_v12 }
  0xf2   : > { %v1553_v20 = vpop.f32.mrb[4].mxu0  ;;  %1561 = vmatmul.mubr.msk.f32.gmra.mrb[2].mxu1 %vm492_vm2, %v1550_v17 }
  0xf3   : > { %v469_v21 = vpop.f32.mrb[5].mxu0 }
  0xf4   : > { %v1554_v22 = vpop.f32.mrb[6].mxu0  ;;  %1563 = vmatprep.mubr.msk.f32.mxu1 %vm492_vm2, %v469_v21 }
  0xf5   : > { %v472_v24 = vpop.f32.mrb[7].mxu0 }
  0xf6   : > { %1564 = vmatmul.mubr.msk.f32.gmra.mrb[4].mxu1 %vm492_vm2, %v472_v24 }
  0xf7   : > { %1572 = vmatpush3.bf16.xpose.msra.mxu1 %v411_v23  ;;  %1566 = vmatprep.mubr.msk.f32.mxu1 %vm492_vm2, %v1553_v20 }
  0xf8   : > { %1583 = vmatprep.subr.msk.bf16.mxu1 %vm335_vm0, %v1928_v13 }
  0xfa   : > { %1567 = vmatmul.mubr.msk.f32.gmra.mrb[6].mxu1 %vm492_vm2, %v1554_v22 }
  0xfb   : > { %1577 = vmatprep.mubr.msk.bf16.mxu1 %vm335_vm0, %v1657_v25 }
  0xff   : > { %1574 = vmatpush3.bf16.xpose.msra.mxu1 %v414_v26 }
 0x100   : > { %1584 = vmatprep.subr.msk.bf16.mxu1 %vm335_vm0, %v1934_v14  ;;  %v2128_v14 = vld [vmem:[%s2361_s4] sm:$0xff] }
 0x107   : > { %1576 = vmatpush3.bf16.xpose.msra.mxu1 %v417_v27 }
 0x10e   : > { %1578 = vmatmul.mubr.msk.bf16.vlgmr.msra.gmra.mrb[8].mxu1 %vm335_vm0, %v1658_v28 }
 0x1c1   : > { %v1559_v42 = vpop.f32.mrb[0].mxu1 }
 0x1c2   : > { %v2007_v43 = vadd.f32 %v1559_v42, %v1495_v41  ;;  %v587_v44 = vpop.f32.mrb[1].mxu1 }
 0x1c3   : > { %v2009_v45 = vadd.f32 %v1495_v41, %v587_v44 }
 0x1c4   : > { %v635_v46 = vand.u32 2147483647, %v2007_v43 }
 0x1c5   : > { %v634_v47 = vand.u32 2147483647, %v2009_v45  ;;  %v1562_v48 = vpop.f32.mrb[2].mxu1 }
 0x1c6   : > { %v643_v49 = vsub.f32 0.0, %v635_v46  ;;  %v2013_v50 = vadd.f32 %v1562_v48, %v1495_v41  ;;  %v597_v51 = vpop.f32.mrb[3].mxu1 }
 0x1c7   : > { %v642_v52 = vsub.f32 0.0, %v634_v47  ;;  %v2015_v53 = vadd.f32 %v1495_v41, %v597_v51 }
 0x1c8   : > { %v652_v54 = vmul.f32 1.442695, %v643_v49  ;;  %v637_v55 = vand.u32 2147483647, %v2013_v50  ;;  %v627_v49 = vmax.f32 %v2007_v43, 0.0 }
 0x1c9   : > { %v650_v56 = vmul.f32 1.442695, %v642_v52  ;;  %v636_v57 = vand.u32 2147483647, %v2015_v53  ;;  %v1565_v58 = vpop.f32.mrb[4].mxu1 }
 0x1ca   : > { %1663 = vpow2.f32 %v652_v54  ;;  %v645_v59 = vsub.f32 0.0, %v637_v55  ;;  %v2019_v60 = vadd.f32 %v1565_v58, %v1495_v41  ;;  %v607_v61 = vpop.f32.mrb[5].mxu1  ;;  %v626_v55 = vmax.f32 %v2009_v45, 0.0 }
 0x1cb   : > { %1665 = vpow2.f32 %v650_v56  ;;  %v644_v62 = vsub.f32 0.0, %v636_v57  ;;  %v2021_v63 = vadd.f32 %v1495_v41, %v607_v61 }
 0x1cc   : > { %v656_v0 = vmul.f32 1.442695, %v645_v59  ;;  %v639_v1 = vand.u32 2147483647, %v2019_v60 }
 0x1cd   : > { %v654_v2 = vmul.f32 1.442695, %v644_v62  ;;  %v638_v3 = vand.u32 2147483647, %v2021_v63  ;;  %v1568_v4 = vpop.f32.mrb[6].mxu1 }
 0x1ce   : > { %1667 = vpow2.f32 %v656_v0  ;;  %v647_v6 = vsub.f32 0.0, %v639_v1  ;;  %v2025_v7 = vadd.f32 %v1568_v4, %v1495_v41  ;;  %v617_v10 = vpop.f32.mrb[7].mxu1  ;;  %v629_v1 = vmax.f32 %v2013_v50, 0.0 }
 0x1cf   : > { %1669 = vpow2.f32 %v654_v2  ;;  %v646_v11 = vsub.f32 0.0, %v638_v3  ;;  %v2027_v15 = vadd.f32 %v1495_v41, %v617_v10  ;;  %v628_v4 = vmax.f32 %v2015_v53, 0.0 }
 0x1d0   : > { %v660_v16 = vmul.f32 1.442695, %v647_v6  ;;  %v641_v17 = vand.u32 2147483647, %v2025_v7  ;;  %v630_v53 = vmax.f32 %v2021_v63, 0.0 }
 0x1d1   : > { %v658_v18 = vmul.f32 1.442695, %v646_v11  ;;  %v640_v19 = vand.u32 2147483647, %v2027_v15 }
 0x1d2   : > { %1671 = vpow2.f32 %v660_v16  ;;  %v649_v20 = vsub.f32 0.0, %v641_v17  ;;  %v631_v17 = vmax.f32 %v2019_v60, 0.0 }
 0x1d3   : > { %1673 = vpow2.f32 %v658_v18  ;;  %v648_v21 = vsub.f32 0.0, %v640_v19 }
 0x1d4   : > { %v1664_v22 = vpop.eup %1663  ;;  %v664_v23 = vmul.f32 1.442695, %v649_v20 }
 0x1d5   : > { %v1666_v24 = vpop.eup %1665  ;;  %v667_v25 = vadd.f32 1.0, %v1664_v22  ;;  %v662_v26 = vmul.f32 1.442695, %v648_v21  ;;  %v633_v21 = vmax.f32 %v2025_v7, 0.0 }
 0x1d6   : > { %v666_v27 = vadd.f32 1.0, %v1666_v24  ;;  %1675 = vpow2.f32 %v664_v23 }
 0x1d7   : > { %1677 = vlog2.f32 %v667_v25 }
 0x1d8   : > { %v1668_v28 = vpop.eup %1667  ;;  %1679 = vlog2.f32 %v666_v27 }
 0x1d9   : > { %v1670_v31 = vpop.eup %1669  ;;  %v669_v32 = vadd.f32 1.0, %v1668_v28  ;;  %1681 = vpow2.f32 %v662_v26 }
 0x1da   : > { %v668_v35 = vadd.f32 1.0, %v1670_v31 }
 0x1db   : > { %1683 = vlog2.f32 %v669_v32 }
 0x1dc   : > { %v1672_v36 = vpop.eup %1671  ;;  %1685 = vlog2.f32 %v668_v35 }
 0x1dd   : > { %v1674_v38 = vpop.eup %1673  ;;  %v671_v40 = vadd.f32 1.0, %v1672_v36 }
 0x1de   : > { %v670_v41 = vadd.f32 1.0, %v1674_v38 }
 0x1df   : > { %1687 = vlog2.f32 %v671_v40 }
 0x1e0   : > { %v1676_v42 = vpop.eup %1675  ;;  %1689 = vlog2.f32 %v670_v41 }
 0x1e1   : > { %v1678_v44 = vpop.eup %1677  ;;  %v673_v46 = vadd.f32 1.0, %v1676_v42  ;;  %v2031_v47 = vpop.f32.mrb[8].mxu1 }
 0x1e2   : > { %v1680_v48 = vpop.eup %1679  ;;  %v677_v51 = vmul.f32 0.6931472, %v1678_v44  ;;  %794 = vst.msk [vmem:[#allocation5 + $0x10] sm:$0xff] %vm791_vm3, %v2031_v47  ;;  %821 = vrot.lane.b32.xlu0 %v2031_v47, %s1803_s11  ;;  %804 = vrot.lane.b32.xlu1 %v2031_v47, %s1804_s12  ;;  %v2040_v52 = vpop.f32.mrb[9].mxu1 }
 0x1e3   : > { %v1682_v54 = vpop.eup %1681  ;;  %v675_v56 = vmul.f32 0.6931472, %v1680_v48  ;;  %1691 = vlog2.f32 %v673_v46  ;;  %792 = vst.msk [vmem:[#allocation5] sm:$0xff] %vm791_vm3, %v2040_v52  ;;  %v2045_v43 = vpop.f32.mrb[10].mxu1 }
 0x1e4   : > { %v691_v57 = vadd.f32 %v677_v51, %v627_v49  ;;  %v672_v58 = vadd.f32 1.0, %v1682_v54  ;;  %795 = vst.msk [vmem:[#allocation5 + $0x18] sm:$0xff] %vm791_vm3, %v2045_v43  ;;  %v2049_v59 = vpop.f32.mrb[11].mxu1 }
 0x1e5   : > { %v1684_v61 = vpop.eup %1683  ;;  %v690_v62 = vadd.f32 %v675_v56, %v626_v55  ;;  %793 = vst.msk [vmem:[#allocation5 + $0x8] sm:$0xff] %vm791_vm3, %v2049_v59 }
 0x1e6   : > { %v1686_v45 = vpop.eup %1685  ;;  %699 = vst.msk [vmem:[#allocation3 + $0x8] sm:$0xff] %vm335_vm0, %v691_v57  ;;  %v707_v0 = vmul.f32 %v691_v57, %v347_v9  ;;  %v681_v2 = vmul.f32 0.6931472, %v1684_v61  ;;  %1693 = vlog2.f32 %v672_v58  ;;  %838 = vrot.lane.b32.xlu0 %v2031_v47, %s1805_s13  ;;  %806 = vrot.lane.b32.xlu1 %v2045_v43, %s1804_s12 }
 0x1e7   : > { %698 = vst.msk [vmem:[#allocation3] sm:$0xff] %vm335_vm0, %v690_v62  ;;  %v706_v3 = vmul.f32 %v690_v62, %v346_v8  ;;  %v679_v6 = vmul.f32 0.6931472, %v1686_v45 }
 0x1e8   : > { %715 = vst.msk [vmem:[#allocation4 + $0x8] sm:$0xff] %vm335_vm0, %v707_v0  ;;  %v693_v9 = vadd.f32 %v681_v2, %v629_v1 }
 0x1e9   : > { %v1688_v50 = vpop.eup %1687  ;;  %714 = vst.msk [vmem:[#allocation4] sm:$0xff] %vm335_vm0, %v706_v3  ;;  %v692_v10 = vadd.f32 %v679_v6, %v628_v4 }
 0x1ea   : > { %v1690_v11 = vpop.eup %1689  ;;  %701 = vst.msk [vmem:[#allocation3 + $0x18] sm:$0xff] %vm335_vm0, %v693_v9  ;;  %v709_v16 = vmul.f32 %v693_v9, %v349_v29  ;;  %v685_v5 = vmul.f32 0.6931472, %v1688_v50  ;;  %855 = vrot.lane.b32.xlu0 %v2031_v47, %s1806_s14  ;;  %823 = vrot.lane.b32.xlu1 %v2045_v43, %s1803_s11 }
 0x1eb   : > { %700 = vst.msk [vmem:[#allocation3 + $0x10] sm:$0xff] %vm335_vm0, %v692_v10  ;;  %v708_v8 = vmul.f32 %v692_v10, %v348_v30  ;;  %v683_v18 = vmul.f32 0.6931472, %v1690_v11 }
 0x1ec   : > { %717 = vst.msk [vmem:[#allocation4 + $0x18] sm:$0xff] %vm335_vm0, %v709_v16  ;;  %v695_v29 = vadd.f32 %v685_v5, %v631_v17 }
 0x1ed   : > { %v1692_v60 = vpop.eup %1691  ;;  %716 = vst.msk [vmem:[#allocation4 + $0x10] sm:$0xff] %vm335_vm0, %v708_v8  ;;  %v694_v19 = vadd.f32 %v683_v18, %v630_v53 }
 0x1ee   : > { %703 = vst.msk [vmem:[#allocation3 + $0x28] sm:$0xff] %vm335_vm0, %v695_v29  ;;  %v711_v20 = vmul.f32 %v695_v29, %v351_v33  ;;  %v689_v22 = vmul.f32 0.6931472, %v1692_v60  ;;  %872 = vrot.lane.b32.xlu0 %v2031_v47, %s1807_s15  ;;  %840 = vrot.lane.b32.xlu1 %v2045_v43, %s1805_s13  ;;  %v632_v33 = vmax.f32 %v2027_v15, 0.0  ;;  %v2140_v15 = vld [vmem:[#allocation2 + $0x8] sm:$0xff]  }
 0x1ef   : > { %702 = vst.msk [vmem:[#allocation3 + $0x20] sm:$0xff] %vm335_vm0, %v694_v19  ;;  %v710_v12 = vmul.f32 %v694_v19, %v350_v34 }
 0x1f0   : > { %v1694_v30 = vpop.eup %1693  ;;  %719 = vst.msk [vmem:[#allocation4 + $0x28] sm:$0xff] %vm335_vm0, %v711_v20  ;;  %v697_v63 = vadd.f32 %v689_v22, %v633_v21 }
 0x1f1   : > { %718 = vst.msk [vmem:[#allocation4 + $0x20] sm:$0xff] %vm335_vm0, %v710_v12  ;;  %v687_v7 = vmul.f32 0.6931472, %v1694_v30 }
 0x1f2   : > { %705 = vst.msk [vmem:[#allocation3 + $0x38] sm:$0xff] %vm335_vm0, %v697_v63  ;;  %v713_v23 = vmul.f32 %v697_v63, %v353_v37  ;;  %889 = vrot.lane.b32.xlu0 %v2031_v47, %s1808_s16  ;;  %857 = vrot.lane.b32.xlu1 %v2045_v43, %s1806_s14  ;;  %v2133_v37 = vld [vmem:[%s2361_s4 + $0x8] sm:$0xff] }
 0x1f3   : > { %v696_v13 = vadd.f32 %v687_v7, %v632_v33 }
 0x1f4   : > { %721 = vst.msk [vmem:[#allocation4 + $0x38] sm:$0xff] %vm335_vm0, %v713_v23 }
 0x1f5   : > { %704 = vst.msk [vmem:[#allocation3 + $0x30] sm:$0xff] %vm335_vm0, %v696_v13  ;;  %v712_v34 = vmul.f32 %v696_v13, %v352_v39  ;;  %v2135_v39 = vld [vmem:[#allocation2] sm:$0xff]  }
 0x1f6   : > { %800 = vrot.lane.b32.xlu0 %v2040_v52, %s1804_s12  ;;  %874 = vrot.lane.b32.xlu1 %v2045_v43, %s1807_s15 }
 0x1f7   : > { %720 = vst.msk [vmem:[#allocation4 + $0x30] sm:$0xff] %vm335_vm0, %v712_v34 }
 0x1fa   : > { %817 = vrot.lane.b32.xlu0 %v2040_v52, %s1803_s11  ;;  %891 = vrot.lane.b32.xlu1 %v2045_v43, %s1808_s16 }
 0x1fe   : > { %834 = vrot.lane.b32.xlu0 %v2040_v52, %s1805_s13  ;;  %819 = vrot.lane.b32.xlu1 %v2049_v59, %s1803_s11 }
 0x202   : > { %851 = vrot.lane.b32.xlu0 %v2040_v52, %s1806_s14  ;;  %836 = vrot.lane.b32.xlu1 %v2049_v59, %s1805_s13 }
 0x206   : > { %868 = vrot.lane.b32.xlu0 %v2040_v52, %s1807_s15  ;;  %853 = vrot.lane.b32.xlu1 %v2049_v59, %s1806_s14 }
 0x20a   : > { %885 = vrot.lane.b32.xlu0 %v2040_v52, %s1808_s16  ;;  %870 = vrot.lane.b32.xlu1 %v2049_v59, %s1807_s15 }
 0x20e   : > { %902 = vrot.lane.b32.xlu0 %v2040_v52, %s1809_s21  ;;  %887 = vrot.lane.b32.xlu1 %v2049_v59, %s1808_s16 }
 0x212   : > { %904 = vrot.lane.b32.xlu1 %v2049_v59, %s1809_s21  ;;  %802 = vrot.lane.b32.xlu0 %v2049_v59, %s1804_s12 }
 0x216   : > { %908 = vrot.lane.b32.xlu1 %v2045_v43, %s1809_s21  ;;  %906 = vrot.lane.b32.xlu0 %v2031_v47, %s1809_s21 }
 0x254   : > { %v822_v24 = vpop.permute.xlu0 %821  ;;  %v805_v25 = vpop.permute.xlu1 %804 }
 0x255   : > { %832 = vst.msk [vmem:[#allocation5 + $0x50] sm:$0xff] %vm791_vm3, %v822_v24  ;;  %815 = vst.msk [vmem:[#allocation5 + $0x30] sm:$0xff] %vm791_vm3, %v805_v25 }
 0x258   : > { %v839_v26 = vpop.permute.xlu0 %838  ;;  %v807_v27 = vpop.permute.xlu1 %806 }
 0x259   : > { %849 = vst.msk [vmem:[#allocation5 + $0x70] sm:$0xff] %vm791_vm3, %v839_v26  ;;  %816 = vst.msk [vmem:[#allocation5 + $0x38] sm:$0xff] %vm791_vm3, %v807_v27 }
 0x25c   : > { %v856_v28 = vpop.permute.xlu0 %855  ;;  %v824_v31 = vpop.permute.xlu1 %823 }
 0x25d   : > { %866 = vst.msk [vmem:[#allocation5 + $0x90] sm:$0xff] %vm791_vm3, %v856_v28  ;;  %833 = vst.msk [vmem:[#allocation5 + $0x58] sm:$0xff] %vm791_vm3, %v824_v31 }
 0x260   : > { %v873_v32 = vpop.permute.xlu0 %872  ;;  %v841_v35 = vpop.permute.xlu1 %840 }
 0x261   : > { %883 = vst.msk [vmem:[#allocation5 + $0xb0] sm:$0xff] %vm791_vm3, %v873_v32  ;;  %850 = vst.msk [vmem:[#allocation5 + $0x78] sm:$0xff] %vm791_vm3, %v841_v35 }
 0x264   : > { %v890_v36 = vpop.permute.xlu0 %889  ;;  %v858_v38 = vpop.permute.xlu1 %857 }
 0x265   : > { %900 = vst.msk [vmem:[#allocation5 + $0xd0] sm:$0xff] %vm791_vm3, %v890_v36  ;;  %867 = vst.msk [vmem:[#allocation5 + $0x98] sm:$0xff] %vm791_vm3, %v858_v38 }
 0x268   : > { %v801_v40 = vpop.permute.xlu0 %800  ;;  %v875_v41 = vpop.permute.xlu1 %874 }
 0x269   : > { %813 = vst.msk [vmem:[#allocation5 + $0x20] sm:$0xff] %vm791_vm3, %v801_v40  ;;  %884 = vst.msk [vmem:[#allocation5 + $0xb8] sm:$0xff] %vm791_vm3, %v875_v41 }
 0x26c   : > { %v818_v42 = vpop.permute.xlu0 %817  ;;  %v892_v44 = vpop.permute.xlu1 %891 }
 0x26d   : > { %830 = vst.msk [vmem:[#allocation5 + $0x40] sm:$0xff] %vm791_vm3, %v818_v42  ;;  %901 = vst.msk [vmem:[#allocation5 + $0xd8] sm:$0xff] %vm791_vm3, %v892_v44 }
 0x270   : > { %v835_v46 = vpop.permute.xlu0 %834  ;;  %v820_v47 = vpop.permute.xlu1 %819 }
 0x271   : > { %847 = vst.msk [vmem:[#allocation5 + $0x60] sm:$0xff] %vm791_vm3, %v835_v46  ;;  %831 = vst.msk [vmem:[#allocation5 + $0x48] sm:$0xff] %vm791_vm3, %v820_v47 }
 0x274   : > { %v852_v48 = vpop.permute.xlu0 %851  ;;  %v837_v49 = vpop.permute.xlu1 %836 }
 0x275   : > { %864 = vst.msk [vmem:[#allocation5 + $0x80] sm:$0xff] %vm791_vm3, %v852_v48  ;;  %848 = vst.msk [vmem:[#allocation5 + $0x68] sm:$0xff] %vm791_vm3, %v837_v49 }
 0x278   : > { %v869_v51 = vpop.permute.xlu0 %868  ;;  %v854_v52 = vpop.permute.xlu1 %853 }
 0x279   : > { %881 = vst.msk [vmem:[#allocation5 + $0xa0] sm:$0xff] %vm791_vm3, %v869_v51  ;;  %865 = vst.msk [vmem:[#allocation5 + $0x88] sm:$0xff] %vm791_vm3, %v854_v52 }
 0x27c   : > { %v886_v54 = vpop.permute.xlu0 %885  ;;  %v871_v55 = vpop.permute.xlu1 %870 }
 0x27d   : > { %898 = vst.msk [vmem:[#allocation5 + $0xc0] sm:$0xff] %vm791_vm3, %v886_v54  ;;  %882 = vst.msk [vmem:[#allocation5 + $0xa8] sm:$0xff] %vm791_vm3, %v871_v55 }
 0x280   : > { %v903_v56 = vpop.permute.xlu0 %902  ;;  %v888_v43 = vpop.permute.xlu1 %887 }
 0x281   : > { %915 = vst.msk [vmem:[#allocation5 + $0xe0] sm:$0xff] %vm791_vm3, %v903_v56  ;;  %899 = vst.msk [vmem:[#allocation5 + $0xc8] sm:$0xff] %vm791_vm3, %v888_v43 }
 0x284   : > { %v905_v57 = vpop.permute.xlu1 %904  ;;  %v803_v58 = vpop.permute.xlu0 %802 }
 0x285   : > { %916 = vst.msk [vmem:[#allocation5 + $0xe8] sm:$0xff] %vm791_vm3, %v905_v57  ;;  %814 = vst.msk [vmem:[#allocation5 + $0x28] sm:$0xff] %vm791_vm3, %v803_v58 }
 0x288   : > { %v909_v59 = vpop.permute.xlu1 %908  ;;  %v907_v61 = vpop.permute.xlu0 %906 }
 0x289   : > { %918 = vst.msk [vmem:[#allocation5 + $0xf8] sm:$0xff] %vm791_vm3, %v909_v59  ;;  %917 = vst.msk [vmem:[#allocation5 + $0xf0] sm:$0xff] %vm791_vm3, %v907_v61 }
 0x28a LB: >> { %v1810_v62 = vmov 7   ;;  %s954_s23 = ssub.s32 7, %s1800_s22  ;;  %v1811_v2 = vmov 6   ;;  %v1812_v3 = vmov 5   ;;  %v1813_v4 = vmov 4   ;;  %s951_s22 = sadd.s32 1, %s1800_s22   ;;  %s1800_s22 = sphi %s2183_s22, %s951_s22   ;;  %v1796_v39 = vphi %v2135_v39, %v2368_v39   ;;  %v1792_v15 = vphi %v2140_v15, %v2367_v15  }
 0x28b   : >> { %1696 = vset.pattern.permute.xlu1 %v1810_v62  ;;  %1695 = vset.pattern.permute.xlu0 %v1810_v62  ;;  %s1511_s28 = sshll.u32 %s954_s23, 5  ;;  %v1814_v6 = vmov 3   ;;  %v1815_v9 = vmov 1   ;;  %v1816_v50 = vmov 2   ;;  %v1817_v10 = vmov 0   ;;  %s2218_s30 = sshll.u32 %s954_s23, 3 }
 0x28c   : >> { %s2199_s29 = scalar_lea.vmem [#allocation5], %s1511_s28  ;;  %v966_v16 = vlaneseq  ;;  %s956_s8 = scalar_lea.vmem [#allocation3], %s2218_s30  ;;  %vm1346_vm4 = vcmask 1040384   ;;  %vm1349_vm5 = vcmask 1042432   ;;  %vm1351_vm6 = vcmask 1043456  }
 0x28d   : >> { %v2224_v8 = vld [vmem:[%s956_s8] sm:$0xff]  ;;  %s958_s9 = scalar_lea.vmem [#allocation4], %s2218_s30  ;;  %vm1353_vm7 = vcmask 1044480   ;;  %s1359_s10 = scalar_lea.vmem %s1910_s24, %s2218_s30  ;;  %vm1355_vm8 = vcmask 1045504   ;;  %vm1357_vm9 = vcmask 1046528  }
 0x28e   : >> { %v2220_v17 = vshrl.u32 %v966_v16, 7  ;;  %v2238_v34 = vld [vmem:[%s958_s9] sm:$0xff]  ;;  %p948_p5 = scmp.ge.s32.totalorder %s951_s22, 8  }
 0x290   : >> { %v2202_v45 = vld [vmem:[%s2199_s29 + $0x10] sm:$0xff]  ;;  %v962_v0 = vld [vmem:[%s2199_s29] sm:$0xff]  ;;  %v963_v1 = vld [vmem:[%s2199_s29 + $0x8] sm:$0xff]  ;;  %v968_v5 = vsub.s32 7, %v2220_v17  ;;  %v1019_v60 = vsub.s32 6, %v2220_v17  ;;  %v1066_v30 = vsub.s32 5, %v2220_v17 }
 0x291   : >> { %998 = vperm.xlu1 %1696, %v2202_v45   ;;  %984 = vperm.xlu0 %1695, %v962_v0   ;;  %v965_v11 = vld [vmem:[%s2199_s29 + $0x18] sm:$0xff]  ;;  %v1113_v31 = vsub.s32 4, %v2220_v17 }
 0x292   : >> { %v969_v53 = vrot.slane %v2224_v8, %v968_v5  ;;  %v1020_v21 = vrot.slane %v2224_v8, %v1019_v60  ;;  %v1067_v13 = vrot.slane %v2224_v8, %v1066_v30  ;;  %v981_v32 = vrot.slane %v2238_v34, %v968_v5 }
 0x293   : >> { %v1114_v42 = vrot.slane %v2224_v8, %v1113_v31  ;;  %v1032_v56 = vrot.slane %v2238_v34, %v1019_v60 }
 0x294   : >> { %v971_v18 = vmul.f32 %v969_v53, %v2133_v37  ;;  %v970_v29 = vmul.f32 %v969_v53, %v2128_v14  ;;  %v1022_v22 = vmul.f32 %v1020_v21, %v2133_v37  ;;  %v1021_v12 = vmul.f32 %v1020_v21, %v2128_v14 }
 0x295   : >> { %1697 = vset.pattern.permute.xlu1 %v1811_v2  ;;  %989 = vperm.xlu0 %1695, %v963_v1   ;;  %v1069_v24 = vmul.f32 %v1067_v13, %v2133_v37  ;;  %v1068_v28 = vmul.f32 %v1067_v13, %v2128_v14  ;;  %v1116_v48 = vmul.f32 %v1114_v42, %v2133_v37 }
 0x296   : >> { %1034 = vperm.xlu1 %1697, %v962_v0   ;;  %v974_v19 = vmul.f32 1.442695, %v971_v18  ;;  %v972_v20 = vmul.f32 1.442695, %v970_v29  ;;  %v1025_v63 = vmul.f32 1.442695, %v1022_v22  ;;  %v1115_v54 = vmul.f32 %v1114_v42, %v2128_v14 }
 0x297   : >> { %v1023_v23 = vmul.f32 1.442695, %v1021_v12  ;;  %v1072_v36 = vmul.f32 1.442695, %v1069_v24  ;;  %v1070_v41 = vmul.f32 1.442695, %v1068_v28  ;;  %v1126_v13 = vrot.slane %v2238_v34, %v1113_v31 }
 0x298   : >> { %1722 = vpow2.f32 %v974_v19  ;;  %v1119_v57 = vmul.f32 1.442695, %v1116_v48  ;;  %v1117_v61 = vmul.f32 1.442695, %v1115_v54  ;;  %v1254_v22 = vsub.s32 1, %v2220_v17 }
 0x299   : >> { %1698 = vset.pattern.permute.xlu0 %v1811_v2  ;;  %1724 = vpow2.f32 %v972_v20  ;;  %v1301_v31 = vsub.s32 0, %v2220_v17 }
 0x29a   : >> { %1699 = vset.pattern.permute.xlu1 %v1812_v3  ;;  %1038 = vperm.xlu0 %1698, %v963_v1   ;;  %1726 = vpow2.f32 %v1025_v63 }
 0x29b   : >> { %1081 = vperm.xlu1 %1699, %v962_v0   ;;  %1728 = vpow2.f32 %v1023_v23 }
 0x29c   : >> { %1730 = vpow2.f32 %v1072_v36 }
 0x29d   : >> { %1732 = vpow2.f32 %v1070_v41 }
 0x29e   : >> { %1700 = vset.pattern.permute.xlu0 %v1813_v4  ;;  %1734 = vpow2.f32 %v1119_v57 }
 0x29f   : >> { %1085 = vperm.xlu1 %1699, %v963_v1   ;;  %1128 = vperm.xlu0 %1700, %v962_v0   ;;  %1736 = vpow2.f32 %v1117_v61 }
 0x2a2   : >> { %v1723_v25 = vpop.eup %1722 }
 0x2a3   : >> { %1701 = vset.pattern.permute.xlu1 %v1813_v4  ;;  %1703 = vset.pattern.permute.xlu0 %v1814_v6  ;;  %v1725_v35 = vpop.eup %1724  ;;  %v977_v38 = vmul.f32 %v1792_v15, %v1723_v25  ;;  %v1160_v15 = vsub.s32 3, %v2220_v17 }
 0x2a4   : >> { %1132 = vperm.xlu1 %1701, %v963_v1   ;;  %1179 = vperm.xlu0 %1703, %v963_v1   ;;  %v976_v44 = vmul.f32 %v1796_v39, %v1725_v35  ;;  %v1727_v51 = vpop.eup %1726 }
 0x2a5   : >> { %v1729_v39 = vpop.eup %1728 }
 0x2a8   : >> { %1702 = vset.pattern.permute.xlu1 %v1814_v6  ;;  %1705 = vset.pattern.permute.xlu0 %v1815_v9 }
 0x2a9   : >> { %1175 = vperm.xlu1 %1702, %v962_v0   ;;  %1269 = vperm.xlu0 %1705, %v962_v0  }
 0x2ad   : >> { %1704 = vset.pattern.permute.xlu1 %v1816_v50  ;;  %1708 = vset.pattern.permute.xlu0 %v1817_v10 }
 0x2ae   : >> { %1222 = vperm.xlu1 %1704, %v962_v0   ;;  %1320 = vperm.xlu0 %1708, %v963_v1  }
 0x2b2   : >> { %1226 = vperm.xlu1 %1704, %v963_v1   ;;  %1328 = vperm.xlu0 %1708, %v2202_v45  }
 0x2b6   : >> { %1706 = vset.pattern.permute.xlu1 %v1815_v9  ;;  %1711 = vset.pattern.permute.xlu0 %v1816_v50 }
 0x2b7   : >> { %1273 = vperm.xlu1 %1706, %v963_v1   ;;  %1234 = vperm.xlu0 %1711, %v2202_v45   ;;  %v1207_v1 = vsub.s32 2, %v2220_v17 }
 0x2bb   : >> { %1707 = vset.pattern.permute.xlu1 %v1817_v10  ;;  %1714 = vset.pattern.permute.xlu0 %v1814_v6 }
 0x2bc   : >> { %1316 = vperm.xlu1 %1707, %v962_v0   ;;  %1191 = vperm.xlu0 %1714, %v965_v11  }
 0x2c0   : >> { %1709 = vset.pattern.permute.xlu1 %v1815_v9  ;;  %1716 = vset.pattern.permute.xlu0 %v1812_v3 }
 0x2c1   : >> { %1281 = vperm.xlu1 %1709, %v2202_v45   ;;  %1093 = vperm.xlu0 %1716, %v2202_v45  }
 0x2c5   : >> { %1285 = vperm.xlu1 %1709, %v965_v11   ;;  %1719 = vset.pattern.permute.xlu0 %v1811_v2 }
 0x2c6   : >> { %1050 = vperm.xlu0 %1719, %v965_v11  }
 0x2c9   : >> { %1710 = vset.pattern.permute.xlu1 %v1817_v10 }
 0x2ca   : >> { %1332 = vperm.xlu1 %1710, %v965_v11   ;;  %1721 = vset.pattern.permute.xlu0 %v1817_v10  ;;  %v1079_v10 = vrot.slane %v2238_v34, %v1066_v30 }
 0x2ce   : >> { %1712 = vset.pattern.permute.xlu1 %v1816_v50 }
 0x2cf   : >> { %1238 = vperm.xlu1 %1712, %v965_v11  }
 0x2d3   : >> { %1713 = vset.pattern.permute.xlu1 %v1814_v6  ;;  %v1731_v6 = vpop.eup %1730 }
 0x2d4   : >> { %1187 = vperm.xlu1 %1713, %v2202_v45   ;;  %v1733_v16 = vpop.eup %1732 }
 0x2d5   : >> { %v1735_v63 = vpop.eup %1734 }
 0x2d6   : >> { %v1737_v25 = vpop.eup %1736 }
 0x2d8   : >> { %1715 = vset.pattern.permute.xlu1 %v1813_v4 }
 0x2d9   : >> { %1140 = vperm.xlu1 %1715, %v2202_v45  }
 0x2dd   : >> { %1144 = vperm.xlu1 %1715, %v965_v11  }
 0x2e1   : >> { %1717 = vset.pattern.permute.xlu1 %v1812_v3 }
 0x2e2   : >> { %1097 = vperm.xlu1 %1717, %v965_v11  }
 0x2e6   : >> { %1718 = vset.pattern.permute.xlu1 %v1811_v2 }
 0x2e7   : >> { %1046 = vperm.xlu1 %1718, %v2202_v45  }
 0x2eb   : >> { %1720 = vset.pattern.permute.xlu1 %v1810_v62  ;;  %v1161_v62 = vrot.slane %v2224_v8, %v1160_v15 }
 0x2ec   : >> { %1003 = vperm.xlu1 %1720, %v965_v11   ;;  %v1208_v11 = vrot.slane %v2224_v8, %v1207_v1 }
 0x2ed   : >> { %v1163_v3 = vmul.f32 %v1161_v62, %v2133_v37  ;;  %v1162_v9 = vmul.f32 %v1161_v62, %v2128_v14 }
 0x2ee   : >> { %v1209_v21 = vmul.f32 %v1208_v11, %v2128_v14  ;;  %v1210_v12 = vmul.f32 %v1208_v11, %v2133_v37 }
 0x2ef   : >> { %v1166_v5 = vmul.f32 1.442695, %v1163_v3  ;;  %v1164_v60 = vmul.f32 1.442695, %v1162_v9 }
 0x2f0   : >> { %v1211_v24 = vmul.f32 1.442695, %v1209_v21  ;;  %v1213_v28 = vmul.f32 1.442695, %v1210_v12  ;;  %v1267_v21 = vrot.slane %v2238_v34, %v1254_v22 }
 0x2f1   : >> { %1738 = vpow2.f32 %v1166_v5 }
 0x2f2   : >> { %1740 = vpow2.f32 %v1164_v60 }
 0x2f3   : >> { %1742 = vpow2.f32 %v1211_v24 }
 0x2f4   : >> { %1744 = vpow2.f32 %v1213_v28 }
 0x310   : >> { %v2234_v33 = vpop.permute.xlu1 %998  ;;  %v985_v7 = vpop.permute.xlu0 %984 }
 0x311   : >> { %v992_v46 = vmul.f32 %v985_v7, %v981_v32 }
 0x313   : >> { %v2252_v55 = vadd.f32 %v992_v46, %v976_v44  ;;  %v1173_v46 = vrot.slane %v2238_v34, %v1160_v15 }
 0x314   : >> { %v990_v27 = vpop.permute.xlu0 %989 }
 0x315   : >> { %v1035_v26 = vpop.permute.xlu1 %1034  ;;  %v993_v40 = vmul.f32 %v990_v27, %v981_v32  ;;  %v1027_v45 = vmul.f32 %v1729_v39, %v2252_v55  ;;  %v1255_v27 = vrot.slane %v2224_v8, %v1254_v22  ;;  %v1302_v39 = vrot.slane %v2224_v8, %v1301_v31 }
 0x316   : >> { %v1041_v0 = vmul.f32 %v1035_v26, %v1032_v56  ;;  %v1220_v8 = vrot.slane %v2238_v34, %v1207_v1 }
 0x317   : >> { %v2248_v49 = vadd.f32 %v993_v40, %v977_v38  ;;  %v1257_v36 = vmul.f32 %v1255_v27, %v2133_v37  ;;  %v1256_v42 = vmul.f32 %v1255_v27, %v2128_v14  ;;  %v1304_v61 = vmul.f32 %v1302_v39, %v2133_v37 }
 0x318   : >> { %v2263_v50 = vadd.f32 %v1041_v0, %v1027_v45  ;;  %v1303_v15 = vmul.f32 %v1302_v39, %v2128_v14 }
 0x319   : >> { %v1039_v52 = vpop.permute.xlu0 %1038  ;;  %v1028_v58 = vmul.f32 %v1727_v51, %v2248_v49  ;;  %v1260_v51 = vmul.f32 1.442695, %v1257_v36 }
 0x31a   : >> { %v1082_v47 = vpop.permute.xlu1 %1081  ;;  %v1042_v59 = vmul.f32 %v1039_v52, %v1032_v56  ;;  %v1074_v19 = vmul.f32 %v1733_v16, %v2263_v50  ;;  %v1305_v16 = vmul.f32 1.442695, %v1303_v15 }
 0x31b   : >> { %v1088_v20 = vmul.f32 %v1082_v47, %v1079_v10  ;;  %v1739_v47 = vpop.eup %1738  ;;  %1746 = vpow2.f32 %v1260_v51 }
 0x31c   : >> { %v2260_v4 = vadd.f32 %v1042_v59, %v1028_v58  ;;  %v1741_v56 = vpop.eup %1740 }
 0x31d   : >> { %v2276_v23 = vadd.f32 %v1088_v20, %v1074_v19  ;;  %v1743_v0 = vpop.eup %1742 }
 0x31e   : >> { %v1086_v43 = vpop.permute.xlu1 %1085  ;;  %v1075_v53 = vmul.f32 %v1731_v6, %v2260_v4  ;;  %v1129_v26 = vpop.permute.xlu0 %1128 }
 0x31f   : >> { %v1089_v18 = vmul.f32 %v1086_v43, %v1079_v10  ;;  %v1121_v40 = vmul.f32 %v1737_v25, %v2276_v23  ;;  %v1135_v41 = vmul.f32 %v1129_v26, %v1126_v13  ;;  %v1258_v43 = vmul.f32 1.442695, %v1256_v42  ;;  %v1745_v6 = vpop.eup %1744 }
 0x320   : >> { %v1307_v10 = vmul.f32 1.442695, %v1304_v61 }
 0x321   : >> { %v2274_v30 = vadd.f32 %v1089_v18, %v1075_v53  ;;  %v2288_v52 = vadd.f32 %v1135_v41, %v1121_v40  ;;  %1748 = vpow2.f32 %v1258_v43 }
 0x322   : >> { %1750 = vpow2.f32 %v1307_v10 }
 0x323   : >> { %v1133_v2 = vpop.permute.xlu1 %1132  ;;  %v1122_v32 = vmul.f32 %v1735_v63, %v2274_v30  ;;  %v1180_v48 = vpop.permute.xlu0 %1179  ;;  %v1168_v62 = vmul.f32 %v1741_v56, %v2288_v52  ;;  %1752 = vpow2.f32 %v1305_v16 }
 0x324   : >> { %v1136_v35 = vmul.f32 %v1133_v2, %v1126_v13  ;;  %v1183_v58 = vmul.f32 %v1180_v48, %v1173_v46 }
 0x325   : >> { %v1747_v19 = vpop.eup %1746 }
 0x326   : >> { %v2285_v44 = vadd.f32 %v1136_v35, %v1122_v32 }
 0x328   : >> { %v1176_v29 = vpop.permute.xlu1 %1175  ;;  %v1169_v57 = vmul.f32 %v1739_v47, %v2285_v44  ;;  %v1270_v9 = vpop.permute.xlu0 %1269 }
 0x329   : >> { %v1182_v59 = vmul.f32 %v1176_v29, %v1173_v46  ;;  %v1276_v24 = vmul.f32 %v1270_v9, %v1267_v21 }
 0x32a   : >> { %v1185_v2 = vadd.f32 %v1183_v58, %v1169_v57 }
 0x32b   : >> { %v1184_v3 = vadd.f32 %v1182_v59, %v1168_v62  ;;  %v1749_v63 = vpop.eup %1748 }
 0x32c   : >> { %v1216_v53 = vmul.f32 %v1745_v6, %v1185_v2  ;;  %v1751_v32 = vpop.eup %1750 }
 0x32d   : >> { %v1223_v7 = vpop.permute.xlu1 %1222  ;;  %v1215_v18 = vmul.f32 %v1743_v0, %v1184_v3  ;;  %v1321_v20 = vpop.permute.xlu0 %1320 }
 0x32e   : >> { %v1229_v5 = vmul.f32 %v1223_v7, %v1220_v8  ;;  %v1314_v7 = vrot.slane %v2238_v34, %v1301_v31  ;;  %v1753_v36 = vpop.eup %1752 }
 0x330   : >> { %v1231_v12 = vadd.f32 %v1229_v5, %v1215_v18 }
 0x331   : >> { %v1227_v38 = vpop.permute.xlu1 %1226  ;;  %v1329_v26 = vpop.permute.xlu0 %1328 }
 0x332   : >> { %v1230_v11 = vmul.f32 %v1227_v38, %v1220_v8  ;;  %v1262_v25 = vmul.f32 %v1749_v63, %v1231_v12  ;;  %v1324_v38 = vmul.f32 %v1321_v20, %v1314_v7 }
 0x334   : >> { %v1232_v60 = vadd.f32 %v1230_v11, %v1216_v53  ;;  %v1278_v35 = vadd.f32 %v1276_v24, %v1262_v25 }
 0x336   : >> { %v1274_v54 = vpop.permute.xlu1 %1273  ;;  %v1263_v13 = vmul.f32 %v1747_v19, %v1232_v60  ;;  %v1235_v22 = vpop.permute.xlu0 %1234  ;;  %v1309_v46 = vmul.f32 %v1753_v36, %v1278_v35 }
 0x337   : >> { %v1277_v1 = vmul.f32 %v1274_v54, %v1267_v21  ;;  %v1241_v58 = vmul.f32 %v1235_v22, %v1231_v12 }
 0x339   : >> { %v1279_v28 = vadd.f32 %v1277_v1, %v1263_v13  ;;  %v1243_v6 = vsel %vm335_vm0, %v1241_v58, 0.0 }
 0x33b   : >> { %v1317_v45 = vpop.permute.xlu1 %1316  ;;  %v1310_v41 = vmul.f32 %v1751_v32, %v1279_v28  ;;  %v1192_v56 = vpop.permute.xlu0 %1191 }
 0x33c   : >> { %v1323_v40 = vmul.f32 %v1317_v45, %v1314_v7  ;;  %v1195_v59 = vmul.f32 %v1192_v56, %v1185_v2 }
 0x33d   : >> { %v2302_v15 = vadd.f32 %v1324_v38, %v1310_v41  }
 0x33e   : >> { %v2300_v39 = vadd.f32 %v1323_v40, %v1309_v46   ;;  %v1197_v2 = vsel %vm335_vm0, %v1195_v59, 0.0 }
 0x33f   : >> { %v2366_v48 = vmov %v2302_v15 }
 0x340   : >> { %v1282_v29 = vpop.permute.xlu1 %1281  ;;  %v2365_v47 = vmov %v2300_v39  ;;  %v1094_v9 = vpop.permute.xlu0 %1093  ;;  %1364 = vst.msk [vmem:[#allocation2 + $0x8] sm:$0xff] (%p948_p5), %vm335_vm0, %v2366_v48 }
 0x341   : >> { %v1335_v31 = vmul.f32 %v1329_v26, %v2365_v47  ;;  %v1288_v61 = vmul.f32 %v1282_v29, %v1278_v35  ;;  %v1100_v21 = vmul.f32 %v1094_v9, %v2276_v23  ;;  %1363 = vst.msk [vmem:[#allocation2] sm:$0xff] (%p948_p5), %vm335_vm0, %v2365_v47 }
 0x343   : >> { %v1337_v15 = vsel %vm335_vm0, %v1335_v31, 0.0  ;;  %v1290_v11 = vsel %vm335_vm0, %v1288_v61, 0.0 }
 0x344   : >> { %v1286_v17 = vpop.permute.xlu1 %1285 }
 0x345   : >> { %v1289_v34 = vmul.f32 %v1286_v17, %v1279_v28  ;;  %v1051_v63 = vpop.permute.xlu0 %1050 }
 0x347   : >> { %v1291_v39 = vsel %vm335_vm0, %v1289_v34, 0.0  ;;  %v1006_v34 = vmul.f32 %v2234_v33, %v2252_v55 }
 0x348   : >> { %v1292_v53 = vadd.f32 %v1291_v39, %v1290_v11 }
 0x349   : >> { %v1333_v27 = vpop.permute.xlu1 %1332 }
 0x34a   : >> { %v1336_v54 = vmul.f32 %v1333_v27, %v2366_v48  ;;  %v1102_v27 = vsel %vm335_vm0, %v1100_v21, 0.0 }
 0x34c   : >> { %v1338_v62 = vsel %vm335_vm0, %v1336_v54, 0.0 }
 0x34d   : >> { %v1339_v10 = vadd.f32 %v1338_v62, %v1337_v15  ;;  %v1008_v15 = vsel %vm335_vm0, %v1006_v34, 0.0 }
 0x34e   : >> { %v1239_v42 = vpop.permute.xlu1 %1238 }
 0x34f   : >> { %v1242_v43 = vmul.f32 %v1239_v42, %v1232_v60  ;;  %v1340_v60 = vrot.slane %v1339_v10, 4 }
 0x351   : >> { %v1244_v0 = vsel %vm335_vm0, %v1242_v43, 0.0  ;;  %v1341_v26 = vadd.f32 %v1340_v60, %v1339_v10 }
 0x352   : >> { %v1245_v16 = vadd.f32 %v1244_v0, %v1243_v6 }
 0x353   : >> { %v1188_v51 = vpop.permute.xlu1 %1187  ;;  %v1342_v40 = vrot.slane %v1341_v26, 2 }
 0x354   : >> { %v1194_v57 = vmul.f32 %v1188_v51, %v1184_v3  ;;  %v1246_v12 = vrot.slane %v1245_v16, 4 }
 0x355   : >> { %v1343_v31 = vadd.f32 %v1342_v40, %v1341_v26 }
 0x356   : >> { %v1196_v8 = vsel %vm335_vm0, %v1194_v57, 0.0  ;;  %v1247_v7 = vadd.f32 %v1246_v12, %v1245_v16 }
 0x357   : >> { %v1198_v18 = vadd.f32 %v1197_v2, %v1196_v8  ;;  %v1344_v6 = vrot.slane %v1343_v31, 1 }
 0x358   : >> { %v1141_v45 = vpop.permute.xlu1 %1140 }
 0x359   : >> { %v1147_v3 = vmul.f32 %v1141_v45, %v2288_v52  ;;  %v1293_v52 = vrot.slane %v1292_v53, 4  ;;  %v1199_v1 = vrot.slane %v1198_v18, 4 }
 0x35b   : >> { %v1149_v19 = vsel %vm335_vm0, %v1147_v3, 0.0  ;;  %v1294_v32 = vadd.f32 %v1293_v52, %v1292_v53  ;;  %v1200_v35 = vadd.f32 %v1199_v1, %v1198_v18  ;;  %v1345_v53 = vadd.f32 %v1344_v6, %v1343_v31 }
 0x35c   : >> { %v1145_v5 = vpop.permute.xlu1 %1144 }
 0x35d   : >> { %v1148_v29 = vmul.f32 %v1145_v5, %v2285_v44  ;;  %v1054_v44 = vmul.f32 %v1051_v63, %v2260_v4  ;;  %v1295_v46 = vrot.slane %v1294_v32, 2  ;;  %v1201_v51 = vrot.slane %v1200_v35, 2 }
 0x35f   : >> { %v1150_v20 = vsel %vm335_vm0, %v1148_v29, 0.0  ;;  %v1056_v22 = vsel %vm335_vm0, %v1054_v44, 0.0  ;;  %v1296_v62 = vadd.f32 %v1295_v46, %v1294_v32  ;;  %v1202_v45 = vadd.f32 %v1201_v51, %v1200_v35 }
 0x360   : >> { %v1151_v17 = vadd.f32 %v1150_v20, %v1149_v19 }
 0x361   : >> { %v1098_v13 = vpop.permute.xlu1 %1097  ;;  %v1297_v55 = vrot.slane %v1296_v62, 1  ;;  %v1203_v2 = vrot.slane %v1202_v45, 1 }
 0x362   : >> { %v1152_v24 = vrot.slane %v1151_v17, 4  ;;  %v1101_v25 = vmul.f32 %v1098_v13, %v2274_v30  ;;  %v1248_v30 = vrot.slane %v1247_v7, 2 }
 0x363   : >> { %v1298_v19 = vadd.f32 %v1297_v55, %v1296_v62  ;;  %v1204_v20 = vadd.f32 %v1203_v2, %v1202_v45 }
 0x364   : >> { %v1103_v28 = vsel %vm335_vm0, %v1101_v25, 0.0  ;;  %v1153_v36 = vadd.f32 %v1152_v24, %v1151_v17  ;;  %v1249_v59 = vadd.f32 %v1248_v30, %v1247_v7  ;;  %v1360_v7 = vld [vmem:[%s1359_s10] sm:$0xff] }
 0x365   : >> { %v1104_v23 = vadd.f32 %v1103_v28, %v1102_v27  ;;  %v1347_v17 = vsel %vm1346_vm4, %v1345_v53, %v1298_v19 }
 0x366   : >> { %v1047_v38 = vpop.permute.xlu1 %1046  ;;  %v1154_v56 = vrot.slane %v1153_v36, 2  ;;  %v1250_v3 = vrot.slane %v1249_v59, 1 }
 0x367   : >> { %v1105_v41 = vrot.slane %v1104_v23, 4  ;;  %v1053_v42 = vmul.f32 %v1047_v38, %v2263_v50 }
 0x368   : >> { %v1155_v0 = vadd.f32 %v1154_v56, %v1153_v36  ;;  %v1251_v29 = vadd.f32 %v1250_v3, %v1249_v59 }
 0x369   : >> { %v1106_v54 = vadd.f32 %v1105_v41, %v1104_v23  ;;  %v1055_v4 = vsel %vm335_vm0, %v1053_v42, 0.0 }
 0x36a   : >> { %v1057_v43 = vadd.f32 %v1056_v22, %v1055_v4  ;;  %v1156_v16 = vrot.slane %v1155_v0, 1  ;;  %v1348_v1 = vsel %vm517_vm1, %v1347_v17, %v1251_v29 }
 0x36b   : >> { %v1107_v57 = vrot.slane %v1106_v54, 2  ;;  %v1004_v58 = vpop.permute.xlu1 %1003  ;;  %v1350_v24 = vsel %vm1349_vm5, %v1348_v1, %v1204_v20 }
 0x36c   : >> { %v1058_v61 = vrot.slane %v1057_v43, 4  ;;  %v1007_v50 = vmul.f32 %v1004_v58, %v2248_v49  ;;  %v1157_v12 = vadd.f32 %v1156_v16, %v1155_v0 }
 0x36d   : >> { %v1108_v9 = vadd.f32 %v1107_v57, %v1106_v54 }
 0x36e   : >> { %v1059_v39 = vadd.f32 %v1058_v61, %v1057_v43  ;;  %v1009_v8 = vsel %vm335_vm0, %v1007_v50, 0.0  ;;  %v1352_v26 = vsel %vm1351_vm6, %v1350_v24, %v1157_v12 }
 0x36f   : >> { %v1010_v10 = vadd.f32 %v1009_v8, %v1008_v15  ;;  %v1109_v49 = vrot.slane %v1108_v9, 1  ;;  %v2367_v15 = vmov %v2366_v48 }
 0x370   : >> { %v1060_v33 = vrot.slane %v1059_v39, 2 }
 0x371   : >> { %v1011_v11 = vrot.slane %v1010_v10, 4  ;;  %v1110_v52 = vadd.f32 %v1109_v49, %v1108_v9 }
 0x372   : >> { %v1061_v5 = vadd.f32 %v1060_v33, %v1059_v39  ;;  %v2368_v39 = vmov %v2365_v47 }
 0x373   : >> { %v1012_v18 = vadd.f32 %v1011_v11, %v1010_v10  ;;  %v1354_v27 = vsel %vm1353_vm7, %v1352_v26, %v1110_v52 }
 0x374   : >> { %v1062_v60 = vrot.slane %v1061_v5, 1 }
 0x375   : >> { %v1013_v21 = vrot.slane %v1012_v18, 2 }
 0x376   : >> { %v1063_v13 = vadd.f32 %v1062_v60, %v1061_v5 }
 0x377   : >> { %v1014_v63 = vadd.f32 %v1013_v21, %v1012_v18 }
 0x378   : >> { %v1356_v28 = vsel %vm1355_vm8, %v1354_v27, %v1063_v13 }
 0x379   : >> { %v1015_v25 = vrot.slane %v1014_v63, 1 }
 0x37a   : > { %950 = sbr.rel (!%p948_p5) target bundleno = 650 (0x28a), region = 100 }
 0x37b   : >> { %v1016_v44 = vadd.f32 %v1015_v25, %v1014_v63 }
 0x37d   : >> { %v1358_v32 = vsel %vm1357_vm9, %v1356_v28, %v1016_v44 }
 0x37e   : >> { %v1361_v35 = vadd.f32 %v1360_v7, %v1358_v32 }
 0x380   : >> { %1362 = vst.msk [vmem:[%s1359_s10] sm:$0xff] %vm335_vm0, %v1361_v35 }
 0x381 PF: > { %s17_s26 = sadd.s32 1, %s1788_s26   ;;  %s2369_s24 = smov %s1784_s25 }
 0x382   : > { %p14_p6 = scmp.ge.s32.totalorder %s17_s26, 4   ;;  %s2370_s25 = smov %s2372_s27 }
 0x384   :  { %16 = sbr.rel (!%p14_p6) target bundleno = 2 (0x2), region = 111 }

</bundles_post_ra>
